<compile_context>
chip_gen: v5e
topology: v5e:2x2
jax: 0.10.0
libtpu: 0.0.40
codegen_flags: <defaults>
</compile_context>

<pallas_src>
import functools

import jax
import jax.numpy as jnp
from jax import lax
from jax.experimental import pallas as pl
from jax.experimental.pallas import tpu as pltpu


# ----------------------------- Pallas kernel --------------------------------
def _bottleneck_kernel(x_ref, w1_ref, b1_ref, w2_ref, b2_ref, w3_ref, b3_ref,
                       out_ref, pad_ref, col_ref, *, H, W, C, Cmid):
    # x_ref: (1, H, W, C) tile for one batch element.
    # conv1: 1x1 conv == channel matmul, BN folded, ReLU.  Result goes straight
    # into the padded conv2-input scratch (bounds vreg live ranges).
    h1 = jnp.maximum(
        jnp.dot(x_ref[0].reshape(H * W, C), w1_ref[...],
                preferred_element_type=jnp.float32)
        + b1_ref[...], 0.0)                              # (HW, Cmid)

    # Zero only the 1-pixel halo of the padded scratch; the interior is fully
    # overwritten below, so no full-tile zeroing is needed.
    pad_ref[0:1, :, :] = jnp.zeros((1, W + 2, Cmid), jnp.float32)
    pad_ref[H + 1:H + 2, :, :] = jnp.zeros((1, W + 2, Cmid), jnp.float32)
    pad_ref[1:H + 1, 0:1, :] = jnp.zeros((H, 1, Cmid), jnp.float32)
    pad_ref[1:H + 1, W + 1:W + 2, :] = jnp.zeros((H, 1, Cmid), jnp.float32)
    pad_ref[1:H + 1, 1:W + 1, :] = h1.reshape(H, W, Cmid)

    # conv2: 3x3 conv (padding=1) as one im2col matmul.  Build the (HW, 9*Cmid)
    # slab in VMEM; one padded-scratch read per dy (leading-dim offset only),
    # dx shifts taken from the loaded value.  Then a single MXU push, K=9*Cmid.
    for dy in range(3):                                  # static unroll
        rows = pad_ref[dy:dy + H, :, :]                  # (H, W+2, Cmid)
        for dx in range(3):
            t = 3 * dy + dx
            col_ref[:, t * Cmid:(t + 1) * Cmid] = (
                rows[:, dx:dx + W, :].reshape(H * W, Cmid))
    h2 = jnp.maximum(
        jnp.dot(col_ref[...], w2_ref[...], preferred_element_type=jnp.float32)
        + b2_ref[...], 0.0)                              # (HW, Cmid)

    # conv3: 1x1 conv, BN folded, no activation; residual add (re-read x).
    h3 = jnp.dot(h2, w3_ref[...], preferred_element_type=jnp.float32) \
        + b3_ref[...]                                    # (HW, C)
    out_ref[0] = (x_ref[0].reshape(H * W, C) + h3).reshape(H, W, C)


# ------------------------------ wrappers --------------------------------------
def residual_bottleneck_block_nhwc(x_nhwc, folded_params):
    """x_nhwc: (N, H, W, C) float32.  Returns (N, H, W, C)."""
    N, H, W, C = x_nhwc.shape
    Cmid = C // 2
    w1, b1, w2, b2, w3, b3 = folded_params

    flops = 2 * N * H * W * (C * Cmid + 9 * Cmid * Cmid + Cmid * C)
    bytes_accessed = (2 * N * H * W * C + C * Cmid + 9 * Cmid * Cmid
                      + Cmid * C + 2 * Cmid + C) * 4

    kernel = functools.partial(_bottleneck_kernel, H=H, W=W, C=C, Cmid=Cmid)
    return pl.pallas_call(
        kernel,
        out_shape=jax.ShapeDtypeStruct((N, H, W, C), jnp.float32),
        grid_spec=pltpu.PrefetchScalarGridSpec(
            num_scalar_prefetch=0,
            grid=(N,),                                   # one batch element / step
            in_specs=[
                pl.BlockSpec((1, H, W, C), lambda n: (n, 0, 0, 0)),      # x
                pl.BlockSpec((C, Cmid), lambda n: (0, 0)),               # w1
                pl.BlockSpec((1, Cmid), lambda n: (0, 0)),               # b1
                pl.BlockSpec((9 * Cmid, Cmid), lambda n: (0, 0)),        # w2 (im2col)
                pl.BlockSpec((1, Cmid), lambda n: (0, 0)),               # b2
                pl.BlockSpec((Cmid, C), lambda n: (0, 0)),               # w3
                pl.BlockSpec((1, C), lambda n: (0, 0)),                  # b3
            ],
            out_specs=pl.BlockSpec((1, H, W, C), lambda n: (n, 0, 0, 0)),
            scratch_shapes=[
                pltpu.VMEM((H + 2, W + 2, Cmid), jnp.float32),   # padded conv2 input
                pltpu.VMEM((H * W, 9 * Cmid), jnp.float32),      # im2col slab
            ],
        ),
        compiler_params=pltpu.CompilerParams(
            dimension_semantics=("parallel",),           # batch elems independent
            vmem_limit_bytes=32 * 1024 * 1024,
        ),
        cost_estimate=pl.CostEstimate(flops=flops, transcendentals=0,
                                      bytes_accessed=bytes_accessed),
    )(x_nhwc, w1, b1, w2, b2, w3, b3)


def residual_bottleneck_block(x_nchw, folded_params):
    """x_nchw: (N, C, H, W) float32.  Returns (N, C, H, W)."""
    # TODO(synk): keep activations NHWC across blocks to drop these transposes.
    x = jnp.transpose(x_nchw, (0, 2, 3, 1)).astype(jnp.float32)
    out = residual_bottleneck_block_nhwc(x, folded_params)
    return jnp.transpose(out, (0, 3, 1, 2))


# -------------------------- parameter construction ---------------------------
def _fold_bn(w, b, gamma, beta, mean, var, eps=1e-5):
    """Fold inference-mode BatchNorm into a conv whose out-channels are the
    LAST axis of `w`."""
    scale = gamma / jnp.sqrt(var + eps)
    return w * scale, (b - mean) * scale + beta


def make_params(channels, key):
    C, Cmid = channels, channels // 2
    ks = jax.random.split(key, 16)

    def bn(k, n):
        k0, k1, k2, k3 = jax.random.split(k, 4)
        gamma = 1.0 + 0.1 * jax.random.normal(k0, (n,), jnp.float32)
        beta = 0.1 * jax.random.normal(k1, (n,), jnp.float32)
        mean = 0.1 * jax.random.normal(k2, (n,), jnp.float32)
        var = 0.5 + jnp.abs(jax.random.normal(k3, (n,), jnp.float32))
        return gamma, beta, mean, var

    # conv weights stored channels-last: (Cin, Cout) for 1x1, HWIO for 3x3
    w1 = 0.2 * jax.random.normal(ks[0], (C, Cmid), jnp.float32)
    b1 = 0.1 * jax.random.normal(ks[1], (Cmid,), jnp.float32)
    w2 = 0.2 * jax.random.normal(ks[2], (3, 3, Cmid, Cmid), jnp.float32)
    b2 = 0.1 * jax.random.normal(ks[3], (Cmid,), jnp.float32)
    w3 = 0.2 * jax.random.normal(ks[4], (Cmid, C), jnp.float32)
    b3 = 0.1 * jax.random.normal(ks[5], (C,), jnp.float32)

    w1f, b1f = _fold_bn(w1, b1, *bn(ks[6], Cmid))
    w2f, b2f = _fold_bn(w2, b2, *bn(ks[7], Cmid))
    w3f, b3f = _fold_bn(w3, b3, *bn(ks[8], C))

    # w2 stored as (9*Cmid, Cmid): row index = (3*dy + dx)*Cmid + cin (im2col).
    return (w1f, b1f.reshape(1, Cmid),
            w2f.reshape(9 * Cmid, Cmid), b2f.reshape(1, Cmid),
            w3f, b3f.reshape(1, C))


# ------------------------------ JAX reference ---------------------------------
def reference(x_nchw, folded_params):
    w1, b1, w2, b2, w3, b3 = folded_params
    Cmid = w1.shape[1]
    x = jnp.transpose(x_nchw, (0, 2, 3, 1)).astype(jnp.float32)   # NHWC
    h = jnp.maximum(jnp.einsum('nhwc,cd->nhwd', x, w1) + b1[0], 0.0)
    h = lax.conv_general_dilated(
        h, w2.reshape(3, 3, Cmid, Cmid), (1, 1), ((1, 1), (1, 1)),
        dimension_numbers=('NHWC', 'HWIO', 'NHWC'))
    h = jnp.maximum(h + b2[0], 0.0)
    h = jnp.einsum('nhwc,cd->nhwd', h, w3) + b3[0]
    return jnp.transpose(x + h, (0, 3, 1, 2))


# ---------------------------------- main --------------------------------------
if __name__ == "__main__":
    N, C, H, W = 2, 4, 16, 16
    key = jax.random.PRNGKey(0)
    kx, kp = jax.random.split(key)
    x = jax.random.normal(kx, (N, C, H, W), jnp.float32)
    params = make_params(C, kp)

    out = jax.block_until_ready(residual_bottleneck_block(x, params))
    ref = jax.block_until_ready(reference(x, params))

    assert out.shape == (N, C, H, W)
    assert jnp.allclose(out, ref, atol=1e-4, rtol=1e-4), \
        f"max err {jnp.max(jnp.abs(out - ref))}"
    print("KERNEL_OK")
</pallas_src>

<mosaic_0001>
module attributes {stable_mosaic.version = 11 : i64} {
  func.func @_bottleneck_kernel(%arg0: i32, %arg1: memref<1x16x16x4xf32, #tpu.memory_space<vmem>>, %arg2: memref<4x2xf32, #tpu.memory_space<vmem>>, %arg3: memref<1x2xf32, #tpu.memory_space<vmem>>, %arg4: memref<18x2xf32, #tpu.memory_space<vmem>>, %arg5: memref<1x2xf32, #tpu.memory_space<vmem>>, %arg6: memref<2x4xf32, #tpu.memory_space<vmem>>, %arg7: memref<1x4xf32, #tpu.memory_space<vmem>>, %arg8: memref<1x16x16x4xf32, #tpu.memory_space<vmem>>, %arg9: memref<18x18x2xf32, #tpu.memory_space<vmem>>, %arg10: memref<256x18xf32, #tpu.memory_space<vmem>>) attributes {dimension_semantics = [#tpu.dimension_semantics<parallel>], iteration_bounds = array<i64: 2>, scalar_prefetch = 0 : i64, scratch_operands = 2 : i64, tpu.core_type = #tpu.core_type<tc>, window_params = [{transform_indices = @transform_0, window_bounds = array<i64: 1, 16, 16, 4>}, {pipeline_mode = #tpu.pipeline_mode<synchronous>, transform_indices = @transform_1, window_bounds = array<i64: 4, 2>}, {pipeline_mode = #tpu.pipeline_mode<synchronous>, transform_indices = @transform_2, window_bounds = array<i64: 1, 2>}, {pipeline_mode = #tpu.pipeline_mode<synchronous>, transform_indices = @transform_3, window_bounds = array<i64: 18, 2>}, {pipeline_mode = #tpu.pipeline_mode<synchronous>, transform_indices = @transform_4, window_bounds = array<i64: 1, 2>}, {pipeline_mode = #tpu.pipeline_mode<synchronous>, transform_indices = @transform_5, window_bounds = array<i64: 2, 4>}, {pipeline_mode = #tpu.pipeline_mode<synchronous>, transform_indices = @transform_6, window_bounds = array<i64: 1, 4>}, {transform_indices = @transform_7, window_bounds = array<i64: 1, 16, 16, 4>}]} {
    %c0 = arith.constant 0 : index
    %c0_0 = arith.constant 0 : index
    %c0_1 = arith.constant 0 : index
    %c0_2 = arith.constant 0 : index
    %0 = vector.load %arg1[%c0, %c0_0, %c0_1, %c0_2] : memref<1x16x16x4xf32, #tpu.memory_space<vmem>>, vector<1x16x16x4xf32>
    %1 = vector.shape_cast %0 : vector<1x16x16x4xf32> to vector<16x16x4xf32>
    %2 = vector.shape_cast %1 : vector<16x16x4xf32> to vector<256x4xf32>
    %c0_3 = arith.constant 0 : index
    %c0_4 = arith.constant 0 : index
    %3 = vector.load %arg2[%c0_3, %c0_4] : memref<4x2xf32, #tpu.memory_space<vmem>>, vector<4x2xf32>
    %cst = arith.constant dense<0.000000e+00> : vector<256x2xf32>
    %4 = tpu.matmul %2, %3, %cst {dimension_numbers = #tpu.dot_dimension_numbers<[1], [0], [0], [1], [0, 0, 1, 1], [], []>} : vector<256x4xf32>, vector<4x2xf32>, vector<256x2xf32> -> vector<256x2xf32>
    %c0_5 = arith.constant 0 : index
    %c0_6 = arith.constant 0 : index
    %5 = vector.load %arg3[%c0_5, %c0_6] : memref<1x2xf32, #tpu.memory_space<vmem>>, vector<1x2xf32>
    %6 = vector.broadcast %5 : vector<1x2xf32> to vector<256x2xf32>
    %7 = arith.addf %4, %6 : vector<256x2xf32>
    %cst_7 = arith.constant 0.000000e+00 : f32
    %8 = vector.broadcast %cst_7 : f32 to vector<256x2xf32>
    %9 = arith.maximumf %7, %8 : vector<256x2xf32>
    %cst_8 = arith.constant 0.000000e+00 : f32
    %10 = vector.broadcast %cst_8 : f32 to vector<1x18x2xf32>
    %c0_9 = arith.constant 0 : index
    %c0_10 = arith.constant 0 : index
    %c0_11 = arith.constant 0 : index
    %11 = vector.load %arg9[%c0_9, %c0_10, %c0_11] : memref<18x18x2xf32, #tpu.memory_space<vmem>>, vector<1x18x2xf32>
    tpu.vector_store %arg9[%c0_9, %c0_10, %c0_11], %10 {strides = array<i32>} : memref<18x18x2xf32, #tpu.memory_space<vmem>>, vector<1x18x2xf32>,
    %cst_12 = arith.constant 0.000000e+00 : f32
    %12 = vector.broadcast %cst_12 : f32 to vector<1x18x2xf32>
    %c17 = arith.constant 17 : index
    %c0_13 = arith.constant 0 : index
    %c0_14 = arith.constant 0 : index
    %13 = vector.load %arg9[%c17, %c0_13, %c0_14] : memref<18x18x2xf32, #tpu.memory_space<vmem>>, vector<1x18x2xf32>
    tpu.vector_store %arg9[%c17, %c0_13, %c0_14], %12 {strides = array<i32>} : memref<18x18x2xf32, #tpu.memory_space<vmem>>, vector<1x18x2xf32>,
    %cst_15 = arith.constant 0.000000e+00 : f32
    %14 = vector.broadcast %cst_15 : f32 to vector<16x1x2xf32>
    %c1 = arith.constant 1 : index
    %c0_16 = arith.constant 0 : index
    %c0_17 = arith.constant 0 : index
    %15 = vector.load %arg9[%c1, %c0_16, %c0_17] : memref<18x18x2xf32, #tpu.memory_space<vmem>>, vector<16x1x2xf32>
    tpu.vector_store %arg9[%c1, %c0_16, %c0_17], %14 {strides = array<i32>} : memref<18x18x2xf32, #tpu.memory_space<vmem>>, vector<16x1x2xf32>,
    %cst_18 = arith.constant 0.000000e+00 : f32
    %16 = vector.broadcast %cst_18 : f32 to vector<16x1x2xf32>
    %c1_19 = arith.constant 1 : index
    %c17_20 = arith.constant 17 : index
    %c0_21 = arith.constant 0 : index
    %17 = vector.load %arg9[%c1_19, %c17_20, %c0_21] : memref<18x18x2xf32, #tpu.memory_space<vmem>>, vector<16x1x2xf32>
    tpu.vector_store %arg9[%c1_19, %c17_20, %c0_21], %16 {strides = array<i32>} : memref<18x18x2xf32, #tpu.memory_space<vmem>>, vector<16x1x2xf32>,
    %18 = vector.shape_cast %9 : vector<256x2xf32> to vector<16x16x2xf32>
    %c1_22 = arith.constant 1 : index
    %c1_23 = arith.constant 1 : index
    %c0_24 = arith.constant 0 : index
    %19 = vector.load %arg9[%c1_22, %c1_23, %c0_24] : memref<18x18x2xf32, #tpu.memory_space<vmem>>, vector<16x16x2xf32>
    tpu.vector_store %arg9[%c1_22, %c1_23, %c0_24], %18 {strides = array<i32>} : memref<18x18x2xf32, #tpu.memory_space<vmem>>, vector<16x16x2xf32>,
    %c0_25 = arith.constant 0 : index
    %c0_26 = arith.constant 0 : index
    %c0_27 = arith.constant 0 : index
    %20 = vector.load %arg9[%c0_25, %c0_26, %c0_27] : memref<18x18x2xf32, #tpu.memory_space<vmem>>, vector<16x18x2xf32>
    %21 = vector.extract_strided_slice %20 {offsets = [0, 0, 0], sizes = [16, 16, 2], strides = [1, 1, 1]} : vector<16x18x2xf32> to vector<16x16x2xf32>
    %22 = vector.shape_cast %21 : vector<16x16x2xf32> to vector<256x2xf32>
    %c0_28 = arith.constant 0 : index
    %c0_29 = arith.constant 0 : index
    %23 = vector.load %arg10[%c0_28, %c0_29] : memref<256x18xf32, #tpu.memory_space<vmem>>, vector<256x2xf32>
    tpu.vector_store %arg10[%c0_28, %c0_29], %22 {strides = array<i32>} : memref<256x18xf32, #tpu.memory_space<vmem>>, vector<256x2xf32>,
    %24 = vector.extract_strided_slice %20 {offsets = [0, 1, 0], sizes = [16, 16, 2], strides = [1, 1, 1]} : vector<16x18x2xf32> to vector<16x16x2xf32>
    %25 = vector.shape_cast %24 : vector<16x16x2xf32> to vector<256x2xf32>
    %c0_30 = arith.constant 0 : index
    %c2 = arith.constant 2 : index
    %26 = vector.load %arg10[%c0_30, %c2] : memref<256x18xf32, #tpu.memory_space<vmem>>, vector<256x2xf32>
    tpu.vector_store %arg10[%c0_30, %c2], %25 {strides = array<i32>} : memref<256x18xf32, #tpu.memory_space<vmem>>, vector<256x2xf32>,
    %27 = vector.extract_strided_slice %20 {offsets = [0, 2, 0], sizes = [16, 16, 2], strides = [1, 1, 1]} : vector<16x18x2xf32> to vector<16x16x2xf32>
    %28 = vector.shape_cast %27 : vector<16x16x2xf32> to vector<256x2xf32>
    %c0_31 = arith.constant 0 : index
    %c4 = arith.constant 4 : index
    %29 = vector.load %arg10[%c0_31, %c4] : memref<256x18xf32, #tpu.memory_space<vmem>>, vector<256x2xf32>
    tpu.vector_store %arg10[%c0_31, %c4], %28 {strides = array<i32>} : memref<256x18xf32, #tpu.memory_space<vmem>>, vector<256x2xf32>,
    %c1_32 = arith.constant 1 : index
    %c0_33 = arith.constant 0 : index
    %c0_34 = arith.constant 0 : index
    %30 = vector.load %arg9[%c1_32, %c0_33, %c0_34] : memref<18x18x2xf32, #tpu.memory_space<vmem>>, vector<16x18x2xf32>
    %31 = vector.extract_strided_slice %30 {offsets = [0, 0, 0], sizes = [16, 16, 2], strides = [1, 1, 1]} : vector<16x18x2xf32> to vector<16x16x2xf32>
    %32 = vector.shape_cast %31 : vector<16x16x2xf32> to vector<256x2xf32>
    %c0_35 = arith.constant 0 : index
    %c6 = arith.constant 6 : index
    %33 = vector.load %arg10[%c0_35, %c6] : memref<256x18xf32, #tpu.memory_space<vmem>>, vector<256x2xf32>
    tpu.vector_store %arg10[%c0_35, %c6], %32 {strides = array<i32>} : memref<256x18xf32, #tpu.memory_space<vmem>>, vector<256x2xf32>,
    %34 = vector.extract_strided_slice %30 {offsets = [0, 1, 0], sizes = [16, 16, 2], strides = [1, 1, 1]} : vector<16x18x2xf32> to vector<16x16x2xf32>
    %35 = vector.shape_cast %34 : vector<16x16x2xf32> to vector<256x2xf32>
    %c0_36 = arith.constant 0 : index
    %c8 = arith.constant 8 : index
    %36 = vector.load %arg10[%c0_36, %c8] : memref<256x18xf32, #tpu.memory_space<vmem>>, vector<256x2xf32>
    tpu.vector_store %arg10[%c0_36, %c8], %35 {strides = array<i32>} : memref<256x18xf32, #tpu.memory_space<vmem>>, vector<256x2xf32>,
    %37 = vector.extract_strided_slice %30 {offsets = [0, 2, 0], sizes = [16, 16, 2], strides = [1, 1, 1]} : vector<16x18x2xf32> to vector<16x16x2xf32>
    %38 = vector.shape_cast %37 : vector<16x16x2xf32> to vector<256x2xf32>
    %c0_37 = arith.constant 0 : index
    %c10 = arith.constant 10 : index
    %39 = vector.load %arg10[%c0_37, %c10] : memref<256x18xf32, #tpu.memory_space<vmem>>, vector<256x2xf32>
    tpu.vector_store %arg10[%c0_37, %c10], %38 {strides = array<i32>} : memref<256x18xf32, #tpu.memory_space<vmem>>, vector<256x2xf32>,
    %c2_38 = arith.constant 2 : index
    %c0_39 = arith.constant 0 : index
    %c0_40 = arith.constant 0 : index
    %40 = vector.load %arg9[%c2_38, %c0_39, %c0_40] : memref<18x18x2xf32, #tpu.memory_space<vmem>>, vector<16x18x2xf32>
    %41 = vector.extract_strided_slice %40 {offsets = [0, 0, 0], sizes = [16, 16, 2], strides = [1, 1, 1]} : vector<16x18x2xf32> to vector<16x16x2xf32>
    %42 = vector.shape_cast %41 : vector<16x16x2xf32> to vector<256x2xf32>
    %c0_41 = arith.constant 0 : index
    %c12 = arith.constant 12 : index
    %43 = vector.load %arg10[%c0_41, %c12] : memref<256x18xf32, #tpu.memory_space<vmem>>, vector<256x2xf32>
    tpu.vector_store %arg10[%c0_41, %c12], %42 {strides = array<i32>} : memref<256x18xf32, #tpu.memory_space<vmem>>, vector<256x2xf32>,
    %44 = vector.extract_strided_slice %40 {offsets = [0, 1, 0], sizes = [16, 16, 2], strides = [1, 1, 1]} : vector<16x18x2xf32> to vector<16x16x2xf32>
    %45 = vector.shape_cast %44 : vector<16x16x2xf32> to vector<256x2xf32>
    %c0_42 = arith.constant 0 : index
    %c14 = arith.constant 14 : index
    %46 = vector.load %arg10[%c0_42, %c14] : memref<256x18xf32, #tpu.memory_space<vmem>>, vector<256x2xf32>
    tpu.vector_store %arg10[%c0_42, %c14], %45 {strides = array<i32>} : memref<256x18xf32, #tpu.memory_space<vmem>>, vector<256x2xf32>,
    %47 = vector.extract_strided_slice %40 {offsets = [0, 2, 0], sizes = [16, 16, 2], strides = [1, 1, 1]} : vector<16x18x2xf32> to vector<16x16x2xf32>
    %48 = vector.shape_cast %47 : vector<16x16x2xf32> to vector<256x2xf32>
    %c0_43 = arith.constant 0 : index
    %c16 = arith.constant 16 : index
    %49 = vector.load %arg10[%c0_43, %c16] : memref<256x18xf32, #tpu.memory_space<vmem>>, vector<256x2xf32>
    tpu.vector_store %arg10[%c0_43, %c16], %48 {strides = array<i32>} : memref<256x18xf32, #tpu.memory_space<vmem>>, vector<256x2xf32>,
    %c0_44 = arith.constant 0 : index
    %c0_45 = arith.constant 0 : index
    %50 = vector.load %arg10[%c0_44, %c0_45] : memref<256x18xf32, #tpu.memory_space<vmem>>, vector<256x18xf32>
    %c0_46 = arith.constant 0 : index
    %c0_47 = arith.constant 0 : index
    %51 = vector.load %arg4[%c0_46, %c0_47] : memref<18x2xf32, #tpu.memory_space<vmem>>, vector<18x2xf32>
    %cst_48 = arith.constant dense<0.000000e+00> : vector<256x2xf32>
    %52 = tpu.matmul %50, %51, %cst_48 {dimension_numbers = #tpu.dot_dimension_numbers<[1], [0], [0], [1], [0, 0, 1, 1], [], []>} : vector<256x18xf32>, vector<18x2xf32>, vector<256x2xf32> -> vector<256x2xf32>
    %c0_49 = arith.constant 0 : index
    %c0_50 = arith.constant 0 : index
    %53 = vector.load %arg5[%c0_49, %c0_50] : memref<1x2xf32, #tpu.memory_space<vmem>>, vector<1x2xf32>
    %54 = vector.broadcast %53 : vector<1x2xf32> to vector<256x2xf32>
    %55 = arith.addf %52, %54 : vector<256x2xf32>
    %cst_51 = arith.constant 0.000000e+00 : f32
    %56 = vector.broadcast %cst_51 : f32 to vector<256x2xf32>
    %57 = arith.maximumf %55, %56 : vector<256x2xf32>
    %c0_52 = arith.constant 0 : index
    %c0_53 = arith.constant 0 : index
    %58 = vector.load %arg6[%c0_52, %c0_53] : memref<2x4xf32, #tpu.memory_space<vmem>>, vector<2x4xf32>
    %cst_54 = arith.constant dense<0.000000e+00> : vector<256x4xf32>
    %59 = tpu.matmul %57, %58, %cst_54 {dimension_numbers = #tpu.dot_dimension_numbers<[1], [0], [0], [1], [0, 0, 1, 1], [], []>} : vector<256x2xf32>, vector<2x4xf32>, vector<256x4xf32> -> vector<256x4xf32>
    %c0_55 = arith.constant 0 : index
    %c0_56 = arith.constant 0 : index
    %60 = vector.load %arg7[%c0_55, %c0_56] : memref<1x4xf32, #tpu.memory_space<vmem>>, vector<1x4xf32>
    %61 = vector.broadcast %60 : vector<1x4xf32> to vector<256x4xf32>
    %62 = arith.addf %59, %61 : vector<256x4xf32>
    %c0_57 = arith.constant 0 : index
    %c0_58 = arith.constant 0 : index
    %c0_59 = arith.constant 0 : index
    %c0_60 = arith.constant 0 : index
    %63 = vector.load %arg1[%c0_57, %c0_58, %c0_59, %c0_60] : memref<1x16x16x4xf32, #tpu.memory_space<vmem>>, vector<1x16x16x4xf32>
    %64 = vector.shape_cast %63 : vector<1x16x16x4xf32> to vector<16x16x4xf32>
    %65 = vector.shape_cast %64 : vector<16x16x4xf32> to vector<256x4xf32>
    %66 = arith.addf %65, %62 : vector<256x4xf32>
    %67 = vector.shape_cast %66 : vector<256x4xf32> to vector<16x16x4xf32>
    %c0_61 = arith.constant 0 : index
    %c0_62 = arith.constant 0 : index
    %c0_63 = arith.constant 0 : index
    %c0_64 = arith.constant 0 : index
    %68 = vector.load %arg8[%c0_61, %c0_62, %c0_63, %c0_64] : memref<1x16x16x4xf32, #tpu.memory_space<vmem>>, vector<1x16x16x4xf32>
    %69 = vector.shape_cast %68 : vector<1x16x16x4xf32> to vector<16x16x4xf32>
    %70 = vector.shape_cast %67 : vector<16x16x4xf32> to vector<1x16x16x4xf32>
    tpu.vector_store %arg8[%c0_61, %c0_62, %c0_63, %c0_64], %70 {strides = array<i32>} : memref<1x16x16x4xf32, #tpu.memory_space<vmem>>, vector<1x16x16x4xf32>,
    return
  }
  func.func @transform_0(%arg0: i32) -> (i32, i32, i32, i32) {
    %c0_i32 = arith.constant 0 : i32
    %c0_i32_0 = arith.constant 0 : i32
    %c0_i32_1 = arith.constant 0 : i32
    %c0_i32_2 = arith.constant 0 : i32
    return %arg0, %c0_i32, %c0_i32_0, %c0_i32_1 : i32, i32, i32, i32
  }
  func.func @transform_1(%arg0: i32) -> (i32, i32) {
    %c0_i32 = arith.constant 0 : i32
    %c0_i32_0 = arith.constant 0 : i32
    %c0_i32_1 = arith.constant 0 : i32
    return %c0_i32, %c0_i32_0 : i32, i32
  }
  func.func @transform_2(%arg0: i32) -> (i32, i32) {
    %c0_i32 = arith.constant 0 : i32
    %c0_i32_0 = arith.constant 0 : i32
    %c0_i32_1 = arith.constant 0 : i32
    return %c0_i32, %c0_i32_0 : i32, i32
  }
  func.func @transform_3(%arg0: i32) -> (i32, i32) {
    %c0_i32 = arith.constant 0 : i32
    %c0_i32_0 = arith.constant 0 : i32
    %c0_i32_1 = arith.constant 0 : i32
    return %c0_i32, %c0_i32_0 : i32, i32
  }
  func.func @transform_4(%arg0: i32) -> (i32, i32) {
    %c0_i32 = arith.constant 0 : i32
    %c0_i32_0 = arith.constant 0 : i32
    %c0_i32_1 = arith.constant 0 : i32
    return %c0_i32, %c0_i32_0 : i32, i32
  }
  func.func @transform_5(%arg0: i32) -> (i32, i32) {
    %c0_i32 = arith.constant 0 : i32
    %c0_i32_0 = arith.constant 0 : i32
    %c0_i32_1 = arith.constant 0 : i32
    return %c0_i32, %c0_i32_0 : i32, i32
  }
  func.func @transform_6(%arg0: i32) -> (i32, i32) {
    %c0_i32 = arith.constant 0 : i32
    %c0_i32_0 = arith.constant 0 : i32
    %c0_i32_1 = arith.constant 0 : i32
    return %c0_i32, %c0_i32_0 : i32, i32
  }
  func.func @transform_7(%arg0: i32) -> (i32, i32, i32, i32) {
    %c0_i32 = arith.constant 0 : i32
    %c0_i32_0 = arith.constant 0 : i32
    %c0_i32_1 = arith.constant 0 : i32
    %c0_i32_2 = arith.constant 0 : i32
    return %arg0, %c0_i32, %c0_i32_0, %c0_i32_1 : i32, i32, i32, i32
  }
}

</mosaic_0001>

<bundles_post_ra>
// kernel: tpu_custom_call.1
= control target key start
LH: loop header
LB: loop body
LE: loop exit
PB: predicated region body
PF: predicated region fallthrough
CT: control target
= control target key end

     0   :  { %s3322_s24 = smov 0   ;;  %s5117_s0 = inlined_call_operand.vmem [shape: f32[2,16,16,4], index: 0, kind: input, shape index: {}]   ;;  %s5118_s1 = inlined_call_operand.vmem [shape: f32[4,2], index: 1, kind: input, shape index: {}]   ;;  %s5119_s2 = inlined_call_operand.vmem [shape: f32[1,2], index: 2, kind: input, shape index: {}]   ;;  %s5120_s3 = inlined_call_operand.vmem [shape: f32[18,2], index: 3, kind: input, shape index: {}]   ;;  %s5121_s4 = inlined_call_operand.vmem [shape: f32[1,2], index: 4, kind: input, shape index: {}]   ;;  %s5122_s5 = inlined_call_operand.vmem [shape: f32[2,4], index: 5, kind: input, shape index: {}]   ;;  %s5123_s6 = inlined_call_operand.vmem [shape: f32[1,4], index: 6, kind: input, shape index: {}]   ;;  %s5124_s7 = inlined_call_operand.vmem [shape: f32[2,16,16,4], index: 7, kind: output, shape index: {}]  }
   0x1 LB: > { %s3125_s25 = sadd.s32 4294967295, %s3271_s24   ;;  %p3129_p0 = scmp.ge.s32.totalorder %s3271_s24, 1  ;;  %s3271_s24 = sphi %s3322_s24, %s17_s24  }
   0x2   : > { %p237_p1 = scmp.lt.s32.totalorder %s3271_s24, 3 }
   0x4   : > { %p238_p2 = pnand %p3129_p0, %p237_p1 }
   0x5   : > { %p269_p3 = scmp.lt.s32.totalorder (!%p238_p2), %s3125_s25, 1  ;;  %s3274_s9 = smov (!%p238_p2), 2  }
   0x6   : > { %241 = sbr.rel (%p238_p2) target bundleno = 1227 (0x4cb), region = 48  ;;  %s3275_s10 = smov (!%p238_p2), 4  }
   0x7   : > { %s3276_s13 = smov (!%p238_p2), 6   ;;  %s3277_s14 = smov (!%p238_p2), 8  }
   0x8   : > { %s3278_s15 = smov (!%p238_p2), 10   ;;  %s3279_s16 = smov (!%p238_p2), 12  }
   0x9   : > { %s3280_s17 = smov (!%p238_p2), 14   ;;  %s3281_s18 = smov (!%p238_p2), 16  }
   0xb   : > { %v311_v0 = vld [vmem:[%s5118_s1] sm:$0xf]  ;;  %vm413_vm0 = vcmask 1043456   ;;  %s5126_s25 = smov (!%p269_p3, %s3125_s25), 1  ;;  %vm316_vm1 = vcmask 31744   ;;  %vm562_vm2 = vcmask 15360  }
   0xc   : > { %3134 = vmatpush.msk.msra.mxu0 %vm413_vm0, %v311_v0  ;;  %3237 = vmatpush.msk.msra.mxu3 %vm413_vm0, %v311_v0  ;;  %s3235_s28 = sshll.u32 %s5126_s25, 8  ;;  %v3273_v15 = vmov 0.0   ;;  %vm565_vm3 = vcmask 9216   ;;  %vm765_vm4 = vcmask 1046528   ;;  %vm975_vm5 = vcmask 1045504  }
   0xd   : > { %s3341_s8 = scalar_lea.vmem %s5117_s0, %s3235_s28  ;;  %563 = vst.msk [vmem:[#allocation2] sm:$0xff] %vm562_vm2, %v3273_v15  ;;  %vm572_vm6 = vcmask 8192   ;;  %v3456_v36 = vld [vmem:[%s5119_s2] ss:$0 sm:$0xff]  ;;  %vm942_vm7 = vcmask 31760   ;;  %vm1152_vm8 = vcmask 48160   ;;  %s4496_s20 = scalar_lea.vmem %s5124_s7, %s3235_s28 }
   0xe   : > { %v279_v1 = vld [vmem:[%s3341_s8] sm:$0xff]  ;;  %v304_v2 = vld [vmem:[%s3341_s8 + $0xc8] sm:$0xff]  ;;  %v305_v4 = vld [vmem:[%s3341_s8 + $0xd0] sm:$0xff]  ;;  %564 = vst.msk [vmem:[#allocation2 + $0x8] sm:$0xff] %vm562_vm2, %v3273_v15  ;;  %vm1361_vm9 = vcmask 64560   ;;  %vm1586_vm10 = vcmask 80960  }
   0xf   : > { %3135 = vmatmul.msk.f32.vlgmr.msra.gmra.mxu0 %vm316_vm1, %v279_v1  ;;  %3160 = vmatmul.msk.f32.vlgmr.msra.gmra.mxu3 %vm316_vm1, %v304_v2  ;;  %v280_v3 = vld [vmem:[%s3341_s8 + $0x8] sm:$0xff]  ;;  %v281_v5 = vld [vmem:[%s3341_s8 + $0x10] sm:$0xff]  ;;  %v306_v6 = vld [vmem:[%s3341_s8 + $0xd8] sm:$0xff]  ;;  %568 = vst.msk [vmem:[#allocation2 + $0x198] sm:$0xff] %vm562_vm2, %v3273_v15  ;;  %vm1795_vm11 = vcmask 97360   ;;  %vm2005_vm12 = vcmask 113760  }
  0x10   : > { %v282_v7 = vld [vmem:[%s3341_s8 + $0x18] sm:$0xff]  ;;  %v283_v8 = vld [vmem:[%s3341_s8 + $0x20] sm:$0xff]  ;;  %v284_v9 = vld [vmem:[%s3341_s8 + $0x28] sm:$0xff]  ;;  %569 = vst.msk [vmem:[#allocation2 + $0x1a0] sm:$0xff] %vm562_vm2, %v3273_v15  ;;  %vm2230_vm13 = vcmask 130160   ;;  %vm2608_vm14 = vcmask 1041408  }
  0x11   : > { %v307_v10 = vld [vmem:[%s3341_s8 + $0xe0] sm:$0xff]  ;;  %v285_v11 = vld [vmem:[%s3341_s8 + $0x30] sm:$0xff]  ;;  %v308_v12 = vld [vmem:[%s3341_s8 + $0xe8] sm:$0xff]  ;;  %566 = vst.msk [vmem:[#allocation2 + $0x10] sm:$0x3] %vm565_vm3, %v3273_v15  ;;  %vm2439_vm15 = vcmask 146560  }
  0x12   : > { %v286_v13 = vld [vmem:[%s3341_s8 + $0x38] sm:$0xff]  ;;  %v287_v14 = vld [vmem:[%s3341_s8 + $0x40] sm:$0xff]  ;;  %v288_v16 = vld [vmem:[%s3341_s8 + $0x48] sm:$0xff]  ;;  %570 = vst.msk [vmem:[#allocation2 + $0x1a8] sm:$0x3] %vm565_vm3, %v3273_v15  ;;  %vm2511_vm0 = vcmask 146432  }
  0x13   : > { %v289_v22 = vld [vmem:[%s3341_s8 + $0x50] sm:$0xff]  ;;  %v290_v26 = vld [vmem:[%s3341_s8 + $0x58] sm:$0xff]  ;;  %v291_v30 = vld [vmem:[%s3341_s8 + $0x60] sm:$0xff]  ;;  %573 = vst.msk [vmem:[#allocation2 + $0x18] sm:$0x1] %vm572_vm6, %v3273_v15 }
  0x14   : > { %v637_v17 = vld [vmem:[#allocation2] sm:$0xff]  ;;  %574 = vst.msk [vmem:[#allocation2 + $0x30] sm:$0x1] %vm572_vm6, %v3273_v15  ;;  %v292_v31 = vld [vmem:[%s3341_s8 + $0x68] sm:$0xff]  ;;  %v293_v34 = vld [vmem:[%s3341_s8 + $0x70] sm:$0xff] }
  0x15   : > { %v638_v18 = vld [vmem:[#allocation2 + $0x8] sm:$0xff]  ;;  %v766_v19 = vrot.slane %v637_v17, 1  ;;  %685 = vst.msk [vmem:[#allocation3] sm:$0xff] %vm562_vm2, %v637_v17  ;;  %v976_v32 = vrot.slane %v637_v17, 2  ;;  %v294_v35 = vld [vmem:[%s3341_s8 + $0x78] sm:$0xff]  ;;  %v295_v38 = vld [vmem:[%s3341_s8 + $0x80] sm:$0xff] }
  0x16   : > { %v767_v20 = vrot.slane %v638_v18, 1  ;;  %686 = vst.msk [vmem:[#allocation3 + $0x8] sm:$0xff] %vm562_vm2, %v638_v18  ;;  %v977_v27 = vrot.slane %v638_v18, 2  ;;  %v296_v44 = vld [vmem:[%s3341_s8 + $0x88] sm:$0xff]  ;;  %v297_v52 = vld [vmem:[%s3341_s8 + $0x90] sm:$0xff]  ;;  %v298_v1 = vld [vmem:[%s3341_s8 + $0x98] sm:$0xff] }
  0x17   : > { %3136 = vmatmul.msk.f32.gmra.mxu0 %vm316_vm1, %v280_v3  ;;  %3161 = vmatmul.msk.f32.gmra.mxu3 %vm316_vm1, %v305_v4  ;;  %575 = vst.msk [vmem:[#allocation2 + $0x48] sm:$0x1] %vm572_vm6, %v3273_v15 }
  0x18   : > { %v768_v21 = vsel %vm765_vm4, %v766_v19, %v767_v20  ;;  %v639_v23 = vld [vmem:[#allocation2 + $0x10] sm:$0x3]  ;;  %576 = vst.msk [vmem:[#allocation2 + $0x60] sm:$0x1] %vm572_vm6, %v3273_v15  ;;  %v978_v33 = vsel %vm975_vm5, %v976_v32, %v977_v27 }
  0x19   : > { %846 = vrot.lane.b32.xlu0 %v768_v21, %s3274_s9  ;;  %v769_v24 = vrot.slane %v639_v23, 1  ;;  %v979_v28 = vrot.slane %v639_v23, 2  ;;  %577 = vst.msk [vmem:[#allocation2 + $0x78] sm:$0x1] %vm572_vm6, %v3273_v15  ;;  %1056 = vrot.lane.b32.xlu2 %v978_v33, %s3275_s10  ;;  %v301_v33 = vld [vmem:[%s3341_s8 + $0xb0] sm:$0xff] }
  0x1a   : > { %578 = vst.msk [vmem:[#allocation2 + $0x90] sm:$0x1] %vm572_vm6, %v3273_v15 }
  0x1b   : > { %v770_v25 = vsel %vm765_vm4, %v767_v20, %v769_v24  ;;  %v980_v29 = vsel %vm975_vm5, %v977_v27, %v979_v28  ;;  %579 = vst.msk [vmem:[#allocation2 + $0xa8] sm:$0x1] %vm572_vm6, %v3273_v15 }
  0x1c   : > { %580 = vst.msk [vmem:[#allocation2 + $0xc0] sm:$0x1] %vm572_vm6, %v3273_v15 }
  0x1d   : > { %581 = vst.msk [vmem:[#allocation2 + $0xd8] sm:$0x1] %vm572_vm6, %v3273_v15 }
  0x1e   : > { %582 = vst.msk [vmem:[#allocation2 + $0xf0] sm:$0x1] %vm572_vm6, %v3273_v15 }
  0x1f   : > { %3137 = vmatmul.msk.f32.gmra.mxu0 %vm316_vm1, %v281_v5  ;;  %3162 = vmatmul.msk.f32.gmra.mxu3 %vm316_vm1, %v306_v6  ;;  %583 = vst.msk [vmem:[#allocation2 + $0x108] sm:$0x1] %vm572_vm6, %v3273_v15 }
  0x20   : > { %584 = vst.msk [vmem:[#allocation2 + $0x120] sm:$0x1] %vm572_vm6, %v3273_v15 }
  0x21   : > { %848 = vrot.lane.b32.xlu0 %v770_v25, %s3274_s9  ;;  %585 = vst.msk [vmem:[#allocation2 + $0x138] sm:$0x1] %vm572_vm6, %v3273_v15  ;;  %v300_v25 = vld [vmem:[%s3341_s8 + $0xa8] sm:$0xff] }
  0x22   : > { %586 = vst.msk [vmem:[#allocation2 + $0x150] sm:$0x1] %vm572_vm6, %v3273_v15 }
  0x23   : > { %587 = vst.msk [vmem:[#allocation2 + $0x168] sm:$0x1] %vm572_vm6, %v3273_v15 }
  0x24   : > { %588 = vst.msk [vmem:[#allocation2 + $0x180] sm:$0x1] %vm572_vm6, %v3273_v15 }
  0x25   : > { %589 = vst.msk [vmem:[#allocation2 + $0x29] sm:$0x1] %vm572_vm6, %v3273_v15 }
  0x26   : > { %590 = vst.msk [vmem:[#allocation2 + $0x41] sm:$0x1] %vm572_vm6, %v3273_v15 }
  0x27   : > { %3138 = vmatmul.msk.f32.gmra.mxu0 %vm316_vm1, %v282_v7  ;;  %3163 = vmatmul.msk.f32.gmra.mxu3 %vm316_vm1, %v307_v10  ;;  %591 = vst.msk [vmem:[#allocation2 + $0x59] sm:$0x1] %vm572_vm6, %v3273_v15 }
  0x28   : > { %592 = vst.msk [vmem:[#allocation2 + $0x71] sm:$0x1] %vm572_vm6, %v3273_v15 }
  0x29   : > { %1058 = vrot.lane.b32.xlu0 %v980_v29, %s3275_s10  ;;  %593 = vst.msk [vmem:[#allocation2 + $0x89] sm:$0x1] %vm572_vm6, %v3273_v15 }
  0x2a   : > { %594 = vst.msk [vmem:[#allocation2 + $0xa1] sm:$0x1] %vm572_vm6, %v3273_v15 }
  0x2b   : > { %595 = vst.msk [vmem:[#allocation2 + $0xb9] sm:$0x1] %vm572_vm6, %v3273_v15 }
  0x2c   : > { %596 = vst.msk [vmem:[#allocation2 + $0xd1] sm:$0x1] %vm572_vm6, %v3273_v15 }
  0x2d   : > { %597 = vst.msk [vmem:[#allocation2 + $0xe9] sm:$0x1] %vm572_vm6, %v3273_v15 }
  0x2e   : > { %598 = vst.msk [vmem:[#allocation2 + $0x101] sm:$0x1] %vm572_vm6, %v3273_v15 }
  0x2f   : > { %3139 = vmatmul.msk.f32.gmra.mxu0 %vm316_vm1, %v283_v8  ;;  %3164 = vmatmul.msk.f32.gmra.mxu3 %vm316_vm1, %v308_v12  ;;  %599 = vst.msk [vmem:[#allocation2 + $0x119] sm:$0x1] %vm572_vm6, %v3273_v15 }
  0x30   : > { %600 = vst.msk [vmem:[#allocation2 + $0x131] sm:$0x1] %vm572_vm6, %v3273_v15 }
  0x31   : > { %601 = vst.msk [vmem:[#allocation2 + $0x149] sm:$0x1] %vm572_vm6, %v3273_v15 }
  0x32   : > { %602 = vst.msk [vmem:[#allocation2 + $0x161] sm:$0x1] %vm572_vm6, %v3273_v15 }
  0x33   : > { %603 = vst.msk [vmem:[#allocation2 + $0x179] sm:$0x1] %vm572_vm6, %v3273_v15 }
  0x34   : > { %604 = vst.msk [vmem:[#allocation2 + $0x191] sm:$0x1] %vm572_vm6, %v3273_v15  ;;  %v299_v15 = vld [vmem:[%s3341_s8 + $0xa0] sm:$0xff] }
  0x37   : > { %3140 = vmatmul.msk.f32.gmra.mxu0 %vm316_vm1, %v284_v9 }
  0x3f   : > { %3141 = vmatmul.msk.f32.gmra.mxu0 %vm316_vm1, %v285_v11 }
  0x47   : > { %3142 = vmatmul.msk.f32.gmra.mxu0 %vm316_vm1, %v286_v13 }
  0x4f   : > { %3143 = vmatmul.msk.f32.gmra.mxu0 %vm316_vm1, %v287_v14 }
  0x57   : > { %3144 = vmatmul.msk.f32.gmra.mxu0 %vm316_vm1, %v288_v16 }
  0x5f   : > { %3145 = vmatmul.msk.f32.gmra.mxu0 %vm316_vm1, %v289_v22 }
  0x67   : > { %3146 = vmatmul.msk.f32.gmra.mxu0 %vm316_vm1, %v290_v26 }
  0x6f   : > { %3147 = vmatmul.msk.f32.gmra.mxu0 %vm316_vm1, %v291_v30 }
  0x77   : > { %3148 = vmatmul.msk.f32.gmra.mxu0 %vm316_vm1, %v292_v31 }
  0x7f   : > { %3149 = vmatmul.msk.f32.gmra.mxu0 %vm316_vm1, %v293_v34 }
  0x87   : > { %3150 = vmatmul.msk.f32.gmra.mxu0 %vm316_vm1, %v294_v35 }
  0x8c   : > { %v434_v37 = vpop.f32.mrf.mxu0 }
  0x8d   : > { %v435_v39 = vadd.f32 %v3456_v36, %v434_v37 }
  0x8f   : > { %v530_v40 = vmax.f32 %v435_v39, 0.0  ;;  %3151 = vmatmul.msk.f32.gmra.mxu0 %vm316_vm1, %v295_v38 }
  0x91   : > { %605 = vst.msk [vmem:[#allocation2 + $0x19] sm:$0xff] %vm562_vm2, %v530_v40 }
  0x92   : > { %v509_v41 = vpop.f32.mrf.mxu3 }
  0x93   : > { %v510_v42 = vadd.f32 %v3456_v36, %v509_v41 }
  0x94   : > { %v437_v43 = vpop.f32.mrf.mxu0 }
  0x95   : > { %v438_v45 = vadd.f32 %v3456_v36, %v437_v43  ;;  %v555_v46 = vmax.f32 %v510_v42, 0.0 }
  0x97   : > { %v531_v47 = vmax.f32 %v438_v45, 0.0  ;;  %3152 = vmatmul.msk.f32.gmra.mxu0 %vm316_vm1, %v296_v44  ;;  %630 = vst.msk [vmem:[#allocation2 + $0x141] sm:$0xff] %vm562_vm2, %v555_v46 }
  0x98   : > { %v3483_v48 = vld [vmem:[#allocation2 + $0x18] sm:$0xff] }
  0x99   : > { %606 = vst.msk [vmem:[#allocation2 + $0x21] sm:$0xff] %vm562_vm2, %v531_v47  ;;  %1265 = vrot.lane.b32.xlu1 %v3483_v48, %s3276_s13  ;;  %v1410_v57 = vrot.slane %v3483_v48, 1  ;;  %v1619_v22 = vrot.slane %v3483_v48, 2 }
  0x9a   : > { %v512_v49 = vpop.f32.mrf.mxu3  ;;  %687 = vst.msk [vmem:[#allocation3 + $0x10] sm:$0xff] %vm562_vm2, %v3483_v48 }
  0x9b   : > { %v513_v50 = vadd.f32 %v3456_v36, %v512_v49  ;;  %v302_v49 = vld [vmem:[%s3341_s8 + $0xb8] sm:$0xff] }
  0x9c   : > { %v440_v51 = vpop.f32.mrf.mxu0 }
  0x9d   : > { %v441_v53 = vadd.f32 %v3456_v36, %v440_v51  ;;  %v556_v54 = vmax.f32 %v513_v50, 0.0 }
  0x9f   : > { %v532_v55 = vmax.f32 %v441_v53, 0.0  ;;  %3153 = vmatmul.msk.f32.gmra.mxu0 %vm316_vm1, %v297_v52  ;;  %631 = vst.msk [vmem:[#allocation2 + $0x151] sm:$0xff] %vm562_vm2, %v556_v54 }
  0xa0   : > { %v1186_v56 = vld [vmem:[#allocation2 + $0x20] sm:$0xff]  ;;  %v642_v59 = vld [vmem:[#allocation2 + $0x28] sm:$0x3] }
  0xa1   : > { %607 = vst.msk [vmem:[#allocation2 + $0x31] sm:$0xff] %vm562_vm2, %v532_v55  ;;  %1267 = vrot.lane.b32.xlu2 %v1186_v56, %s3276_s13  ;;  %v1411_v58 = vrot.slane %v1186_v56, 1  ;;  %v1620_v63 = vrot.slane %v1186_v56, 2  ;;  %v984_v2 = vrot.slane %v642_v59, 2  ;;  %v1187_v3 = vld [vmem:[#allocation2 + $0x28] sm:$0x3] }
  0xa2   : > { %688 = vst.msk [vmem:[#allocation3 + $0x18] sm:$0xff] %vm562_vm2, %v1186_v56  ;;  %v515_v60 = vpop.f32.mrf.mxu3  ;;  %v1622_v7 = vrot.slane %v1187_v3, 2  ;;  %v774_v8 = vrot.slane %v642_v59, 1  ;;  %v1413_v16 = vrot.slane %v1187_v3, 1 }
  0xa3   : > { %v1412_v61 = vsel %vm765_vm4, %v1410_v57, %v1411_v58  ;;  %v516_v62 = vadd.f32 %v3456_v36, %v515_v60  ;;  %v985_v10 = vsel %vm975_vm5, %v1620_v63, %v984_v2  ;;  %v983_v23 = vsel %vm975_vm5, %v1619_v22, %v1620_v63  ;;  %v303_v60 = vld [vmem:[%s3341_s8 + $0xc0] sm:$0xff] }
  0xa4   : > { %v443_v0 = vpop.f32.mrf.mxu0  ;;  %1490 = vrot.lane.b32.xlu0 %v1412_v61, %s3277_s14  ;;  %850 = vrot.lane.b32.xlu1 %v1412_v61, %s3274_s9  ;;  %v1623_v12 = vsel %vm975_vm5, %v1620_v63, %v1622_v7  ;;  %v775_v13 = vsel %vm765_vm4, %v1411_v58, %v774_v8  ;;  %v1414_v20 = vsel %vm765_vm4, %v1411_v58, %v1413_v16  ;;  %v847_v58 = vpop.permute.xlu0 %846 }
  0xa5   : > { %v444_v4 = vadd.f32 %v3456_v36, %v443_v0  ;;  %v557_v5 = vmax.f32 %v516_v62, 0.0  ;;  %943 = vst.msk [vmem:[#allocation3] sm:$0xff] %vm942_vm7, %v847_v58  ;;  %v1057_v8 = vpop.permute.xlu2 %1056 }
  0xa6   : > { %v3507_v9 = vld [vmem:[#allocation2 + $0x150] sm:$0xff]  ;;  %1153 = vst.msk [vmem:[#allocation3] sm:$0xff] %vm1152_vm8, %v1057_v8 }
  0xa7   : > { %v533_v6 = vmax.f32 %v444_v4, 0.0  ;;  %3154 = vmatmul.msk.f32.gmra.mxu0 %vm316_vm1, %v298_v1  ;;  %632 = vst.msk [vmem:[#allocation2 + $0x159] sm:$0xff] %vm562_vm2, %v557_v5  ;;  %v1046_v27 = vrot.slane %v3507_v9, 2  ;;  %v836_v3 = vrot.slane %v3507_v9, 1 }
  0xa8   : > { %713 = vst.msk [vmem:[#allocation3 + $0xe0] sm:$0xff] %vm562_vm2, %v3507_v9  ;;  %v3514_v11 = vld [vmem:[#allocation2 + $0x30] sm:$0xff] }
  0xa9   : > { %608 = vst.msk [vmem:[#allocation2 + $0x39] sm:$0xff] %vm562_vm2, %v533_v6  ;;  %1062 = vrot.lane.b32.xlu2 %v985_v10, %s3275_s10  ;;  %v1624_v39 = vrot.slane %v3514_v11, 2  ;;  %v1415_v46 = vrot.slane %v3514_v11, 1 }
  0xaa   : > { %689 = vst.msk [vmem:[#allocation3 + $0x20] sm:$0xff] %vm562_vm2, %v3514_v11  ;;  %v518_v38 = vpop.f32.mrf.mxu3 }
  0xab   : > { %v519_v43 = vadd.f32 %v3456_v36, %v518_v38 }
  0xac   : > { %v446_v14 = vpop.f32.mrf.mxu0  ;;  %1701 = vrot.lane.b32.xlu0 %v1623_v12, %s3278_s15  ;;  %852 = vrot.lane.b32.xlu1 %v775_v13, %s3274_s9  ;;  %v849_v12 = vpop.permute.xlu0 %848 }
  0xad   : > { %v447_v17 = vadd.f32 %v3456_v36, %v446_v14  ;;  %v558_v45 = vmax.f32 %v519_v43, 0.0  ;;  %944 = vst.msk [vmem:[#allocation3 + $0x8] sm:$0xff] %vm942_vm7, %v849_v12 }
  0xae   : > { %v3524_v18 = vld [vmem:[#allocation2 + $0x158] sm:$0xff]  ;;  %v3549_v31 = vld [vmem:[#allocation2 + $0x160] sm:$0x3] }
  0xaf   : > { %v534_v19 = vmax.f32 %v447_v17, 0.0  ;;  %3155 = vmatmul.msk.f32.gmra.mxu0 %vm316_vm1, %v299_v15  ;;  %714 = vst.msk [vmem:[#allocation3 + $0xe8] sm:$0xff] %vm562_vm2, %v3524_v18  ;;  %v1047_v28 = vrot.slane %v3524_v18, 2  ;;  %v837_v34 = vrot.slane %v3524_v18, 1  ;;  %v839_v35 = vrot.slane %v3549_v31, 1 }
  0xb0   : > { %v644_v21 = vld [vmem:[#allocation2 + $0x38] sm:$0xff]  ;;  %633 = vst.msk [vmem:[#allocation2 + $0x169] sm:$0xff] %vm562_vm2, %v558_v45  ;;  %v645_v56 = vld [vmem:[#allocation2 + $0x40] sm:$0x3]  ;;  %v1049_v17 = vrot.slane %v3549_v31, 2 }
  0xb1   : > { %609 = vst.msk [vmem:[#allocation2 + $0x49] sm:$0xff] %vm562_vm2, %v534_v19  ;;  %1492 = vrot.lane.b32.xlu2 %v1414_v20, %s3277_s14  ;;  %v1048_v30 = vsel %vm975_vm5, %v1046_v27, %v1047_v28  ;;  %v3559_v41 = vrot.slane %v644_v21, 2  ;;  %v840_v42 = vsel %vm765_vm4, %v837_v34, %v839_v35  ;;  %v1416_v48 = vrot.slane %v644_v21, 1  ;;  %v1831_v62 = vld [vmem:[#allocation2 + $0x40] sm:$0x3] }
  0xb2   : > { %690 = vst.msk [vmem:[#allocation3 + $0x28] sm:$0xff] %vm562_vm2, %v644_v21  ;;  %v521_v52 = vpop.f32.mrf.mxu3  ;;  %v779_v61 = vrot.slane %v645_v56, 1  ;;  %v2266_v2 = vrot.slane %v1831_v62, 2  ;;  %v838_v7 = vsel %vm765_vm4, %v836_v3, %v837_v34  ;;  %v2057_v9 = vrot.slane %v1831_v62, 1 }
  0xb3   : > { %v3567_v44 = vsel %vm975_vm5, %v1624_v39, %v3559_v41  ;;  %v522_v54 = vadd.f32 %v3456_v36, %v521_v52  ;;  %v3583_v55 = vsel %vm765_vm4, %v1415_v46, %v1416_v48 }
  0xb4   : > { %v449_v24 = vpop.f32.mrf.mxu0  ;;  %1269 = vrot.lane.b32.xlu0 %v3514_v11, %s3276_s13  ;;  %1060 = vrot.lane.b32.xlu1 %v983_v23, %s3275_s10  ;;  %v780_v4 = vsel %vm765_vm4, %v1416_v48, %v779_v61  ;;  %v2267_v6 = vsel %vm975_vm5, %v3559_v41, %v2266_v2  ;;  %v2058_v19 = vsel %vm765_vm4, %v1416_v48, %v2057_v9 }
  0xb5   : > { %v450_v26 = vadd.f32 %v3456_v36, %v449_v24  ;;  %v559_v57 = vmax.f32 %v522_v54, 0.0 }
  0xb7   : > { %v535_v29 = vmax.f32 %v450_v26, 0.0  ;;  %3156 = vmatmul.msk.f32.gmra.mxu0 %vm316_vm1, %v300_v25  ;;  %634 = vst.msk [vmem:[#allocation2 + $0x171] sm:$0xff] %vm562_vm2, %v559_v57  ;;  %v3604_v5 = vld [vmem:[#allocation2 + $0x168] sm:$0xff]  ;;  %v989_v26 = vrot.slane %v645_v56, 2 }
  0xb8   : > { %v3576_v51 = vld [vmem:[#allocation2 + $0x48] sm:$0xff]  ;;  %715 = vst.msk [vmem:[#allocation3 + $0xf0] sm:$0xff] %vm562_vm2, %v3604_v5  ;;  %v1051_v38 = vrot.slane %v3604_v5, 2 }
  0xb9   : > { %610 = vst.msk [vmem:[#allocation2 + $0x51] sm:$0xff] %vm562_vm2, %v535_v29  ;;  %1909 = vrot.lane.b32.xlu2 %v3514_v11, %s3279_s16  ;;  %v1190_v11 = vld [vmem:[#allocation2 + $0x40] sm:$0x3]  ;;  %v990_v18 = vsel %vm975_vm5, %v3559_v41, %v989_v26 }
  0xba   : > { %691 = vst.msk [vmem:[#allocation3 + $0x30] sm:$0xff] %vm562_vm2, %v3576_v51  ;;  %v1418_v16 = vrot.slane %v1190_v11, 1  ;;  %v1627_v45 = vrot.slane %v1190_v11, 2 }
  0xbc   : > { %v452_v32 = vpop.f32.mrf.mxu0  ;;  %1112 = vrot.lane.b32.xlu0 %v1048_v30, %s3275_s10  ;;  %1699 = vrot.lane.b32.xlu1 %v983_v23, %s3278_s15  ;;  %v1419_v20 = vsel %vm765_vm4, %v1416_v48, %v1418_v16  ;;  %v1059_v23 = vpop.permute.xlu0 %1058 }
  0xbd   : > { %v453_v37 = vadd.f32 %v3456_v36, %v452_v32  ;;  %1154 = vst.msk [vmem:[#allocation3 + $0x8] sm:$0xff] %vm1152_vm8, %v1059_v23  ;;  %v841_v32 = vrot.slane %v3604_v5, 1 }
  0xbe   : > { %v3616_v14 = vld [vmem:[#allocation2 + $0x170] sm:$0xff] }
  0xbf   : > { %v536_v40 = vmax.f32 %v453_v37, 0.0  ;;  %3157 = vmatmul.msk.f32.gmra.mxu0 %vm316_vm1, %v301_v33  ;;  %716 = vst.msk [vmem:[#allocation3 + $0xf8] sm:$0xff] %vm562_vm2, %v3616_v14  ;;  %v842_v33 = vrot.slane %v3616_v14, 1  ;;  %v1052_v39 = vrot.slane %v3616_v14, 2 }
  0xc0   : > { %v3595_v0 = vld [vmem:[#allocation2 + $0x50] sm:$0xff]  ;;  %v1834_v9 = vld [vmem:[#allocation2 + $0x58] sm:$0x3] }
  0xc1   : > { %611 = vst.msk [vmem:[#allocation2 + $0x61] sm:$0xff] %vm562_vm2, %v536_v40  ;;  %904 = vrot.lane.b32.xlu2 %v840_v42, %s3274_s9  ;;  %v843_v35 = vsel %vm765_vm4, %v841_v32, %v842_v33  ;;  %v684_v40 = vld [vmem:[#allocation2 + $0x178] sm:$0x3]  ;;  %v1053_v46 = vsel %vm975_vm5, %v1051_v38, %v1052_v39  ;;  %v3669_v52 = vrot.slane %v3595_v0, 2  ;;  %v3677_v56 = vrot.slane %v3595_v0, 1 }
  0xc2   : > { %692 = vst.msk [vmem:[#allocation3 + $0x38] sm:$0xff] %vm562_vm2, %v3595_v0  ;;  %v844_v57 = vrot.slane %v684_v40, 1  ;;  %v1193_v14 = vld [vmem:[#allocation2 + $0x58] sm:$0x3] }
  0xc3   : > { %v1423_v32 = vrot.slane %v1193_v14, 1 }
  0xc4   : > { %v455_v47 = vpop.f32.mrf.mxu0  ;;  %1064 = vrot.lane.b32.xlu0 %v3567_v44, %s3275_s10  ;;  %1271 = vrot.lane.b32.xlu1 %v644_v21, %s3276_s13 }
  0xc5   : > { %v456_v50 = vadd.f32 %v3456_v36, %v455_v47 }
  0xc7   : > { %v537_v53 = vmax.f32 %v456_v50, 0.0  ;;  %3158 = vmatmul.msk.f32.gmra.mxu0 %vm316_vm1, %v302_v49  ;;  %v1628_v49 = vsel %vm975_vm5, %v3559_v41, %v1627_v45  ;;  %v2268_v50 = vrot.slane %v3576_v51, 2 }
  0xc9   : > { %612 = vst.msk [vmem:[#allocation2 + $0x69] sm:$0xff] %vm562_vm2, %v537_v53  ;;  %854 = vrot.lane.b32.xlu2 %v3583_v55, %s3274_s9  ;;  %v993_v58 = vsel %vm975_vm5, %v2268_v50, %v3669_v52 }
  0xcc   : > { %v458_v59 = vpop.f32.mrf.mxu0  ;;  %2134 = vrot.lane.b32.xlu0 %v3583_v55, %s3280_s17  ;;  %1911 = vrot.lane.b32.xlu1 %v644_v21, %s3279_s16  ;;  %v1050_v21 = vsel %vm975_vm5, %v1047_v28, %v1049_v17 }
  0xcd   : > { %v459_v63 = vadd.f32 %v3456_v36, %v458_v59 }
  0xcf   : > { %v538_v1 = vmax.f32 %v459_v63, 0.0  ;;  %3159 = vmatmul.msk.f32.gmra.mxu0 %vm316_vm1, %v303_v60  ;;  %v648_v63 = vld [vmem:[#allocation2 + $0x58] sm:$0x3] }
  0xd0   : > { %v3683_v59 = vld [vmem:[#allocation2 + $0x68] sm:$0xff]  ;;  %v994_v2 = vrot.slane %v648_v63, 2  ;;  %v784_v3 = vrot.slane %v648_v63, 1 }
  0xd1   : > { %613 = vst.msk [vmem:[#allocation2 + $0x79] sm:$0xff] %vm562_vm2, %v538_v1  ;;  %856 = vrot.lane.b32.xlu2 %v780_v4, %s3274_s9  ;;  %v3695_v4 = vld [vmem:[#allocation2 + $0x60] sm:$0xff] }
  0xd2   : > { %694 = vst.msk [vmem:[#allocation3 + $0x48] sm:$0xff] %vm562_vm2, %v3683_v59  ;;  %v785_v8 = vsel %vm765_vm4, %v3677_v56, %v784_v3 }
  0xd3   : > { %693 = vst.msk [vmem:[#allocation3 + $0x40] sm:$0xff] %vm562_vm2, %v3695_v4 }
  0xd4   : > { %v461_v10 = vpop.f32.mrf.mxu0  ;;  %2345 = vrot.lane.b32.xlu0 %v2267_v6, %s3281_s18  ;;  %902 = vrot.lane.b32.xlu1 %v838_v7, %s3274_s9  ;;  %v995_v7 = vsel %vm975_vm5, %v3669_v52, %v994_v2 }
  0xd5   : > { %v462_v13 = vadd.f32 %v3456_v36, %v461_v10 }
  0xd7   : > { %v539_v15 = vmax.f32 %v462_v13, 0.0  ;;  %v2062_v13 = vrot.slane %v1834_v9, 1 }
  0xd9   : > { %614 = vst.msk [vmem:[#allocation2 + $0x81] sm:$0xff] %vm562_vm2, %v539_v15  ;;  %2136 = vrot.lane.b32.xlu2 %v2058_v19, %s3280_s17  ;;  %v2063_v16 = vsel %vm765_vm4, %v3677_v56, %v2062_v13  ;;  %v1632_v19 = vrot.slane %v1193_v14, 2  ;;  %v1196_v13 = vld [vmem:[#allocation2 + $0x70] sm:$0x3] }
  0xdc   : > { %v464_v22 = vpop.f32.mrf.mxu0  ;;  %1496 = vrot.lane.b32.xlu0 %v1419_v20, %s3277_s14  ;;  %1114 = vrot.lane.b32.xlu1 %v1050_v21, %s3275_s10 }
  0xdd   : > { %v465_v24 = vadd.f32 %v3456_v36, %v464_v22 }
  0xdf   : > { %v540_v25 = vmax.f32 %v465_v24, 0.0  ;;  %v2271_v24 = vrot.slane %v1834_v9, 2  ;;  %v1837_v9 = vld [vmem:[#allocation2 + $0x70] sm:$0x3] }
  0xe1   : > { %615 = vst.msk [vmem:[#allocation2 + $0x91] sm:$0xff] %vm562_vm2, %v540_v25  ;;  %1703 = vrot.lane.b32.xlu2 %v3567_v44, %s3278_s15  ;;  %v1633_v25 = vsel %vm975_vm5, %v3669_v52, %v1632_v19  ;;  %v1637_v19 = vrot.slane %v1196_v13, 2 }
  0xe4   : > { %v467_v27 = vpop.f32.mrf.mxu0  ;;  %1913 = vrot.lane.b32.xlu0 %v3576_v51, %s3279_s16  ;;  %1066 = vrot.lane.b32.xlu1 %v990_v18, %s3275_s10  ;;  %v2272_v18 = vsel %vm975_vm5, %v3669_v52, %v2271_v24 }
  0xe5   : > { %v468_v28 = vadd.f32 %v3456_v36, %v467_v27 }
  0xe7   : > { %v541_v29 = vmax.f32 %v468_v28, 0.0 }
  0xe9   : > { %616 = vst.msk [vmem:[#allocation2 + $0x99] sm:$0xff] %vm562_vm2, %v541_v29  ;;  %1273 = vrot.lane.b32.xlu2 %v3576_v51, %s3276_s13 }
  0xec   : > { %v470_v30 = vpop.f32.mrf.mxu0  ;;  %1275 = vrot.lane.b32.xlu0 %v3595_v0, %s3276_s13  ;;  %2343 = vrot.lane.b32.xlu1 %v3567_v44, %s3281_s18  ;;  %v1054_v44 = vrot.slane %v684_v40, 2 }
  0xed   : > { %v471_v31 = vadd.f32 %v3456_v36, %v470_v30 }
  0xee   : > { %v1055_v48 = vsel %vm975_vm5, %v1052_v39, %v1054_v44  ;;  %v651_v39 = vld [vmem:[#allocation2 + $0x70] sm:$0x3] }
  0xef   : > { %v542_v34 = vmax.f32 %v471_v31, 0.0  ;;  %v999_v52 = vrot.slane %v651_v39, 2 }
  0xf1   : > { %617 = vst.msk [vmem:[#allocation2 + $0xa9] sm:$0xff] %vm562_vm2, %v542_v34  ;;  %1915 = vrot.lane.b32.xlu2 %v3595_v0, %s3279_s16  ;;  %v786_v34 = vrot.slane %v3695_v4, 1 }
  0xf4   : > { %v473_v37 = vpop.f32.mrf.mxu0  ;;  %906 = vrot.lane.b32.xlu0 %v843_v35, %s3274_s9  ;;  %1494 = vrot.lane.b32.xlu1 %v3583_v55, %s3277_s14  ;;  %v2059_v55 = vrot.slane %v3576_v51, 1  ;;  %v845_v51 = vsel %vm765_vm4, %v842_v33, %v844_v57  ;;  %v3739_v33 = vrot.slane %v3683_v59, 1 }
  0xf5   : > { %v474_v42 = vadd.f32 %v3456_v36, %v473_v37  ;;  %v1424_v37 = vsel %vm765_vm4, %v3677_v56, %v1423_v32 }
  0xf6   : > { %v783_v61 = vsel %vm765_vm4, %v2059_v55, %v3677_v56  ;;  %v788_v44 = vsel %vm765_vm4, %v786_v34, %v3739_v33  ;;  %v3767_v55 = vld [vmem:[#allocation2 + $0x80] sm:$0xff] }
  0xf7   : > { %v543_v43 = vmax.f32 %v474_v42, 0.0  ;;  %696 = vst.msk [vmem:[#allocation3 + $0x58] sm:$0xff] %vm562_vm2, %v3767_v55 }
  0xf9   : > { %618 = vst.msk [vmem:[#allocation2 + $0xb1] sm:$0xff] %vm562_vm2, %v543_v43  ;;  %1116 = vrot.lane.b32.xlu2 %v1053_v46, %s3275_s10  ;;  %v789_v46 = vrot.slane %v651_v39, 1 }
  0xfb   : > { %v1268_v47 = vpop.permute.xlu2 %1267 }
  0xfc   : > { %1363 = vst.msk [vmem:[#allocation3 + $0x8] sm:$0xff] %vm1361_vm9, %v1268_v47  ;;  %v476_v53 = vpop.f32.mrf.mxu0  ;;  %1118 = vrot.lane.b32.xlu0 %v1055_v48, %s3275_s10  ;;  %1705 = vrot.lane.b32.xlu1 %v1628_v49, %s3278_s15  ;;  %v790_v48 = vsel %vm765_vm4, %v3739_v33, %v789_v46  ;;  %v3758_v49 = vrot.slane %v3683_v59, 2 }
  0xfd   : > { %v477_v54 = vadd.f32 %v3456_v36, %v476_v53 }
  0xfe   : > { %v1638_v24 = vsel %vm975_vm5, %v3758_v49, %v1637_v19  ;;  %v657_v19 = vld [vmem:[#allocation2 + $0xa0] sm:$0x3] }
  0xff   : > { %v544_v41 = vmax.f32 %v477_v54, 0.0  ;;  %v3765_v54 = vld [vmem:[#allocation2 + $0x78] sm:$0xff] }
 0x100   : > { %v1430_v57 = vrot.slane %v3765_v54, 1  ;;  %695 = vst.msk [vmem:[#allocation3 + $0x50] sm:$0xff] %vm562_vm2, %v3765_v54 }
 0x101   : > { %619 = vst.msk [vmem:[#allocation2 + $0xc1] sm:$0xff] %vm562_vm2, %v544_v41  ;;  %1068 = vrot.lane.b32.xlu2 %v993_v58, %s3275_s10 }
 0x103   : > { %v3685_v60 = vpop.permute.xlu2 %1062 }
 0x104   : > { %v479_v62 = vpop.f32.mrf.mxu0  ;;  %858 = vrot.lane.b32.xlu0 %v783_v61, %s3274_s9  ;;  %908 = vrot.lane.b32.xlu1 %v845_v51, %s3274_s9  ;;  %v3782_v51 = vld [vmem:[#allocation2 + $0x88] sm:$0x3] }
 0x105   : > { %v480_v0 = vadd.f32 %v3456_v36, %v479_v62  ;;  %v1000_v62 = vsel %vm975_vm5, %v3758_v49, %v999_v52  ;;  %v2281_v63 = vrot.slane %v3782_v51, 2  ;;  %v654_v52 = vld [vmem:[#allocation2 + $0x88] sm:$0x3] }
 0x107   : > { %v545_v1 = vmax.f32 %v480_v0, 0.0 }
 0x109   : > { %620 = vst.msk [vmem:[#allocation2 + $0xc9] sm:$0xff] %vm562_vm2, %v545_v1  ;;  %2347 = vrot.lane.b32.xlu2 %v993_v58, %s3281_s18 }
 0x10b   : > { %v1266_v5 = vpop.permute.xlu1 %1265  ;;  %v1493_v6 = vpop.permute.xlu2 %1492 }
 0x10c   : > { %1362 = vst.msk [vmem:[#allocation3] sm:$0xff] %vm1361_vm9, %v1266_v5  ;;  %v482_v10 = vpop.f32.mrf.mxu0  ;;  %1070 = vrot.lane.b32.xlu0 %v995_v7, %s3275_s10  ;;  %860 = vrot.lane.b32.xlu1 %v785_v8, %s3274_s9 }
 0x10d   : > { %1588 = vst.msk [vmem:[#allocation3 + $0x8] sm:$0xff] %vm1586_vm10, %v1493_v6  ;;  %v483_v11 = vadd.f32 %v3456_v36, %v482_v10 }
 0x10f   : > { %v546_v12 = vmax.f32 %v483_v11, 0.0 }
 0x111   : > { %621 = vst.msk [vmem:[#allocation2 + $0xd9] sm:$0xff] %vm562_vm2, %v546_v12  ;;  %1498 = vrot.lane.b32.xlu2 %v783_v61, %s3277_s14 }
 0x113   : > { %v3712_v15 = vpop.permute.xlu2 %1909 }
 0x114   : > { %v485_v17 = vpop.f32.mrf.mxu0  ;;  %2140 = vrot.lane.b32.xlu0 %v2063_v16, %s3280_s17  ;;  %2138 = vrot.lane.b32.xlu1 %v783_v61, %s3280_s17  ;;  %v3780_v61 = vrot.slane %v3767_v55, 2 }
 0x115   : > { %v486_v20 = vadd.f32 %v3456_v36, %v485_v17 }
 0x116   : > { %v1491_v21 = vpop.permute.xlu0 %1490  ;;  %v851_v22 = vpop.permute.xlu1 %850  ;;  %v3803_v3 = vsel %vm975_vm5, %v3780_v61, %v2281_v63 }
 0x117   : > { %v547_v23 = vmax.f32 %v486_v20, 0.0  ;;  %1587 = vst.msk [vmem:[#allocation3] sm:$0xff] %vm1586_vm10, %v1491_v21  ;;  %v2067_v20 = vrot.slane %v1837_v9, 1 }
 0x118   : > { %945 = vst.msk [vmem:[#allocation3 + $0x10] sm:$0xff] %vm942_vm7, %v851_v22  ;;  %v2506_v22 = vld [vmem:[%s5120_s3 + $0x10] sm:$0x3] }
 0x119   : > { %622 = vst.msk [vmem:[#allocation2 + $0xe1] sm:$0xff] %vm562_vm2, %v547_v23  ;;  %1709 = vrot.lane.b32.xlu2 %v1633_v25, %s3278_s15  ;;  %3167 = vmatpush.msk.msra.mxu1 %vm2608_vm14, %v2506_v22  ;;  %v2068_v25 = vsel %vm765_vm4, %v3739_v33, %v2067_v20 }
 0x11a   : > { %3238 = vmatpush.msk.msrb.mxu3 %vm2608_vm14, %v2506_v22  ;;  %v1009_v22 = vrot.slane %v657_v19, 2 }
 0x11b   : > { %v905_v26 = vpop.permute.xlu2 %904 }
 0x11c   : > { %972 = vst.msk [vmem:[#allocation3 + $0xe8] sm:$0xff] %vm942_vm7, %v905_v26  ;;  %v488_v27 = vpop.f32.mrf.mxu0  ;;  %1707 = vrot.lane.b32.xlu0 %v993_v58, %s3278_s15  ;;  %2349 = vrot.lane.b32.xlu1 %v2272_v18, %s3281_s18  ;;  %v3775_v58 = vrot.slane %v3767_v55, 1  ;;  %v2505_v26 = vld [vmem:[%s5120_s3 + $0x8] sm:$0xff] }
 0x11d   : > { %v489_v28 = vadd.f32 %v3456_v36, %v488_v27  ;;  %v1428_v27 = vrot.slane %v1196_v13, 1  ;;  %2626 = vmatpush.msra.mxu1 %v2505_v26  ;;  %3239 = vmatpush.msrb.mxu3 %v2505_v26  ;;  %v660_v26 = vld [vmem:[#allocation2 + $0xb8] sm:$0x3] }
 0x11e   : > { %v1702_v29 = vpop.permute.xlu0 %1701  ;;  %v853_v30 = vpop.permute.xlu1 %852  ;;  %v3793_v0 = vsel %vm765_vm4, %v1430_v57, %v3775_v58 }
 0x11f   : > { %v548_v31 = vmax.f32 %v489_v28, 0.0  ;;  %1797 = vst.msk [vmem:[#allocation3 + $0x8] sm:$0xff] %vm1795_vm11, %v1702_v29  ;;  %v3842_v28 = vld [vmem:[#allocation2 + $0x98] sm:$0xff]  ;;  %v2504_v29 = vld [vmem:[%s5120_s3] sm:$0xff]  ;;  %v1429_v39 = vsel %vm765_vm4, %v3739_v33, %v1428_v27 }
 0x120   : > { %946 = vst.msk [vmem:[#allocation3 + $0x18] sm:$0xff] %vm942_vm7, %v853_v30  ;;  %v3851_v34 = vrot.slane %v3842_v28, 2  ;;  %2627 = vmatpush.msra.mxu1 %v2504_v29  ;;  %3240 = vmatpush.msrb.mxu3 %v2504_v29  ;;  %v799_v29 = vrot.slane %v657_v19, 1 }
 0x121   : > { %623 = vst.msk [vmem:[#allocation2 + $0xf1] sm:$0xff] %vm562_vm2, %v548_v31  ;;  %1279 = vrot.lane.b32.xlu2 %v3683_v59, %s3276_s13 }
 0x122   : > { %1156 = vst.msk [vmem:[#allocation3 + $0x18] sm:$0xff] %vm1152_vm8, %v3685_v60  ;;  %v1634_v60 = vrot.slane %v3695_v4, 2 }
 0x123   : > { %v855_v35 = vpop.permute.xlu2 %854  ;;  %698 = vst.msk [vmem:[#allocation3 + $0x68] sm:$0xff] %vm562_vm2, %v3842_v28 }
 0x124   : > { %947 = vst.msk [vmem:[#allocation3 + $0x20] sm:$0xff] %vm942_vm7, %v855_v35  ;;  %v491_v38 = vpop.f32.mrf.mxu0  ;;  %1919 = vrot.lane.b32.xlu0 %v3683_v59, %s3279_s16  ;;  %1500 = vrot.lane.b32.xlu1 %v1424_v37, %s3277_s14  ;;  %v3799_v2 = vsel %vm975_vm5, %v1634_v60, %v3758_v49  ;;  %v3855_v37 = vrot.slane %v3842_v28, 1 }
 0x125   : > { %v492_v40 = vadd.f32 %v3456_v36, %v491_v38  ;;  %v3857_v38 = vld [vmem:[#allocation2 + $0x90] sm:$0xff] }
 0x126   : > { %v1270_v42 = vpop.permute.xlu0 %1269  ;;  %v1061_v43 = vpop.permute.xlu1 %1060  ;;  %697 = vst.msk [vmem:[#allocation3 + $0x60] sm:$0xff] %vm562_vm2, %v3857_v38 }
 0x127   : > { %v549_v45 = vmax.f32 %v492_v40, 0.0  ;;  %1155 = vst.msk [vmem:[#allocation3 + $0x10] sm:$0xff] %vm1152_vm8, %v1061_v43  ;;  %v1435_v40 = vrot.slane %v3857_v38, 1 }
 0x128   : > { %1364 = vst.msk [vmem:[#allocation3 + $0x10] sm:$0xff] %vm1361_vm9, %v1270_v42  ;;  %v1644_v42 = vrot.slane %v3857_v38, 2 }
 0x129   : > { %624 = vst.msk [vmem:[#allocation2 + $0xf9] sm:$0xff] %vm562_vm2, %v549_v45  ;;  %862 = vrot.lane.b32.xlu2 %v788_v44, %s3274_s9  ;;  %v3878_v33 = vsel %vm765_vm4, %v1435_v40, %v3855_v37 }
 0x12a   : > { %v3870_v43 = vsel %vm975_vm5, %v1644_v42, %v3851_v34 }
 0x12b   : > { %v857_v47 = vpop.permute.xlu2 %856 }
 0x12c   : > { %948 = vst.msk [vmem:[#allocation3 + $0x28] sm:$0xff] %vm942_vm7, %v857_v47  ;;  %v494_v50 = vpop.f32.mrf.mxu0  ;;  %864 = vrot.lane.b32.xlu0 %v790_v48, %s3274_s9  ;;  %1277 = vrot.lane.b32.xlu1 %v3695_v4, %s3276_s13 }
 0x12d   : > { %v495_v53 = vadd.f32 %v3456_v36, %v494_v50  ;;  %v1639_v50 = vrot.slane %v3765_v54, 2 }
 0x12e   : > { %v3769_v56 = vpop.permute.xlu0 %1112  ;;  %v1700_v41 = vpop.permute.xlu1 %1699 }
 0x12f   : > { %v550_v59 = vmax.f32 %v495_v53, 0.0  ;;  %1796 = vst.msk [vmem:[#allocation3] sm:$0xff] %vm1795_vm11, %v1700_v41 }
 0x130   : > { %2006 = vst.msk [vmem:[#allocation3] sm:$0xff] %vm2005_vm12, %v3712_v15 }
 0x131   : > { %625 = vst.msk [vmem:[#allocation2 + $0x109] sm:$0xff] %vm562_vm2, %v550_v59  ;;  %1074 = vrot.lane.b32.xlu2 %v1000_v62, %s3275_s10  ;;  %v3900_v59 = vld [vmem:[#allocation2 + $0xb0] sm:$0xff] }
 0x132   : > { %v3907_v62 = vrot.slane %v3900_v59, 2  ;;  %700 = vst.msk [vmem:[#allocation3 + $0x78] sm:$0xff] %vm562_vm2, %v3900_v59 }
 0x133   : > { %v2137_v1 = vpop.permute.xlu2 %2136 }
 0x134   : > { %v497_v5 = vpop.f32.mrf.mxu0  ;;  %2351 = vrot.lane.b32.xlu0 %v3799_v2, %s3281_s18  ;;  %1917 = vrot.lane.b32.xlu1 %v3695_v4, %s3279_s16  ;;  %v2276_v4 = vrot.slane %v1837_v9, 2 }
 0x135   : > { %v498_v6 = vadd.f32 %v3456_v36, %v497_v5 }
 0x136   : > { %v1065_v7 = vpop.permute.xlu0 %1064  ;;  %v1272_v8 = vpop.permute.xlu1 %1271  ;;  %v2277_v21 = vsel %vm975_vm5, %v3758_v49, %v2276_v4 }
 0x137   : > { %v551_v10 = vmax.f32 %v498_v6, 0.0  ;;  %1157 = vst.msk [vmem:[#allocation3 + $0x20] sm:$0xff] %vm1152_vm8, %v1065_v7  ;;  %v2072_v6 = vrot.slane %v3782_v51, 1 }
 0x138   : > { %1365 = vst.msk [vmem:[#allocation3 + $0x18] sm:$0xff] %vm1361_vm9, %v1272_v8 }
 0x139   : > { %626 = vst.msk [vmem:[#allocation2 + $0x111] sm:$0xff] %vm562_vm2, %v551_v10  ;;  %2142 = vrot.lane.b32.xlu2 %v788_v44, %s3280_s17  ;;  %v2073_v9 = vsel %vm765_vm4, %v3775_v58, %v2072_v6 }
 0x13b   : > { %v3814_v11 = vpop.permute.xlu2 %1703 }
 0x13c   : > { %v500_v12 = vpop.f32.mrf.mxu0  ;;  %1502 = vrot.lane.b32.xlu0 %v788_v44, %s3277_s14  ;;  %1072 = vrot.lane.b32.xlu1 %v3799_v2, %s3275_s10 }
 0x13d   : > { %v501_v14 = vadd.f32 %v3456_v36, %v500_v12 }
 0x13e   : > { %v2135_v15 = vpop.permute.xlu0 %2134  ;;  %v1912_v16 = vpop.permute.xlu1 %1911 }
 0x13f   : > { %v552_v17 = vmax.f32 %v501_v14, 0.0  ;;  %2231 = vst.msk [vmem:[#allocation3] sm:$0xff] %vm2230_vm13, %v2135_v15  ;;  %v1004_v14 = vrot.slane %v654_v52, 2  ;;  %v3955_v15 = vld [vmem:[#allocation2 + $0xc8] sm:$0xff] }
 0x140   : > { %2007 = vst.msk [vmem:[#allocation3 + $0x8] sm:$0xff] %vm2005_vm12, %v1912_v16 }
 0x141   : > { %627 = vst.msk [vmem:[#allocation2 + $0x121] sm:$0xff] %vm562_vm2, %v552_v17  ;;  %2353 = vrot.lane.b32.xlu2 %v2277_v21, %s3281_s18  ;;  %v1005_v17 = vsel %vm975_vm5, %v3780_v61, %v1004_v14  ;;  %v4062_v14 = vld [vmem:[#allocation2 + $0xf0] sm:$0xff] }
 0x142   : > { %2232 = vst.msk [vmem:[#allocation3 + $0x8] sm:$0xff] %vm2230_vm13, %v2137_v1 }
 0x143   : > { %v1274_v23 = vpop.permute.xlu2 %1273  ;;  %702 = vst.msk [vmem:[#allocation3 + $0x88] sm:$0xff] %vm562_vm2, %v3955_v15 }
 0x144   : > { %1366 = vst.msk [vmem:[#allocation3 + $0x20] sm:$0xff] %vm1361_vm9, %v1274_v23  ;;  %v503_v18 = vpop.f32.mrf.mxu0  ;;  %1713 = vrot.lane.b32.xlu0 %v1638_v24, %s3278_s15  ;;  %2144 = vrot.lane.b32.xlu1 %v2068_v25, %s3280_s17  ;;  %v1010_v24 = vsel %vm975_vm5, %v3851_v34, %v1009_v22  ;;  %v3976_v25 = vld [vmem:[#allocation2 + $0xe0] sm:$0xff] }
 0x145   : > { %v504_v30 = vadd.f32 %v3456_v36, %v503_v18  ;;  %704 = vst.msk [vmem:[#allocation3 + $0x98] sm:$0xff] %vm562_vm2, %v3976_v25 }
 0x146   : > { %v2346_v31 = vpop.permute.xlu0 %2345  ;;  %v903_v32 = vpop.permute.xlu1 %902  ;;  %705 = vst.msk [vmem:[#allocation3 + $0xa0] sm:$0xff] %vm562_vm2, %v4062_v14 }
 0x147   : > { %v553_v35 = vmax.f32 %v504_v30, 0.0  ;;  %2441 = vst.msk [vmem:[#allocation3 + $0x8] sm:$0xff] %vm2439_vm15, %v2346_v31  ;;  %v3985_v30 = vrot.slane %v3900_v59, 1  ;;  %v804_v31 = vrot.slane %v660_v26, 1 }
 0x148   : > { %971 = vst.msk [vmem:[#allocation3 + $0xe0] sm:$0xff] %vm942_vm7, %v903_v32  ;;  %v3988_v32 = vrot.slane %v3976_v25, 1 }
 0x149   : > { %628 = vst.msk [vmem:[#allocation2 + $0x129] sm:$0xff] %vm562_vm2, %v553_v35  ;;  %1504 = vrot.lane.b32.xlu2 %v1429_v39, %s3277_s14  ;;  %v3991_v35 = vrot.slane %v3976_v25, 2  ;;  %v3993_v39 = vld [vmem:[#allocation2 + $0xd8] sm:$0xff] }
 0x14a   : > { %1181 = vst.msk [vmem:[#allocation3 + $0xe0] sm:$0xff] %vm1152_vm8, %v3769_v56  ;;  %v3893_v56 = vsel %vm975_vm5, %v1639_v50, %v3780_v61  ;;  %v1450_v40 = vrot.slane %v3993_v39, 1  ;;  %v1659_v42 = vrot.slane %v3993_v39, 2 }
 0x14b   : > { %v3872_v44 = vpop.permute.xlu2 %1915  ;;  %703 = vst.msk [vmem:[#allocation3 + $0x90] sm:$0xff] %vm562_vm2, %v3993_v39 }
 0x14c   : > { %v506_v45 = vpop.f32.mrf.mxu0  ;;  %1281 = vrot.lane.b32.xlu0 %v3765_v54, %s3276_s13  ;;  %1711 = vrot.lane.b32.xlu1 %v3799_v2, %s3278_s15 }
 0x14d   : > { %v507_v46 = vadd.f32 %v3456_v36, %v506_v45  ;;  %v794_v36 = vrot.slane %v654_v52, 1 }
 0x14e   : > { %v1497_v47 = vpop.permute.xlu0 %1496  ;;  %v1115_v48 = vpop.permute.xlu1 %1114  ;;  %v2473_v21 = vld [vmem:[#allocation3 + $0x8] sm:$0xff] }
 0x14f   : > { %v554_v49 = vmax.f32 %v507_v46, 0.0  ;;  %1590 = vst.msk [vmem:[#allocation3 + $0x18] sm:$0xff] %vm1586_vm10, %v1497_v47  ;;  %v795_v60 = vsel %vm765_vm4, %v3775_v58, %v794_v36  ;;  %v805_v46 = vsel %vm765_vm4, %v3985_v30, %v804_v31  ;;  %v4010_v47 = vsel %vm975_vm5, %v1659_v42, %v3991_v35 }
 0x150   : > { %1182 = vst.msk [vmem:[#allocation3 + $0xe8] sm:$0xff] %vm1152_vm8, %v1115_v48  ;;  %v4014_v48 = vsel %vm765_vm4, %v1450_v40, %v3988_v32  ;;  %v4095_v40 = vld [vmem:[#allocation2 + $0x108] sm:$0xff] }
 0x151   : > { %629 = vst.msk [vmem:[#allocation2 + $0x139] sm:$0xff] %vm562_vm2, %v554_v49  ;;  %1921 = vrot.lane.b32.xlu2 %v3765_v54, %s3279_s16  ;;  %v3902_v54 = vld [vmem:[#allocation2 + $0xa8] sm:$0xff]  ;;  %v1669_v42 = vrot.slane %v4095_v40, 2 }
 0x152   : > { %699 = vst.msk [vmem:[#allocation3 + $0x70] sm:$0xff] %vm562_vm2, %v3902_v54  ;;  %v1649_v1 = vrot.slane %v3902_v54, 2  ;;  %v801_v49 = vrot.slane %v3902_v54, 1 }
 0x153   : > { %v1117_v53 = vpop.permute.xlu2 %1116  ;;  %707 = vst.msk [vmem:[#allocation3 + $0xb0] sm:$0xff] %vm562_vm2, %v4095_v40 }
 0x154   : > { %1076 = vrot.lane.b32.xlu0 %v3893_v56, %s3275_s10  ;;  %1283 = vrot.lane.b32.xlu1 %v3767_v55, %s3276_s13  ;;  %v3930_v7 = vsel %vm975_vm5, %v1649_v1, %v3907_v62 }
 0x156   : > { %v1914_v41 = vpop.permute.xlu0 %1913  ;;  %v1067_v57 = vpop.permute.xlu1 %1066 }
 0x157   : > { %1158 = vst.msk [vmem:[#allocation3 + $0x28] sm:$0xff] %vm1152_vm8, %v1067_v57 }
 0x158   : > { %v3911_v63 = vld [vmem:[#allocation2 + $0x140] sm:$0xff]  ;;  %v3919_v2 = vld [vmem:[#allocation2 + $0x138] sm:$0xff] }
 0x159   : > { %868 = vrot.lane.b32.xlu2 %v795_v60, %s3274_s9  ;;  %712 = vst.msk [vmem:[#allocation3 + $0xd8] sm:$0xff] %vm562_vm2, %v3911_v63 }
 0x15a   : > { %711 = vst.msk [vmem:[#allocation3 + $0xd0] sm:$0xff] %vm562_vm2, %v3919_v2 }
 0x15b   : > { %v1069_v5 = vpop.permute.xlu2 %1068 }
 0x15c   : > { %2146 = vrot.lane.b32.xlu0 %v3793_v0, %s3280_s17  ;;  %1923 = vrot.lane.b32.xlu1 %v3767_v55, %s3279_s16  ;;  %v3943_v55 = vld [vmem:[#allocation2 + $0xc0] sm:$0xff] }
 0x15d   : > { %701 = vst.msk [vmem:[#allocation3 + $0x80] sm:$0xff] %vm562_vm2, %v3943_v55  ;;  %v1654_v1 = vrot.slane %v3943_v55, 2 }
 0x15e   : > { %v1276_v8 = vpop.permute.xlu0 %1275  ;;  %v2344_v10 = vpop.permute.xlu1 %2343 }
 0x15f   : > { %1367 = vst.msk [vmem:[#allocation3 + $0x28] sm:$0xff] %vm1361_vm9, %v1276_v8  ;;  %v663_v8 = vld [vmem:[#allocation2 + $0xd0] sm:$0x3] }
 0x160   : > { %2440 = vst.msk [vmem:[#allocation3] sm:$0xff] %vm2439_vm15, %v2344_v10  ;;  %v4044_v10 = vld [vmem:[#allocation2 + $0xf8] sm:$0xff] }
 0x161   : > { %2148 = vrot.lane.b32.xlu2 %v2073_v9, %s3280_s17  ;;  %706 = vst.msk [vmem:[#allocation3 + $0xa8] sm:$0xff] %vm562_vm2, %v4044_v10 }
 0x163   : > { %v3937_v12 = vpop.permute.xlu2 %2347 }
 0x164   : > { %1287 = vrot.lane.b32.xlu0 %v3842_v28, %s3276_s13  ;;  %866 = vrot.lane.b32.xlu1 %v3793_v0, %s3274_s9 }
 0x166   : > { %v907_v51 = vpop.permute.xlu0 %906  ;;  %v1495_v4 = vpop.permute.xlu1 %1494 }
 0x167   : > { %973 = vst.msk [vmem:[#allocation3 + $0xf0] sm:$0xff] %vm942_vm7, %v907_v51  ;;  %v2472_v13 = vld [vmem:[#allocation3] sm:$0xff] }
 0x168   : > { %1183 = vst.msk [vmem:[#allocation3 + $0xf0] sm:$0xff] %vm1152_vm8, %v1117_v53  ;;  %3168 = vmatmul.msk.f32.vlgmr.msra.gmra.mxu1 %vm2511_vm0, %v2472_v13  ;;  %v4023_v53 = vsel %vm765_vm4, %v801_v49, %v3985_v30  ;;  %v4060_v13 = vrot.slane %v4044_v10, 2 }
 0x169   : > { %1589 = vst.msk [vmem:[#allocation3 + $0x10] sm:$0xff] %vm1586_vm10, %v1495_v4  ;;  %1285 = vrot.lane.b32.xlu2 %v3857_v38, %s3276_s13  ;;  %v809_v4 = vrot.slane %v663_v8, 1 }
 0x16a   : > { %1798 = vst.msk [vmem:[#allocation3 + $0x10] sm:$0xff] %vm1795_vm11, %v3814_v11 }
 0x16b   : > { %2008 = vst.msk [vmem:[#allocation3 + $0x10] sm:$0xff] %vm2005_vm12, %v1914_v41  ;;  %v1499_v16 = vpop.permute.xlu2 %1498  ;;  %v1014_v41 = vrot.slane %v660_v26, 2 }
 0x16c   : > { %1591 = vst.msk [vmem:[#allocation3 + $0x20] sm:$0xff] %vm1586_vm10, %v1499_v16  ;;  %870 = vrot.lane.b32.xlu0 %v3878_v33, %s3274_s9  ;;  %1078 = vrot.lane.b32.xlu1 %v1005_v17, %s3275_s10  ;;  %v1664_v16 = vrot.slane %v4062_v14, 2 }
 0x16d   : > { %v1015_v6 = vsel %vm975_vm5, %v3907_v62, %v1014_v41  ;;  %v1019_v41 = vrot.slane %v663_v8, 2 }
 0x16e   : > { %v1119_v11 = vpop.permute.xlu0 %1118  ;;  %v1706_v20 = vpop.permute.xlu1 %1705 }
 0x16f   : > { %1799 = vst.msk [vmem:[#allocation3 + $0x18] sm:$0xff] %vm1795_vm11, %v1706_v20 }
 0x170   : > { %2009 = vst.msk [vmem:[#allocation3 + $0x18] sm:$0xff] %vm2005_vm12, %v3872_v44  ;;  %3169 = vmatmul.msk.f32.gmra.mxu1 %vm2511_vm0, %v2473_v21  ;;  %v800_v44 = vsel %vm765_vm4, %v3855_v37, %v799_v29  ;;  %v4073_v21 = vsel %vm975_vm5, %v1664_v16, %v4060_v13 }
 0x171   : > { %1080 = vrot.lane.b32.xlu2 %v3870_v43, %s3275_s10 }
 0x173   : > { %v3972_v23 = vpop.permute.xlu2 %1709 }
 0x174   : > { %1082 = vrot.lane.b32.xlu0 %v1010_v24, %s3275_s10  ;;  %2355 = vrot.lane.b32.xlu1 %v3893_v56, %s3281_s18 }
 0x176   : > { %v859_v18 = vpop.permute.xlu0 %858  ;;  %v909_v27 = vpop.permute.xlu1 %908 }
 0x177   : > { %949 = vst.msk [vmem:[#allocation3 + $0x30] sm:$0xff] %vm942_vm7, %v859_v18  ;;  %v1445_v18 = vrot.slane %v3943_v55, 1 }
 0x178   : > { %1159 = vst.msk [vmem:[#allocation3 + $0x30] sm:$0xff] %vm1152_vm8, %v1069_v5  ;;  %v4036_v5 = vrot.slane %v3955_v15, 2 }
 0x179   : > { %974 = vst.msk [vmem:[#allocation3 + $0xf8] sm:$0xff] %vm942_vm7, %v909_v27  ;;  %1291 = vrot.lane.b32.xlu2 %v3900_v59, %s3276_s13 }
 0x17a   : > { %1184 = vst.msk [vmem:[#allocation3 + $0xf8] sm:$0xff] %vm1152_vm8, %v1119_v11  ;;  %v4050_v51 = vsel %vm975_vm5, %v1654_v1, %v4036_v5  ;;  %v1020_v8 = vsel %vm975_vm5, %v4036_v5, %v1019_v41 }
 0x17b   : > { %v1280_v45 = vpop.permute.xlu2 %1279 }
 0x17c   : > { %876 = vrot.lane.b32.xlu0 %v805_v46, %s3274_s9  ;;  %872 = vrot.lane.b32.xlu1 %v800_v44, %s3274_s9  ;;  %v4102_v44 = vld [vmem:[#allocation2 + $0x110] sm:$0xff] }
 0x17d   : > { %v4108_v46 = vrot.slane %v4102_v44, 1  ;;  %708 = vst.msk [vmem:[#allocation3 + $0xb8] sm:$0xff] %vm562_vm2, %v4102_v44  ;;  %v4113_v49 = vrot.slane %v4102_v44, 2 }
 0x17e   : > { %v1071_v50 = vpop.permute.xlu0 %1070  ;;  %v861_v52 = vpop.permute.xlu1 %860 }
 0x17f   : > { %950 = vst.msk [vmem:[#allocation3 + $0x38] sm:$0xff] %vm942_vm7, %v861_v52 }
 0x180   : > { %1160 = vst.msk [vmem:[#allocation3 + $0x38] sm:$0xff] %vm1152_vm8, %v1071_v50 }
 0x181   : > { %1369 = vst.msk [vmem:[#allocation3 + $0x38] sm:$0xff] %vm1361_vm9, %v1280_v45  ;;  %874 = vrot.lane.b32.xlu2 %v4023_v53, %s3274_s9  ;;  %v1460_v45 = vrot.slane %v4095_v40, 1 }
 0x183   : > { %v863_v36 = vpop.permute.xlu2 %862 }
 0x184   : > { %951 = vst.msk [vmem:[#allocation3 + $0x40] sm:$0xff] %vm942_vm7, %v863_v36  ;;  %1293 = vrot.lane.b32.xlu0 %v3943_v55, %s3276_s13  ;;  %1289 = vrot.lane.b32.xlu1 %v3902_v54, %s3276_s13 }
 0x186   : > { %v2141_v57 = vpop.permute.xlu0 %2140  ;;  %v2139_v60 = vpop.permute.xlu1 %2138 }
 0x187   : > { %2234 = vst.msk [vmem:[#allocation3 + $0x18] sm:$0xff] %vm2230_vm13, %v2141_v57  ;;  %v4119_v57 = vsel %vm975_vm5, %v1669_v42, %v4113_v49 }
 0x188   : > { %2233 = vst.msk [vmem:[#allocation3 + $0x10] sm:$0xff] %vm2230_vm13, %v2139_v60  ;;  %v4126_v60 = vsel %vm765_vm4, %v1460_v45, %v4108_v46 }
 0x189   : > { %2442 = vst.msk [vmem:[#allocation3 + $0x10] sm:$0xff] %vm2439_vm15, %v3937_v12  ;;  %1086 = vrot.lane.b32.xlu2 %v1015_v6, %s3275_s10  ;;  %v4057_v12 = vrot.slane %v3955_v15, 1 }
 0x18b   : > { %v1075_v9 = vpop.permute.xlu2 %1074  ;;  %v810_v20 = vsel %vm765_vm4, %v4057_v12, %v809_v4  ;;  %v4093_v31 = vsel %vm765_vm4, %v1445_v18, %v4057_v12 }
 0x18c   : > { %1088 = vrot.lane.b32.xlu0 %v4050_v51, %s3275_s10  ;;  %1084 = vrot.lane.b32.xlu1 %v3930_v7, %s3275_s10 }
 0x18e   : > { %v1708_v17 = vpop.permute.xlu0 %1707  ;;  %v2350_v19 = vpop.permute.xlu1 %2349 }
 0x18f   : > { %1800 = vst.msk [vmem:[#allocation3 + $0x20] sm:$0xff] %vm1795_vm11, %v1708_v17  ;;  %v4140_v17 = vld [vmem:[#allocation2 + $0x120] sm:$0xff] }
 0x190   : > { %2443 = vst.msk [vmem:[#allocation3 + $0x18] sm:$0xff] %vm2439_vm15, %v2350_v19  ;;  %v2474_v11 = vld [vmem:[#allocation3 + $0x10] sm:$0xff] }
 0x191   : > { %3170 = vmatmul.msk.f32.gmra.mxu1 %vm2511_vm0, %v2474_v11  ;;  %880 = vrot.lane.b32.xlu2 %v810_v20, %s3274_s9  ;;  %v4144_v20 = vld [vmem:[#allocation2 + $0x128] sm:$0xff]  ;;  %709 = vst.msk [vmem:[#allocation3 + $0xc0] sm:$0xff] %vm562_vm2, %v4140_v17 }
 0x192   : > { %710 = vst.msk [vmem:[#allocation3 + $0xc8] sm:$0xff] %vm562_vm2, %v4144_v20 }
 0x193   : > { %v2143_v22 = vpop.permute.xlu2 %2142 }
 0x194   : > { %1299 = vrot.lane.b32.xlu0 %v3976_v25, %s3276_s13  ;;  %1295 = vrot.lane.b32.xlu1 %v3955_v15, %s3276_s13 }
 0x196   : > { %v1920_v24 = vpop.permute.xlu0 %1919  ;;  %v1501_v26 = vpop.permute.xlu1 %1500 }
 0x197   : > { %1592 = vst.msk [vmem:[#allocation3 + $0x28] sm:$0xff] %vm1586_vm10, %v1501_v26  ;;  %v2475_v27 = vld [vmem:[#allocation3 + $0x18] sm:$0xff]  ;;  %v669_v26 = vld [vmem:[#allocation2 + $0x100] sm:$0x3] }
 0x198   : > { %1801 = vst.msk [vmem:[#allocation3 + $0x28] sm:$0xff] %vm1795_vm11, %v3972_v23  ;;  %v666_v23 = vld [vmem:[#allocation2 + $0xe8] sm:$0x3] }
 0x199   : > { %2011 = vst.msk [vmem:[#allocation3 + $0x28] sm:$0xff] %vm2005_vm12, %v1920_v24  ;;  %3171 = vmatmul.msk.f32.gmra.mxu1 %vm2511_vm0, %v2475_v27  ;;  %1297 = vrot.lane.b32.xlu2 %v3993_v39, %s3276_s13  ;;  %v1024_v36 = vrot.slane %v666_v23, 2  ;;  %v814_v16 = vrot.slane %v666_v23, 1  ;;  %v4149_v24 = vrot.slane %v4044_v10, 1  ;;  %v819_v23 = vrot.slane %v669_v26, 1 }
 0x19b   : > { %v4089_v29 = vpop.permute.xlu2 %2353  ;;  %v1025_v6 = vsel %vm975_vm5, %v3991_v35, %v1024_v36  ;;  %v815_v11 = vsel %vm765_vm4, %v3988_v32, %v814_v16 }
 0x19c   : > { %882 = vrot.lane.b32.xlu0 %v4014_v48, %s3274_s9  ;;  %878 = vrot.lane.b32.xlu1 %v4093_v31, %s3274_s9 }
 0x19e   : > { %v865_v50 = vpop.permute.xlu0 %864  ;;  %v1278_v52 = vpop.permute.xlu1 %1277 }
 0x19f   : > { %952 = vst.msk [vmem:[#allocation3 + $0x48] sm:$0xff] %vm942_vm7, %v865_v50  ;;  %v820_v50 = vsel %vm765_vm4, %v4149_v24, %v819_v23 }
 0x1a0   : > { %1162 = vst.msk [vmem:[#allocation3 + $0x48] sm:$0xff] %vm1152_vm8, %v1075_v9 }
 0x1a1   : > { %1368 = vst.msk [vmem:[#allocation3 + $0x30] sm:$0xff] %vm1361_vm9, %v1278_v52  ;;  %1092 = vrot.lane.b32.xlu2 %v4010_v47, %s3275_s10  ;;  %v1029_v52 = vrot.slane %v669_v26, 2  ;;  %v826_v26 = vrot.slane %v4140_v17, 1 }
 0x1a3   : > { %v1505_v1 = vpop.permute.xlu2 %1504 }
 0x1a4   : > { %1594 = vst.msk [vmem:[#allocation3 + $0x38] sm:$0xff] %vm1586_vm10, %v1505_v1  ;;  %1094 = vrot.lane.b32.xlu0 %v1025_v6, %s3275_s10  ;;  %1090 = vrot.lane.b32.xlu1 %v1020_v8, %s3275_s10  ;;  %v1030_v1 = vsel %vm975_vm5, %v4060_v13, %v1029_v52  ;;  %v672_v6 = vld [vmem:[#allocation2 + $0x118] sm:$0x3] }
 0x1a6   : > { %v2352_v9 = vpop.permute.xlu0 %2351  ;;  %v1918_v4 = vpop.permute.xlu1 %1917 }
 0x1a7   : > { %2010 = vst.msk [vmem:[#allocation3 + $0x20] sm:$0xff] %vm2005_vm12, %v1918_v4 }
 0x1a8   : > { %2235 = vst.msk [vmem:[#allocation3 + $0x20] sm:$0xff] %vm2230_vm13, %v2143_v22  ;;  %v816_v22 = vrot.slane %v4062_v14, 1 }
 0x1a9   : > { %2444 = vst.msk [vmem:[#allocation3 + $0x20] sm:$0xff] %vm2439_vm15, %v2352_v9  ;;  %1303 = vrot.lane.b32.xlu2 %v4044_v10, %s3276_s13  ;;  %v824_v9 = vrot.slane %v672_v6, 1 }
 0x1aa   : > { %v4161_v42 = vsel %vm765_vm4, %v816_v22, %v4149_v24 }
 0x1ab   : > { %v1922_v19 = vpop.permute.xlu2 %1921 }
 0x1ac   : > { %2357 = vrot.lane.b32.xlu0 %v3803_v3, %s3281_s18  ;;  %884 = vrot.lane.b32.xlu1 %v815_v11, %s3274_s9 }
 0x1ae   : > { %v1503_v18 = vpop.permute.xlu0 %1502  ;;  %v1073_v27 = vpop.permute.xlu1 %1072 }
 0x1af   : > { %1593 = vst.msk [vmem:[#allocation3 + $0x30] sm:$0xff] %vm1586_vm10, %v1503_v18  ;;  %v827_v18 = vrot.slane %v4144_v20, 1 }
 0x1b0   : > { %1161 = vst.msk [vmem:[#allocation3 + $0x40] sm:$0xff] %vm1152_vm8, %v1073_v27  ;;  %v2476_v3 = vld [vmem:[#allocation3 + $0x20] sm:$0xff] }
 0x1b1   : > { %886 = vrot.lane.b32.xlu2 %v4161_v42, %s3274_s9  ;;  %3172 = vmatmul.msk.f32.gmra.mxu1 %vm2511_vm0, %v2476_v3  ;;  %v828_v3 = vsel %vm765_vm4, %v826_v26, %v827_v18 }
 0x1b3   : > { %v869_v45 = vpop.permute.xlu2 %868 }
 0x1b4   : > { %954 = vst.msk [vmem:[#allocation3 + $0x58] sm:$0xff] %vm942_vm7, %v869_v45  ;;  %888 = vrot.lane.b32.xlu0 %v820_v50, %s3274_s9  ;;  %1301 = vrot.lane.b32.xlu1 %v4062_v14, %s3276_s13  ;;  %v675_v50 = vld [vmem:[#allocation2 + $0x130] sm:$0x3] }
 0x1b6   : > { %v1714_v36 = vpop.permute.xlu0 %1713  ;;  %v2145_v41 = vpop.permute.xlu1 %2144 }
 0x1b7   : > { %1803 = vst.msk [vmem:[#allocation3 + $0x38] sm:$0xff] %vm1795_vm11, %v1714_v36 }
 0x1b8   : > { %2236 = vst.msk [vmem:[#allocation3 + $0x28] sm:$0xff] %vm2230_vm13, %v2145_v41  ;;  %v1039_v41 = vrot.slane %v675_v50, 2 }
 0x1b9   : > { %2445 = vst.msk [vmem:[#allocation3 + $0x28] sm:$0xff] %vm2439_vm15, %v4089_v29  ;;  %1098 = vrot.lane.b32.xlu2 %v1030_v1, %s3275_s10  ;;  %v825_v29 = vsel %vm765_vm4, %v4108_v46, %v824_v9  ;;  %v1034_v1 = vrot.slane %v672_v6, 2 }
 0x1bb   : > { %v2149_v8 = vpop.permute.xlu2 %2148 }
 0x1bc   : > { %1305 = vrot.lane.b32.xlu0 %v4095_v40, %s3276_s13  ;;  %1096 = vrot.lane.b32.xlu1 %v4073_v21, %s3275_s10 }
 0x1be   : > { %v1282_v4 = vpop.permute.xlu0 %1281  ;;  %v1712_v16 = vpop.permute.xlu1 %1711 }
 0x1bf   : > { %1370 = vst.msk [vmem:[#allocation3 + $0x40] sm:$0xff] %vm1361_vm9, %v1282_v4 }
 0x1c0   : > { %1802 = vst.msk [vmem:[#allocation3 + $0x30] sm:$0xff] %vm1795_vm11, %v1712_v16  ;;  %v2477_v11 = vld [vmem:[#allocation3 + $0x28] sm:$0xff]  ;;  %v1035_v16 = vsel %vm975_vm5, %v4113_v49, %v1034_v1 }
 0x1c1   : > { %2012 = vst.msk [vmem:[#allocation3 + $0x30] sm:$0xff] %vm2005_vm12, %v1922_v19  ;;  %3173 = vmatmul.msk.f32.gmra.mxu1 %vm2511_vm0, %v2477_v11  ;;  %892 = vrot.lane.b32.xlu2 %v825_v29, %s3274_s9  ;;  %v2757_v19 = vld [vmem:[%s5122_s5] sm:$0x3]  ;;  %v1674_v11 = vrot.slane %v4140_v17, 2  ;;  %v678_v29 = vld [vmem:[#allocation2 + $0x148] sm:$0x3] }
 0x1c2   : > { %3200 = vmatpush.msk.msra.mxu2 %vm2608_vm14, %v2757_v19  ;;  %3241 = vmatpush.msk.msra.mxu3 %vm2608_vm14, %v2757_v19  ;;  %v834_v19 = vrot.slane %v678_v29, 1 }
 0x1c3   : > { %v1286_v22 = vpop.permute.xlu2 %1285 }
 0x1c4   : > { %1100 = vrot.lane.b32.xlu0 %v4119_v57, %s3275_s10  ;;  %1307 = vrot.lane.b32.xlu1 %v4102_v44, %s3276_s13 }
 0x1c6   : > { %v1077_v27 = vpop.permute.xlu0 %1076  ;;  %v1284_v23 = vpop.permute.xlu1 %1283 }
 0x1c7   : > { %1371 = vst.msk [vmem:[#allocation3 + $0x48] sm:$0xff] %vm1361_vm9, %v1284_v23 }
 0x1c9   : > { %1715 = vrot.lane.b32.xlu2 %v3893_v56, %s3278_s15  ;;  %v1037_v56 = vrot.slane %v4144_v20, 2 }
 0x1cb   : > { %v1081_v45 = vpop.permute.xlu2 %1080  ;;  %v1040_v4 = vsel %vm975_vm5, %v1037_v56, %v1039_v41  ;;  %v1038_v23 = vsel %vm975_vm5, %v1674_v11, %v1037_v56 }
 0x1cc   : > { %894 = vrot.lane.b32.xlu0 %v828_v3, %s3274_s9  ;;  %890 = vrot.lane.b32.xlu1 %v4126_v60, %s3274_s9 }
 0x1ce   : > { %v2147_v52 = vpop.permute.xlu0 %2146  ;;  %v1924_v36 = vpop.permute.xlu1 %1923 }
 0x1cf   : > { %2237 = vst.msk [vmem:[#allocation3 + $0x30] sm:$0xff] %vm2230_vm13, %v2147_v52 }
 0x1d0   : > { %2013 = vst.msk [vmem:[#allocation3 + $0x38] sm:$0xff] %vm2005_vm12, %v1924_v36 }
 0x1d1   : > { %2238 = vst.msk [vmem:[#allocation3 + $0x38] sm:$0xff] %vm2230_vm13, %v2149_v8  ;;  %1309 = vrot.lane.b32.xlu2 %v4140_v17, %s3276_s13  ;;  %v4226_v8 = vrot.slane %v3911_v63, 1 }
 0x1d3   : > { %v4216_v9 = vpop.permute.xlu2 %1291  ;;  %v835_v52 = vsel %vm765_vm4, %v4226_v8, %v834_v19  ;;  %v1044_v19 = vrot.slane %v678_v29, 2 }
 0x1d4   : > { %1106 = vrot.lane.b32.xlu0 %v1040_v4, %s3275_s10  ;;  %1102 = vrot.lane.b32.xlu1 %v1035_v16, %s3275_s10  ;;  %v1199_v4 = vld [vmem:[#allocation2 + $0x88] sm:$0x3] }
 0x1d6   : > { %v1288_v20 = vpop.permute.xlu0 %1287  ;;  %v867_v6 = vpop.permute.xlu1 %866 }
 0x1d7   : > { %953 = vst.msk [vmem:[#allocation3 + $0x50] sm:$0xff] %vm942_vm7, %v867_v6 }
 0x1d8   : > { %1163 = vst.msk [vmem:[#allocation3 + $0x50] sm:$0xff] %vm1152_vm8, %v1077_v27  ;;  %v831_v27 = vrot.slane %v3919_v2, 1 }
 0x1d9   : > { %1372 = vst.msk [vmem:[#allocation3 + $0x50] sm:$0xff] %vm1361_vm9, %v1286_v22  ;;  %1104 = vrot.lane.b32.xlu2 %v1038_v23, %s3275_s10  ;;  %v829_v22 = vrot.slane %v675_v50, 1 }
 0x1da   : > { %v4245_v41 = vsel %vm765_vm4, %v831_v27, %v4226_v8 }
 0x1db   : > { %v875_v3 = vpop.permute.xlu2 %874  ;;  %v830_v50 = vsel %vm765_vm4, %v827_v18, %v829_v22  ;;  %v1041_v18 = vrot.slane %v3919_v2, 2 }
 0x1dc   : > { %957 = vst.msk [vmem:[#allocation3 + $0x70] sm:$0xff] %vm942_vm7, %v875_v3  ;;  %900 = vrot.lane.b32.xlu0 %v835_v52, %s3274_s9  ;;  %1506 = vrot.lane.b32.xlu1 %v3793_v0, %s3277_s14  ;;  %v4254_v0 = vld [vmem:[%s5121_s4] ss:$0 sm:$0xff]  ;;  %v1433_v3 = vrot.slane %v1199_v4, 1 }
 0x1de   : > { %v871_v36 = vpop.permute.xlu0 %870  ;;  %v1079_v56 = vpop.permute.xlu1 %1078 }
 0x1df   : > { %955 = vst.msk [vmem:[#allocation3 + $0x60] sm:$0xff] %vm942_vm7, %v871_v36  ;;  %v1434_v36 = vsel %vm765_vm4, %v3775_v58, %v1433_v3 }
 0x1e0   : > { %1165 = vst.msk [vmem:[#allocation3 + $0x60] sm:$0xff] %vm1152_vm8, %v1081_v45  ;;  %v4261_v45 = vrot.slane %v3911_v63, 2 }
 0x1e1   : > { %1164 = vst.msk [vmem:[#allocation3 + $0x58] sm:$0xff] %vm1152_vm8, %v1079_v56  ;;  %898 = vrot.lane.b32.xlu2 %v4245_v41, %s3274_s9  ;;  %v1843_v56 = vld [vmem:[#allocation2 + $0xa0] sm:$0x3] }
 0x1e2   : > { %1373 = vst.msk [vmem:[#allocation3 + $0x58] sm:$0xff] %vm1361_vm9, %v1288_v20  ;;  %v4274_v29 = vsel %vm975_vm5, %v1041_v18, %v4261_v45  ;;  %v2077_v58 = vrot.slane %v1843_v56, 1 }
 0x1e3   : > { %v1087_v1 = vpop.permute.xlu2 %1086 }
 0x1e4   : > { %1925 = vrot.lane.b32.xlu0 %v3857_v38, %s3279_s16  ;;  %896 = vrot.lane.b32.xlu1 %v830_v50, %s3274_s9  ;;  %v1045_v38 = vsel %vm975_vm5, %v4261_v45, %v1044_v19  ;;  %v2078_v18 = vsel %vm765_vm4, %v3855_v37, %v2077_v58 }
 0x1e5   : > { %v2629_v16 = vpop.f32.mrf.mxu1 }
 0x1e6   : > { %v2630_v20 = vadd.f32 %v4254_v0, %v2629_v16  ;;  %v1083_v6 = vpop.permute.xlu0 %1082  ;;  %v2356_v23 = vpop.permute.xlu1 %2355 }
 0x1e7   : > { %2446 = vst.msk [vmem:[#allocation3 + $0x30] sm:$0xff] %vm2439_vm15, %v2356_v23 }
 0x1e8   : > { %v2725_v52 = vmax.f32 %v2630_v20, 0.0 }
 0x1e9   : > { %1110 = vrot.lane.b32.xlu2 %v1045_v38, %s3275_s10  ;;  %v1642_v38 = vrot.slane %v1199_v4, 2 }
 0x1ea   : > { %3201 = vmatmul.msk.f32.vlgmr.msra.gmra.mxu2 %vm562_vm2, %v2725_v52 }
 0x1eb   : > { %v881_v27 = vpop.permute.xlu2 %880 }
 0x1ec   : > { %960 = vst.msk [vmem:[#allocation3 + $0x88] sm:$0xff] %vm942_vm7, %v881_v27  ;;  %1508 = vrot.lane.b32.xlu0 %v1434_v36, %s3277_s14  ;;  %1108 = vrot.lane.b32.xlu1 %v4274_v29, %s3275_s10 }
 0x1ed   : > { %v2632_v22 = vpop.f32.mrf.mxu1 }
 0x1ee   : > { %v2633_v50 = vadd.f32 %v4254_v0, %v2632_v22  ;;  %v877_v16 = vpop.permute.xlu0 %876  ;;  %v873_v20 = vpop.permute.xlu1 %872  ;;  %v2478_v23 = vld [vmem:[#allocation3 + $0x30] sm:$0xff]  ;;  %v2286_v22 = vrot.slane %v1843_v56, 2 }
 0x1ef   : > { %958 = vst.msk [vmem:[#allocation3 + $0x78] sm:$0xff] %vm942_vm7, %v877_v16  ;;  %3174 = vmatmul.msk.f32.gmra.mxu1 %vm2511_vm0, %v2478_v23  ;;  %v1202_v56 = vld [vmem:[#allocation2 + $0xa0] sm:$0x3] }
 0x1f0   : > { %v2726_v19 = vmax.f32 %v2633_v50, 0.0  ;;  %1168 = vst.msk [vmem:[#allocation3 + $0x78] sm:$0xff] %vm1152_vm8, %v1087_v1  ;;  %v2287_v4 = vsel %vm975_vm5, %v3851_v34, %v2286_v22 }
 0x1f1   : > { %956 = vst.msk [vmem:[#allocation3 + $0x68] sm:$0xff] %vm942_vm7, %v873_v20  ;;  %2359 = vrot.lane.b32.xlu2 %v3870_v43, %s3281_s18 }
 0x1f2   : > { %1166 = vst.msk [vmem:[#allocation3 + $0x68] sm:$0xff] %vm1152_vm8, %v1083_v6  ;;  %3202 = vmatmul.msk.f32.gmra.mxu2 %vm562_vm2, %v2726_v19  ;;  %v1438_v19 = vrot.slane %v1202_v56, 1 }
 0x1f3   : > { %1375 = vst.msk [vmem:[#allocation3 + $0x68] sm:$0xff] %vm1361_vm9, %v4216_v9  ;;  %v1298_v3 = vpop.permute.xlu2 %1297  ;;  %v1643_v9 = vsel %vm975_vm5, %v3780_v61, %v1642_v38 }
 0x1f4   : > { %2152 = vrot.lane.b32.xlu0 %v2078_v18, %s3280_s17  ;;  %2150 = vrot.lane.b32.xlu1 %v3878_v33, %s3280_s17 }
 0x1f6   : > { %v1294_v1 = vpop.permute.xlu0 %1293  ;;  %v1290_v52 = vpop.permute.xlu1 %1289 }
 0x1f7   : > { %1374 = vst.msk [vmem:[#allocation3 + $0x60] sm:$0xff] %vm1361_vm9, %v1290_v52  ;;  %v1439_v52 = vsel %vm765_vm4, %v3855_v37, %v1438_v19 }
 0x1f9   : > { %1927 = vrot.lane.b32.xlu2 %v3842_v28, %s3279_s16 }
 0x1fb   : > { %v1093_v6 = vpop.permute.xlu2 %1092 }
 0x1fc   : > { %1719 = vrot.lane.b32.xlu0 %v3870_v43, %s3278_s15  ;;  %1717 = vrot.lane.b32.xlu1 %v1643_v9, %s3278_s15 }
 0x1fe   : > { %v1089_v27 = vpop.permute.xlu0 %1088  ;;  %v1085_v36 = vpop.permute.xlu1 %1084 }
 0x1ff   : > { %1167 = vst.msk [vmem:[#allocation3 + $0x70] sm:$0xff] %vm1152_vm8, %v1085_v36 }
 0x200   : > { %1376 = vst.msk [vmem:[#allocation3 + $0x70] sm:$0xff] %vm1361_vm9, %v1294_v1 }
 0x201   : > { %1510 = vrot.lane.b32.xlu2 %v3878_v33, %s3277_s14  ;;  %v1647_v33 = vrot.slane %v1202_v56, 2 }
 0x203   : > { %v1304_v28 = vpop.permute.xlu2 %1303  ;;  %v1648_v18 = vsel %vm975_vm5, %v3851_v34, %v1647_v33 }
 0x204   : > { %2363 = vrot.lane.b32.xlu0 %v3930_v7, %s3281_s18  ;;  %2361 = vrot.lane.b32.xlu1 %v2287_v4, %s3281_s18  ;;  %v1205_v4 = vld [vmem:[#allocation2 + $0xb8] sm:$0x3] }
 0x205   : > { %v1652_v56 = vrot.slane %v1205_v4, 2 }
 0x206   : > { %v1300_v61 = vpop.permute.xlu0 %1299  ;;  %v1296_v43 = vpop.permute.xlu1 %1295 }
 0x207   : > { %1377 = vst.msk [vmem:[#allocation3 + $0x78] sm:$0xff] %vm1361_vm9, %v1296_v43 }
 0x209   : > { %2154 = vrot.lane.b32.xlu2 %v4023_v53, %s3280_s17 }
 0x20b   : > { %v887_v50 = vpop.permute.xlu2 %886 }
 0x20c   : > { %963 = vst.msk [vmem:[#allocation3 + $0xa0] sm:$0xff] %vm942_vm7, %v887_v50  ;;  %1931 = vrot.lane.b32.xlu0 %v3900_v59, %s3279_s16  ;;  %1929 = vrot.lane.b32.xlu1 %v3902_v54, %s3279_s16  ;;  %v1846_v59 = vld [vmem:[#allocation2 + $0xb8] sm:$0x3]  ;;  %v309_v50 = vld [vmem:[%s3341_s8 + $0xf0] sm:$0xff] }
 0x20d   : > { %v2291_v34 = vrot.slane %v1846_v59, 2  ;;  %3165 = vmatmul.msk.f32.gmra.mxu3 %vm316_vm1, %v309_v50 }
 0x20e   : > { %v2635_v16 = vpop.f32.mrf.mxu1  ;;  %v883_v20 = vpop.permute.xlu0 %882 }
 0x20f   : > { %v2636_v23 = vadd.f32 %v4254_v0, %v2635_v16  ;;  %961 = vst.msk [vmem:[#allocation3 + $0x90] sm:$0xff] %vm942_vm7, %v883_v20  ;;  %v879_v58 = vpop.permute.xlu1 %878  ;;  %v1653_v16 = vsel %vm975_vm5, %v3907_v62, %v1652_v56  ;;  %v1443_v20 = vrot.slane %v1205_v4, 1 }
 0x210   : > { %1171 = vst.msk [vmem:[#allocation3 + $0x90] sm:$0xff] %vm1152_vm8, %v1093_v6 }
 0x211   : > { %v2727_v1 = vmax.f32 %v2636_v23, 0.0  ;;  %959 = vst.msk [vmem:[#allocation3 + $0x80] sm:$0xff] %vm942_vm7, %v879_v58  ;;  %1721 = vrot.lane.b32.xlu2 %v1648_v18, %s3278_s15  ;;  %v1849_v23 = vld [vmem:[#allocation2 + $0xd0] sm:$0x3]  ;;  %v310_v18 = vld [vmem:[%s3341_s8 + $0xf8] sm:$0xff] }
 0x212   : > { %1169 = vst.msk [vmem:[#allocation3 + $0x80] sm:$0xff] %vm1152_vm8, %v1089_v27  ;;  %v2082_v27 = vrot.slane %v1846_v59, 1  ;;  %v2296_v19 = vrot.slane %v1849_v23, 2  ;;  %v2087_v59 = vrot.slane %v1849_v23, 1 }
 0x213   : > { %1378 = vst.msk [vmem:[#allocation3 + $0x80] sm:$0xff] %vm1361_vm9, %v1298_v3  ;;  %3203 = vmatmul.msk.f32.gmra.mxu2 %vm562_vm2, %v2727_v1  ;;  %v1099_v54 = vpop.permute.xlu2 %1098  ;;  %v2292_v3 = vsel %vm975_vm5, %v3907_v62, %v2291_v34  ;;  %v1444_v62 = vsel %vm765_vm4, %v3985_v30, %v1443_v20 }
 0x214   : > { %1514 = vrot.lane.b32.xlu0 %v4023_v53, %s3277_s14  ;;  %1512 = vrot.lane.b32.xlu1 %v1439_v52, %s3277_s14  ;;  %v2083_v53 = vsel %vm765_vm4, %v3985_v30, %v2082_v27  ;;  %v2297_v1 = vsel %vm975_vm5, %v4036_v5, %v2296_v19 }
 0x215   : > { %3166 = vmatmul.msk.f32.gmra.mxu3 %vm316_vm1, %v310_v18 }
 0x216   : > { %v2638_v38 = vpop.f32.mrf.mxu1  ;;  %v1095_v6 = vpop.permute.xlu0 %1094 }
 0x217   : > { %v2639_v9 = vadd.f32 %v4254_v0, %v2638_v38  ;;  %v1091_v36 = vpop.permute.xlu1 %1090  ;;  %v2088_v38 = vsel %vm765_vm4, %v4057_v12, %v2087_v59 }
 0x218   : > { %1170 = vst.msk [vmem:[#allocation3 + $0x88] sm:$0xff] %vm1152_vm8, %v1091_v36  ;;  %v1208_v36 = vld [vmem:[#allocation2 + $0xd0] sm:$0x3] }
 0x219   : > { %v2728_v22 = vmax.f32 %v2639_v9, 0.0  ;;  %1379 = vst.msk [vmem:[#allocation3 + $0x88] sm:$0xff] %vm1361_vm9, %v1300_v61  ;;  %2365 = vrot.lane.b32.xlu2 %v2292_v3, %s3281_s18  ;;  %v1657_v20 = vrot.slane %v1208_v36, 2 }
 0x21b   : > { %3204 = vmatmul.msk.f32.gmra.mxu2 %vm562_vm2, %v2728_v22  ;;  %v893_v37 = vpop.permute.xlu2 %892  ;;  %v1448_v22 = vrot.slane %v1208_v36, 1 }
 0x21c   : > { %966 = vst.msk [vmem:[#allocation3 + $0xb8] sm:$0xff] %vm942_vm7, %v893_v37  ;;  %2158 = vrot.lane.b32.xlu0 %v4093_v31, %s3280_s17  ;;  %2156 = vrot.lane.b32.xlu1 %v2083_v53, %s3280_s17 }
 0x21d   : > { %v1449_v53 = vsel %vm765_vm4, %v4057_v12, %v1448_v22 }
 0x21e   : > { %v2358_v43 = vpop.permute.xlu0 %2357 }
 0x21f   : > { %2447 = vst.msk [vmem:[#allocation3 + $0x38] sm:$0xff] %vm2439_vm15, %v2358_v43  ;;  %v885_v61 = vpop.permute.xlu1 %884 }
 0x220   : > { %962 = vst.msk [vmem:[#allocation3 + $0x98] sm:$0xff] %vm942_vm7, %v885_v61 }
 0x221   : > { %1172 = vst.msk [vmem:[#allocation3 + $0x98] sm:$0xff] %vm1152_vm8, %v1095_v6  ;;  %1933 = vrot.lane.b32.xlu2 %v3943_v55, %s3279_s16 }
 0x222   : > { %1381 = vst.msk [vmem:[#allocation3 + $0x98] sm:$0xff] %vm1361_vm9, %v1304_v28 }
 0x223   : > { %v4356_v33 = vpop.permute.xlu2 %1715 }
 0x224   : > { %1725 = vrot.lane.b32.xlu0 %v1653_v16, %s3278_s15  ;;  %1723 = vrot.lane.b32.xlu1 %v3930_v7, %s3278_s15 }
 0x226   : > { %v889_v58 = vpop.permute.xlu0 %888  ;;  %v2479_v55 = vld [vmem:[#allocation3 + $0x38] sm:$0xff] }
 0x227   : > { %964 = vst.msk [vmem:[#allocation3 + $0xa8] sm:$0xff] %vm942_vm7, %v889_v58  ;;  %v1302_v28 = vpop.permute.xlu1 %1301  ;;  %3175 = vmatmul.msk.f32.gmra.mxu1 %vm2511_vm0, %v2479_v55  ;;  %v1658_v58 = vsel %vm975_vm5, %v4036_v5, %v1657_v20 }
 0x228   : > { %1174 = vst.msk [vmem:[#allocation3 + $0xa8] sm:$0xff] %vm1152_vm8, %v1099_v54 }
 0x229   : > { %1380 = vst.msk [vmem:[#allocation3 + $0x90] sm:$0xff] %vm1361_vm9, %v1302_v28  ;;  %1516 = vrot.lane.b32.xlu2 %v1444_v62, %s3277_s14 }
 0x22b   : > { %v1310_v7 = vpop.permute.xlu2 %1309 }
 0x22c   : > { %2369 = vrot.lane.b32.xlu0 %v2297_v1, %s3281_s18  ;;  %2367 = vrot.lane.b32.xlu1 %v4050_v51, %s3281_s18 }
 0x22e   : > { %v1306_v54 = vpop.permute.xlu0 %1305  ;;  %v2641_v52 = vpop.f32.mrf.mxu1 }
 0x22f   : > { %v1097_v30 = vpop.permute.xlu1 %1096  ;;  %v2642_v34 = vadd.f32 %v4254_v0, %v2641_v52 }
 0x230   : > { %1173 = vst.msk [vmem:[#allocation3 + $0xa0] sm:$0xff] %vm1152_vm8, %v1097_v30  ;;  %v1211_v30 = vld [vmem:[#allocation2 + $0xe8] sm:$0x3] }
 0x231   : > { %1382 = vst.msk [vmem:[#allocation3 + $0xa0] sm:$0xff] %vm1361_vm9, %v1306_v54  ;;  %v2729_v6 = vmax.f32 %v2642_v34, 0.0  ;;  %2160 = vrot.lane.b32.xlu2 %v2088_v38, %s3280_s17 }
 0x233   : > { %v1105_v9 = vpop.permute.xlu2 %1104  ;;  %3205 = vmatmul.msk.f32.gmra.mxu2 %vm562_vm2, %v2729_v6  ;;  %v1662_v6 = vrot.slane %v1211_v30, 2 }
 0x234   : > { %1937 = vrot.lane.b32.xlu0 %v3993_v39, %s3279_s16  ;;  %1935 = vrot.lane.b32.xlu1 %v3955_v15, %s3279_s16  ;;  %v1852_v15 = vld [vmem:[#allocation2 + $0xe8] sm:$0x3] }
 0x235   : > { %v2301_v19 = vrot.slane %v1852_v15, 2 }
 0x236   : > { %v1101_v27 = vpop.permute.xlu0 %1100 }
 0x237   : > { %v1308_v3 = vpop.permute.xlu1 %1307 }
 0x238   : > { %1383 = vst.msk [vmem:[#allocation3 + $0xa8] sm:$0xff] %vm1361_vm9, %v1308_v3 }
 0x239   : > { %1727 = vrot.lane.b32.xlu2 %v4050_v51, %s3278_s15  ;;  %v2092_v51 = vrot.slane %v1852_v15, 1 }
 0x23b   : > { %v899_v37 = vpop.permute.xlu2 %898 }
 0x23c   : > { %969 = vst.msk [vmem:[#allocation3 + $0xd0] sm:$0xff] %vm942_vm7, %v899_v37  ;;  %1520 = vrot.lane.b32.xlu0 %v1449_v53, %s3277_s14  ;;  %1518 = vrot.lane.b32.xlu1 %v4093_v31, %s3277_s14  ;;  %v2093_v31 = vsel %vm765_vm4, %v3988_v32, %v2092_v51  ;;  %v2974_v53 = vld [vmem:[%s3341_s8] sm:$0xff] }
 0x23e   : > { %v2644_v39 = vpop.f32.mrf.mxu1  ;;  %v895_v4 = vpop.permute.xlu0 %894 }
 0x23f   : > { %v2645_v43 = vadd.f32 %v4254_v0, %v2644_v39  ;;  %967 = vst.msk [vmem:[#allocation3 + $0xc0] sm:$0xff] %vm942_vm7, %v895_v4  ;;  %v891_v61 = vpop.permute.xlu1 %890  ;;  %v1223_v4 = vld [vmem:[#allocation2 + $0x148] sm:$0x3] }
 0x240   : > { %1177 = vst.msk [vmem:[#allocation3 + $0xc0] sm:$0xff] %vm1152_vm8, %v1105_v9 }
 0x241   : > { %v2730_v56 = vmax.f32 %v2645_v43, 0.0  ;;  %965 = vst.msk [vmem:[#allocation3 + $0xb0] sm:$0xff] %vm942_vm7, %v891_v61  ;;  %2371 = vrot.lane.b32.xlu2 %v4010_v47, %s3281_s18  ;;  %v1453_v61 = vrot.slane %v1211_v30, 1 }
 0x242   : > { %1175 = vst.msk [vmem:[#allocation3 + $0xb0] sm:$0xff] %vm1152_vm8, %v1101_v27  ;;  %v1663_v27 = vsel %vm975_vm5, %v3991_v35, %v1662_v6 }
 0x243   : > { %1384 = vst.msk [vmem:[#allocation3 + $0xb0] sm:$0xff] %vm1361_vm9, %v1310_v7  ;;  %3206 = vmatmul.msk.f32.gmra.mxu2 %vm562_vm2, %v2730_v56  ;;  %v1111_v12 = vpop.permute.xlu2 %1110 }
 0x244   : > { %2164 = vrot.lane.b32.xlu0 %v2093_v31, %s3280_s17  ;;  %2162 = vrot.lane.b32.xlu1 %v4014_v48, %s3280_s17 }
 0x246   : > { %v1107_v50 = vpop.permute.xlu0 %1106 }
 0x247   : > { %v1103_v16 = vpop.permute.xlu1 %1102 }
 0x248   : > { %1176 = vst.msk [vmem:[#allocation3 + $0xb8] sm:$0xff] %vm1152_vm8, %v1103_v16  ;;  %v1454_v16 = vsel %vm765_vm4, %v3988_v32, %v1453_v61 }
 0x249   : > { %1939 = vrot.lane.b32.xlu2 %v3976_v25, %s3279_s16 }
 0x24b   : > { %v2360_v23 = vpop.permute.xlu2 %2359 }
 0x24c   : > { %1313 = vrot.lane.b32.xlu0 %v3919_v2, %s3276_s13  ;;  %1729 = vrot.lane.b32.xlu1 %v1658_v58, %s3278_s15  ;;  %v2302_v2 = vsel %vm975_vm5, %v3991_v35, %v2301_v19 }
 0x24e   : > { %v901_v55 = vpop.permute.xlu0 %900 }
 0x24f   : > { %970 = vst.msk [vmem:[#allocation3 + $0xd8] sm:$0xff] %vm942_vm7, %v901_v55  ;;  %v1507_v28 = vpop.permute.xlu1 %1506 }
 0x250   : > { %1180 = vst.msk [vmem:[#allocation3 + $0xd8] sm:$0xff] %vm1152_vm8, %v1111_v12  ;;  %v1682_v12 = vrot.slane %v1223_v4, 2 }
 0x251   : > { %1595 = vst.msk [vmem:[#allocation3 + $0x40] sm:$0xff] %vm1586_vm10, %v1507_v28  ;;  %1522 = vrot.lane.b32.xlu2 %v4014_v48, %s3277_s14 }
 0x252   : > { %1804 = vst.msk [vmem:[#allocation3 + $0x40] sm:$0xff] %vm1795_vm11, %v4356_v33  ;;  %v4437_v33 = vld [vmem:[#allocation2 + $0x150] sm:$0xff] }
 0x253   : > { %v1928_v25 = vpop.permute.xlu2 %1927  ;;  %v2323_v7 = vrot.slane %v4437_v33, 2  ;;  %v2114_v54 = vrot.slane %v4437_v33, 1 }
 0x254   : > { %1941 = vrot.lane.b32.xlu0 %v4062_v14, %s3279_s16  ;;  %2373 = vrot.lane.b32.xlu1 %v2302_v2, %s3281_s18  ;;  %v4444_v14 = vld [vmem:[#allocation2 + $0x158] sm:$0xff] }
 0x255   : > { %v4466_v52 = vrot.slane %v4444_v14, 1 }
 0x256   : > { %v1926_v5 = vpop.permute.xlu0 %1925 }
 0x257   : > { %2014 = vst.msk [vmem:[#allocation3 + $0x40] sm:$0xff] %vm2005_vm12, %v1926_v5  ;;  %v897_v62 = vpop.permute.xlu1 %896  ;;  %v4471_v9 = vsel %vm765_vm4, %v2114_v54, %v4466_v52 }
 0x258   : > { %968 = vst.msk [vmem:[#allocation3 + $0xc8] sm:$0xff] %vm942_vm7, %v897_v62 }
 0x259   : > { %1178 = vst.msk [vmem:[#allocation3 + $0xc8] sm:$0xff] %vm1152_vm8, %v1107_v50  ;;  %1538 = vrot.lane.b32.xlu2 %v4245_v41, %s3277_s14  ;;  %v4449_v41 = vrot.slane %v4444_v14, 2  ;;  %v1683_v50 = vsel %vm975_vm5, %v4261_v45, %v1682_v12  ;;  %v1473_v45 = vrot.slane %v1223_v4, 1 }
 0x25b   : > { %v1511_v48 = vpop.permute.xlu2 %1510  ;;  %v1474_v5 = vsel %vm765_vm4, %v4226_v8, %v1473_v45 }
 0x25c   : > { %1597 = vst.msk [vmem:[#allocation3 + $0x50] sm:$0xff] %vm1586_vm10, %v1511_v48  ;;  %1957 = vrot.lane.b32.xlu0 %v4437_v33, %s3279_s16  ;;  %1731 = vrot.lane.b32.xlu1 %v4010_v47, %s3278_s15  ;;  %v4458_v47 = vsel %vm975_vm5, %v2323_v7, %v4449_v41 }
 0x25e   : > { %v1509_v18 = vpop.permute.xlu0 %1508 }
 0x25f   : > { %1596 = vst.msk [vmem:[#allocation3 + $0x48] sm:$0xff] %vm1586_vm10, %v1509_v18  ;;  %v1109_v1 = vpop.permute.xlu1 %1108 }
 0x260   : > { %1179 = vst.msk [vmem:[#allocation3 + $0xd0] sm:$0xff] %vm1152_vm8, %v1109_v1 }
 0x261   : > { %2166 = vrot.lane.b32.xlu2 %v4161_v42, %s3280_s17 }
 0x263   : > { %v4454_v59 = vpop.permute.xlu2 %2154 }
 0x264   : > { %2391 = vrot.lane.b32.xlu0 %v4458_v47, %s3281_s18  ;;  %1747 = vrot.lane.b32.xlu1 %v4274_v29, %s3278_s15  ;;  %v4479_v29 = vld [vmem:[%s5123_s6] ss:$0 sm:$0xff] }
 0x266   : > { %v2153_v34 = vpop.permute.xlu0 %2152 }
 0x267   : > { %v2151_v38 = vpop.permute.xlu1 %2150 }
 0x268   : > { %2239 = vst.msk [vmem:[#allocation3 + $0x40] sm:$0xff] %vm2230_vm13, %v2151_v38 }
 0x269   : > { %2448 = vst.msk [vmem:[#allocation3 + $0x40] sm:$0xff] %vm2439_vm15, %v2360_v23  ;;  %2182 = vrot.lane.b32.xlu2 %v4471_v9, %s3280_s17  ;;  %v2975_v23 = vld [vmem:[%s3341_s8 + $0x8] sm:$0xff] }
 0x26b   : > { %v4481_v36 = vpop.permute.xlu2 %1721 }
 0x26c   : > { %1733 = vrot.lane.b32.xlu0 %v1663_v27, %s3278_s15  ;;  %2375 = vrot.lane.b32.xlu1 %v4073_v21, %s3281_s18  ;;  %v2647_v3 = vpop.f32.mrf.mxu1 }
 0x26d   : > { %v2648_v22 = vadd.f32 %v4254_v0, %v2647_v3  ;;  %v2878_v37 = vpop.f32.mrf.mxu2 }
 0x26e   : > { %v2879_v15 = vadd.f32 %v4479_v29, %v2878_v37  ;;  %v1720_v39 = vpop.permute.xlu0 %1719  ;;  %v4568_v37 = vld [vmem:[#allocation2 + $0x170] sm:$0xff] }
 0x26f   : > { %v2731_v43 = vmax.f32 %v2648_v22, 0.0  ;;  %1806 = vst.msk [vmem:[#allocation3 + $0x50] sm:$0xff] %vm1795_vm11, %v1720_v39  ;;  %v1718_v35 = vpop.permute.xlu1 %1717 }
 0x270   : > { %v3006_v51 = vadd.f32 %v2974_v53, %v2879_v15  ;;  %1805 = vst.msk [vmem:[#allocation3 + $0x48] sm:$0xff] %vm1795_vm11, %v1718_v35  ;;  %v2480_v56 = vld [vmem:[#allocation3 + $0x40] sm:$0xff]  ;;  %v4575_v35 = vrot.slane %v4568_v37, 1 }
 0x271   : > { %2015 = vst.msk [vmem:[#allocation3 + $0x48] sm:$0xff] %vm2005_vm12, %v1928_v25  ;;  %3176 = vmatmul.msk.f32.gmra.mxu1 %vm2511_vm0, %v2480_v56  ;;  %1315 = vrot.lane.b32.xlu2 %v3911_v63, %s3276_s13  ;;  %v1855_v63 = vld [vmem:[#allocation2 + $0x100] sm:$0x3]  ;;  %v2976_v15 = vld [vmem:[%s3341_s8 + $0x10] sm:$0xff] }
 0x272   : > { %3038 = vst.msk [vmem:[%s4496_s20] sm:$0xff] %vm316_vm1, %v3006_v51  ;;  %3207 = vmatmul.msk.f32.gmra.mxu2 %vm562_vm2, %v2731_v43  ;;  %v2306_v19 = vrot.slane %v1855_v63, 2  ;;  %v2097_v7 = vrot.slane %v1855_v63, 1 }
 0x273   : > { %2240 = vst.msk [vmem:[#allocation3 + $0x48] sm:$0xff] %vm2230_vm13, %v2153_v34  ;;  %v2366_v31 = vpop.permute.xlu2 %2365 }
 0x274   : > { %1749 = vrot.lane.b32.xlu0 %v1683_v50, %s3278_s15  ;;  %1524 = vrot.lane.b32.xlu1 %v1454_v16, %s3277_s14  ;;  %v2307_v2 = vsel %vm975_vm5, %v4060_v13, %v2306_v19  ;;  %v2098_v1 = vsel %vm765_vm4, %v4149_v24, %v2097_v7 }
 0x275   : > { %v2881_v20 = vpop.f32.mrf.mxu2 }
 0x276   : > { %v2882_v58 = vadd.f32 %v4479_v29, %v2881_v20  ;;  %v2364_v55 = vpop.permute.xlu0 %2363  ;;  %v1214_v20 = vld [vmem:[#allocation2 + $0x100] sm:$0x3] }
 0x277   : > { %v2362_v28 = vpop.permute.xlu1 %2361 }
 0x278   : > { %v3007_v25 = vadd.f32 %v2975_v23, %v2882_v58  ;;  %2449 = vst.msk [vmem:[#allocation3 + $0x48] sm:$0xff] %vm2439_vm15, %v2362_v28  ;;  %v1458_v58 = vrot.slane %v1214_v20, 1 }
 0x279   : > { %1943 = vrot.lane.b32.xlu2 %v4044_v10, %s3279_s16  ;;  %v1867_v10 = vld [vmem:[#allocation2 + $0x160] sm:$0x3] }
 0x27a   : > { %3039 = vst.msk [vmem:[%s4496_s20 + $0x8] sm:$0xff] %vm316_vm1, %v3007_v25  ;;  %v2326_v54 = vrot.slane %v1867_v10, 2  ;;  %v2117_v34 = vrot.slane %v1867_v10, 1 }
 0x27b   : > { %v1934_v32 = vpop.permute.xlu2 %1933 }
 0x27c   : > { %2377 = vrot.lane.b32.xlu0 %v2307_v2, %s3281_s18  ;;  %1540 = vrot.lane.b32.xlu1 %v1474_v5, %s3277_s14  ;;  %v2327_v38 = vsel %vm975_vm5, %v4449_v41, %v2326_v54  ;;  %v2118_v27 = vsel %vm765_vm4, %v4466_v52, %v2117_v34  ;;  %v4611_v5 = vrot.slane %v4568_v37, 2 }
 0x27e   : > { %v1932_v62 = vpop.permute.xlu0 %1931 }
 0x27f   : > { %v1930_v48 = vpop.permute.xlu1 %1929  ;;  %v2481_v18 = vld [vmem:[#allocation3 + $0x48] sm:$0xff] }
 0x280   : > { %2016 = vst.msk [vmem:[#allocation3 + $0x50] sm:$0xff] %vm2005_vm12, %v1930_v48  ;;  %3177 = vmatmul.msk.f32.gmra.mxu1 %vm2511_vm0, %v2481_v18  ;;  %v1226_v48 = vld [vmem:[#allocation2 + $0x160] sm:$0x3] }
 0x281   : > { %2241 = vst.msk [vmem:[#allocation3 + $0x50] sm:$0xff] %vm2230_vm13, %v4454_v59  ;;  %1959 = vrot.lane.b32.xlu2 %v4444_v14, %s3279_s16 }
 0x282   : > { %2450 = vst.msk [vmem:[#allocation3 + $0x50] sm:$0xff] %vm2439_vm15, %v2364_v55 }
 0x283   : > { %v1517_v8 = vpop.permute.xlu2 %1516 }
 0x284   : > { %1600 = vst.msk [vmem:[#allocation3 + $0x68] sm:$0xff] %vm1586_vm10, %v1517_v8  ;;  %1526 = vrot.lane.b32.xlu0 %v4161_v42, %s3277_s14  ;;  %2168 = vrot.lane.b32.xlu1 %v2098_v1, %s3280_s17 }
 0x286   : > { %v1515_v30 = vpop.permute.xlu0 %1514 }
 0x287   : > { %1599 = vst.msk [vmem:[#allocation3 + $0x60] sm:$0xff] %vm1586_vm10, %v1515_v30  ;;  %v1513_v59 = vpop.permute.xlu1 %1512  ;;  %v1667_v30 = vrot.slane %v1214_v20, 2 }
 0x288   : > { %1598 = vst.msk [vmem:[#allocation3 + $0x58] sm:$0xff] %vm1586_vm10, %v1513_v59 }
 0x289   : > { %1807 = vst.msk [vmem:[#allocation3 + $0x58] sm:$0xff] %vm1795_vm11, %v4481_v36  ;;  %2393 = vrot.lane.b32.xlu2 %v2327_v38, %s3281_s18  ;;  %v2482_v6 = vld [vmem:[#allocation3 + $0x50] sm:$0xff]  ;;  %v1858_v38 = vld [vmem:[#allocation2 + $0x118] sm:$0x3] }
 0x28a   : > { %2017 = vst.msk [vmem:[#allocation3 + $0x58] sm:$0xff] %vm2005_vm12, %v1932_v62  ;;  %3178 = vmatmul.msk.f32.gmra.mxu1 %vm2511_vm0, %v2482_v6 }
 0x28b   : > { %v4549_v42 = vpop.permute.xlu2 %2160 }
 0x28c   : > { %1542 = vrot.lane.b32.xlu0 %v4471_v9, %s3277_s14  ;;  %2184 = vrot.lane.b32.xlu1 %v2118_v27, %s3280_s17  ;;  %v4566_v9 = vld [vmem:[#allocation2 + $0x168] sm:$0xff]  ;;  %v1668_v27 = vsel %vm975_vm5, %v4060_v13, %v1667_v30 }
 0x28d   : > { %v2119_v43 = vrot.slane %v4566_v9, 1  ;;  %v2328_v2 = vrot.slane %v4566_v9, 2 }
 0x28e   : > { %v2159_v3 = vpop.permute.xlu0 %2158 }
 0x28f   : > { %v2157_v36 = vpop.permute.xlu1 %2156  ;;  %v4589_v56 = vsel %vm765_vm4, %v2119_v43, %v4575_v35  ;;  %v4627_v10 = vsel %vm975_vm5, %v2328_v2, %v4611_v5 }
 0x290   : > { %2242 = vst.msk [vmem:[#allocation3 + $0x58] sm:$0xff] %vm2230_vm13, %v2157_v36  ;;  %v524_v19 = vpop.f32.mrf.mxu3 }
 0x291   : > { %2451 = vst.msk [vmem:[#allocation3 + $0x58] sm:$0xff] %vm2439_vm15, %v2366_v31  ;;  %1735 = vrot.lane.b32.xlu2 %v4073_v21, %s3278_s15  ;;  %v2977_v31 = vld [vmem:[%s3341_s8 + $0x18] sm:$0xff] }
 0x293   : > { %v4560_v22 = vpop.permute.xlu2 %1727 }
 0x294   : > { %2170 = vrot.lane.b32.xlu0 %v4126_v60, %s3280_s17  ;;  %1317 = vrot.lane.b32.xlu1 %v4437_v33, %s3276_s13 }
 0x296   : > { %v2884_v53 = vpop.f32.mrf.mxu2  ;;  %v1726_v39 = vpop.permute.xlu0 %1725 }
 0x297   : > { %v2885_v4 = vadd.f32 %v4479_v29, %v2884_v53  ;;  %1809 = vst.msk [vmem:[#allocation3 + $0x68] sm:$0xff] %vm1795_vm11, %v1726_v39  ;;  %v1724_v21 = vpop.permute.xlu1 %1723  ;;  %v2978_v53 = vld [vmem:[%s3341_s8 + $0x20] sm:$0xff] }
 0x298   : > { %1808 = vst.msk [vmem:[#allocation3 + $0x60] sm:$0xff] %vm1795_vm11, %v1724_v21  ;;  %v2483_v33 = vld [vmem:[#allocation3 + $0x58] sm:$0xff]  ;;  %v527_v1 = vpop.f32.mrf.mxu3  ;;  %v1687_v21 = vrot.slane %v1226_v48, 2 }
 0x299   : > { %v3008_v61 = vadd.f32 %v2976_v15, %v2885_v4  ;;  %2018 = vst.msk [vmem:[#allocation3 + $0x60] sm:$0xff] %vm2005_vm12, %v1934_v32  ;;  %3179 = vmatmul.msk.f32.gmra.mxu1 %vm2511_vm0, %v2483_v33  ;;  %1751 = vrot.lane.b32.xlu2 %v4458_v47, %s3278_s15 }
 0x29a   : > { %2243 = vst.msk [vmem:[#allocation3 + $0x60] sm:$0xff] %vm2230_vm13, %v2159_v3  ;;  %v1870_v3 = vld [vmem:[#allocation2 + $0x178] sm:$0x3] }
 0x29b   : > { %3040 = vst.msk [vmem:[%s4496_s20 + $0x10] sm:$0xff] %vm316_vm1, %v3008_v61  ;;  %v4585_v51 = vpop.permute.xlu2 %2371  ;;  %v2331_v4 = vrot.slane %v1870_v3, 2 }
 0x29c   : > { %2186 = vrot.lane.b32.xlu0 %v4589_v56, %s3280_s17  ;;  %1945 = vrot.lane.b32.xlu1 %v4095_v40, %s3279_s16 }
 0x29d   : > { %v2332_v61 = vsel %vm975_vm5, %v4611_v5, %v2331_v4  ;;  %v1861_v4 = vld [vmem:[#allocation2 + $0x130] sm:$0x3] }
 0x29e   : > { %v2887_v12 = vpop.f32.mrf.mxu2  ;;  %v2370_v47 = vpop.permute.xlu0 %2369 }
 0x29f   : > { %v2888_v50 = vadd.f32 %v4479_v29, %v2887_v12  ;;  %v2368_v16 = vpop.permute.xlu1 %2367  ;;  %v1688_v12 = vsel %vm975_vm5, %v4449_v41, %v1687_v21 }
 0x2a0   : > { %2452 = vst.msk [vmem:[#allocation3 + $0x60] sm:$0xff] %vm2439_vm15, %v2368_v16 }
 0x2a1   : > { %v3009_v63 = vadd.f32 %v2977_v31, %v2888_v50  ;;  %2379 = vrot.lane.b32.xlu2 %v4119_v57, %s3281_s18  ;;  %v2122_v31 = vrot.slane %v1870_v3, 1  ;;  %v2311_v50 = vrot.slane %v1858_v38, 2 }
 0x2a3   : > { %3041 = vst.msk [vmem:[%s4496_s20 + $0x18] sm:$0xff] %vm316_vm1, %v3009_v63  ;;  %v4602_v23 = vpop.permute.xlu2 %1939  ;;  %v2123_v63 = vsel %vm765_vm4, %v4575_v35, %v2122_v31  ;;  %v2312_v20 = vsel %vm975_vm5, %v4113_v49, %v2311_v50 }
 0x2a4   : > { %1319 = vrot.lane.b32.xlu0 %v4444_v14, %s3276_s13  ;;  %1961 = vrot.lane.b32.xlu1 %v4566_v9, %s3279_s16  ;;  %v2650_v40 = vpop.f32.mrf.mxu1  ;;  %v3262_v14 = vld [vmem:[%s5119_s2] ss:$0 sm:$0xff] }
 0x2a5   : > { %v2651_v55 = vadd.f32 %v4254_v0, %v2650_v40  ;;  %v525_v62 = vadd.f32 %v3262_v14, %v524_v19  ;;  %v1459_v0 = vsel %vm765_vm4, %v4149_v24, %v1458_v58  ;;  %v1478_v24 = vrot.slane %v1226_v48, 1  ;;  %v2979_v58 = vld [vmem:[%s3341_s8 + $0x28] sm:$0xff]  ;;  %v1217_v48 = vld [vmem:[#allocation2 + $0x118] sm:$0x3] }
 0x2a6   : > { %v1938_v28 = vpop.permute.xlu0 %1937  ;;  %v528_v59 = vadd.f32 %v3262_v14, %v527_v1 }
 0x2a7   : > { %v2732_v25 = vmax.f32 %v2651_v55, 0.0  ;;  %v1936_v45 = vpop.permute.xlu1 %1935  ;;  %v2484_v32 = vld [vmem:[#allocation3 + $0x60] sm:$0xff]  ;;  %v560_v18 = vmax.f32 %v525_v62, 0.0  ;;  %v1479_v34 = vsel %vm765_vm4, %v4466_v52, %v1478_v24  ;;  %v2102_v52 = vrot.slane %v1858_v38, 1  ;;  %v1229_v38 = vld [vmem:[#allocation2 + $0x178] sm:$0x3] }
 0x2a8   : > { %2019 = vst.msk [vmem:[#allocation3 + $0x68] sm:$0xff] %vm2005_vm12, %v1936_v45  ;;  %3180 = vmatmul.msk.f32.gmra.mxu1 %vm2511_vm0, %v2484_v32  ;;  %v561_v6 = vmax.f32 %v528_v59, 0.0  ;;  %v4693_v45 = vld [vmem:[#allocation2 + $0x128] sm:$0xff]  ;;  %v1692_v31 = vrot.slane %v1229_v38, 2 }
 0x2a9   : > { %2244 = vst.msk [vmem:[#allocation3 + $0x68] sm:$0xff] %vm2230_vm13, %v4549_v42  ;;  %1528 = vrot.lane.b32.xlu2 %v1459_v0, %s3277_s14  ;;  %3208 = vmatmul.msk.f32.gmra.mxu2 %vm562_vm2, %v2732_v25  ;;  %v2103_v13 = vsel %vm765_vm4, %v4108_v46, %v2102_v52  ;;  %v4711_v1 = vrot.slane %v4693_v45, 1  ;;  %v1483_v52 = vrot.slane %v1229_v38, 1 }
 0x2aa   : > { %2453 = vst.msk [vmem:[#allocation3 + $0x68] sm:$0xff] %vm2439_vm15, %v2370_v47 }
 0x2ab   : > { %v1523_v7 = vpop.permute.xlu2 %1522  ;;  %635 = vst.msk [vmem:[#allocation2 + $0x181] sm:$0xff] %vm562_vm2, %v560_v18 }
 0x2ac   : > { %1603 = vst.msk [vmem:[#allocation3 + $0x80] sm:$0xff] %vm1586_vm10, %v1523_v7  ;;  %1947 = vrot.lane.b32.xlu0 %v4102_v44, %s3279_s16  ;;  %2395 = vrot.lane.b32.xlu1 %v4627_v10, %s3281_s18 }
 0x2ad   : > { %636 = vst.msk [vmem:[#allocation2 + $0x189] sm:$0xff] %vm562_vm2, %v561_v6 }
 0x2ae   : > { %v1521_v8 = vpop.permute.xlu0 %1520 }
 0x2af   : > { %1602 = vst.msk [vmem:[#allocation3 + $0x78] sm:$0xff] %vm1586_vm10, %v1521_v8  ;;  %v1519_v54 = vpop.permute.xlu1 %1518  ;;  %v1463_v8 = vrot.slane %v1217_v48, 1 }
 0x2b0   : > { %1601 = vst.msk [vmem:[#allocation3 + $0x70] sm:$0xff] %vm1586_vm10, %v1519_v54 }
 0x2b1   : > { %1810 = vst.msk [vmem:[#allocation3 + $0x70] sm:$0xff] %vm1795_vm11, %v4560_v22  ;;  %1544 = vrot.lane.b32.xlu2 %v1479_v34, %s3277_s14  ;;  %v2485_v44 = vld [vmem:[#allocation3 + $0x68] sm:$0xff]  ;;  %v1464_v30 = vsel %vm765_vm4, %v4108_v46, %v1463_v8 }
 0x2b2   : > { %2020 = vst.msk [vmem:[#allocation3 + $0x70] sm:$0xff] %vm2005_vm12, %v1938_v28  ;;  %3181 = vmatmul.msk.f32.gmra.mxu1 %vm2511_vm0, %v2485_v44  ;;  %v4708_v7 = vld [vmem:[#allocation2 + $0x180] sm:$0xff]  ;;  %v1862_v8 = vld [vmem:[#allocation2 + $0x138] sm:$0xff] }
 0x2b3   : > { %v1539_v42 = vpop.permute.xlu2 %1538  ;;  %v2333_v34 = vrot.slane %v4708_v7, 2 }
 0x2b4   : > { %1963 = vrot.lane.b32.xlu0 %v4568_v37, %s3279_s16  ;;  %1737 = vrot.lane.b32.xlu1 %v1668_v27, %s3278_s15  ;;  %v4717_v54 = vld [vmem:[#allocation2 + $0x188] sm:$0xff] }
 0x2b5   : > { %v4729_v44 = vrot.slane %v4717_v54, 2  ;;  %v4733_v46 = vrot.slane %v4717_v54, 1 }
 0x2b6   : > { %v2165_v36 = vpop.permute.xlu0 %2164  ;;  %v2890_v22 = vpop.f32.mrf.mxu2 }
 0x2b7   : > { %v2163_v15 = vpop.permute.xlu1 %2162  ;;  %v2891_v39 = vadd.f32 %v4479_v29, %v2890_v22  ;;  %v4738_v3 = vsel %vm975_vm5, %v2333_v34, %v4729_v44 }
 0x2b8   : > { %2245 = vst.msk [vmem:[#allocation3 + $0x70] sm:$0xff] %vm2230_vm13, %v2163_v15 }
 0x2b9   : > { %2454 = vst.msk [vmem:[#allocation3 + $0x70] sm:$0xff] %vm2439_vm15, %v4585_v51  ;;  %v3010_v43 = vadd.f32 %v2978_v53, %v2891_v39  ;;  %2172 = vrot.lane.b32.xlu2 %v2103_v13, %s3280_s17  ;;  %v1484_v53 = vsel %vm765_vm4, %v4575_v35, %v1483_v52  ;;  %v1672_v39 = vrot.slane %v1217_v48, 2  ;;  %v4824_v52 = vld [vmem:[#allocation2 + $0x1a0] sm:$0xff] }
 0x2bb   : > { %3042 = vst.msk [vmem:[%s4496_s20 + $0x20] sm:$0xff] %vm316_vm1, %v3010_v43  ;;  %v2167_v33 = vpop.permute.xlu2 %2166  ;;  %v1673_v35 = vsel %vm975_vm5, %v4113_v49, %v1672_v39  ;;  %v4769_v49 = vld [vmem:[%s5121_s4] ss:$0 sm:$0xff] }
 0x2bc   : > { %2397 = vrot.lane.b32.xlu0 %v2332_v61, %s3281_s18  ;;  %1753 = vrot.lane.b32.xlu1 %v1688_v12, %s3278_s15 }
 0x2be   : > { %v1314_v47 = vpop.permute.xlu0 %1313 }
 0x2bf   : > { %1386 = vst.msk [vmem:[#allocation3 + $0xc0] sm:$0xff] %vm1361_vm9, %v1314_v47  ;;  %v1730_v51 = vpop.permute.xlu1 %1729  ;;  %v1873_v47 = vld [vmem:[#allocation2 + $0x190] sm:$0x3] }
 0x2c0   : > { %1611 = vst.msk [vmem:[#allocation3 + $0xc0] sm:$0xff] %vm1586_vm10, %v1539_v42  ;;  %v2486_v16 = vld [vmem:[#allocation3 + $0x70] sm:$0xff]  ;;  %v2124_v42 = vrot.slane %v4708_v7, 1  ;;  %v2336_v48 = vrot.slane %v1873_v47, 2 }
 0x2c1   : > { %1811 = vst.msk [vmem:[#allocation3 + $0x78] sm:$0xff] %vm1795_vm11, %v1730_v51  ;;  %3182 = vmatmul.msk.f32.gmra.mxu1 %vm2511_vm0, %v2486_v16  ;;  %2188 = vrot.lane.b32.xlu2 %v2123_v63, %s3280_s17 }
 0x2c2   : > { %2021 = vst.msk [vmem:[#allocation3 + $0x78] sm:$0xff] %vm2005_vm12, %v4602_v23  ;;  %v4749_v15 = vsel %vm765_vm4, %v2124_v42, %v4733_v46  ;;  %v4821_v42 = vld [vmem:[#allocation2 + $0x140] sm:$0xff] }
 0x2c3   : > { %2246 = vst.msk [vmem:[#allocation3 + $0x78] sm:$0xff] %vm2230_vm13, %v2165_v36  ;;  %v2183_v41 = vpop.permute.xlu2 %2182 }
 0x2c4   : > { %1739 = vrot.lane.b32.xlu0 %v4119_v57, %s3278_s15  ;;  %2381 = vrot.lane.b32.xlu1 %v2312_v20, %s3281_s18  ;;  %v1859_v57 = vld [vmem:[#allocation2 + $0x120] sm:$0xff]  ;;  %v1693_v20 = vsel %vm975_vm5, %v4611_v5, %v1692_v31  ;;  %v2316_v5 = vrot.slane %v1861_v4, 2 }
 0x2c5   : > { %v2313_v62 = vrot.slane %v1859_v57, 2 }
 0x2c6   : > { %v2893_v40 = vpop.f32.mrf.mxu2  ;;  %v1942_v55 = vpop.permute.xlu0 %1941 }
 0x2c7   : > { %v2894_v28 = vadd.f32 %v4479_v29, %v2893_v40  ;;  %v2374_v19 = vpop.permute.xlu1 %2373 }
 0x2c8   : > { %2455 = vst.msk [vmem:[#allocation3 + $0x78] sm:$0xff] %vm2439_vm15, %v2374_v19 }
 0x2c9   : > { %v3011_v23 = vadd.f32 %v2979_v58, %v2894_v28  ;;  %1321 = vrot.lane.b32.xlu2 %v4566_v9, %s3276_s13  ;;  %v4696_v9 = vrot.slane %v4693_v45, 2  ;;  %v2980_v28 = vld [vmem:[%s3341_s8 + $0x30] sm:$0xff] }
 0x2cb   : > { %3043 = vst.msk [vmem:[%s4496_s20 + $0x28] sm:$0xff] %vm316_vm1, %v3011_v23  ;;  %v1316_v25 = vpop.permute.xlu2 %1315  ;;  %v2315_v0 = vsel %vm975_vm5, %v2313_v62, %v4696_v9 }
 0x2cc   : > { %1387 = vst.msk [vmem:[#allocation3 + $0xc8] sm:$0xff] %vm1361_vm9, %v1316_v25  ;;  %1755 = vrot.lane.b32.xlu0 %v4627_v10, %s3278_s15  ;;  %1530 = vrot.lane.b32.xlu1 %v4126_v60, %s3277_s14  ;;  %v2104_v10 = vrot.slane %v1859_v57, 1 }
 0x2ce   : > { %v1958_v32 = vpop.permute.xlu0 %1957  ;;  %v2106_v59 = vsel %vm765_vm4, %v2104_v10, %v4711_v1  ;;  %v1467_v10 = vsel %vm765_vm4, %v826_v26, %v4711_v1 }
 0x2cf   : > { %v1732_v2 = vpop.permute.xlu1 %1731  ;;  %v2487_v14 = vld [vmem:[#allocation3 + $0x78] sm:$0xff] }
 0x2d0   : > { %1812 = vst.msk [vmem:[#allocation3 + $0x80] sm:$0xff] %vm1795_vm11, %v1732_v2  ;;  %3183 = vmatmul.msk.f32.gmra.mxu1 %vm2511_vm0, %v2487_v14 }
 0x2d1   : > { %2022 = vst.msk [vmem:[#allocation3 + $0x80] sm:$0xff] %vm2005_vm12, %v1942_v55  ;;  %1949 = vrot.lane.b32.xlu2 %v1859_v57, %s3279_s16 }
 0x2d2   : > { %2247 = vst.msk [vmem:[#allocation3 + $0x80] sm:$0xff] %vm2230_vm13, %v2167_v33  ;;  %v2107_v33 = vrot.slane %v1861_v4, 1  ;;  %v2339_v4 = vrot.slane %v4824_v52, 2 }
 0x2d3   : > { %v1944_v60 = vpop.permute.xlu2 %1943 }
 0x2d4   : > { %2383 = vrot.lane.b32.xlu0 %v2315_v0, %s3281_s18  ;;  %1546 = vrot.lane.b32.xlu1 %v4589_v56, %s3277_s14  ;;  %v2108_v12 = vsel %vm765_vm4, %v4711_v1, %v2107_v33  ;;  %v2130_v33 = vrot.slane %v4824_v52, 1 }
 0x2d6   : > { %v2392_v18 = vpop.permute.xlu0 %2391 }
 0x2d7   : > { %v1748_v24 = vpop.permute.xlu1 %1747 }
 0x2d8   : > { %1820 = vst.msk [vmem:[#allocation3 + $0xc0] sm:$0xff] %vm1795_vm11, %v1748_v24 }
 0x2d9   : > { %2030 = vst.msk [vmem:[#allocation3 + $0xc0] sm:$0xff] %vm2005_vm12, %v1958_v32  ;;  %1965 = vrot.lane.b32.xlu2 %v4708_v7, %s3279_s16  ;;  %v2317_v32 = vsel %vm975_vm5, %v4696_v9, %v2316_v5 }
 0x2da   : > { %2255 = vst.msk [vmem:[#allocation3 + $0xc0] sm:$0xff] %vm2230_vm13, %v2183_v41  ;;  %v2127_v41 = vrot.slane %v1873_v47, 1 }
 0x2db   : > { %2464 = vst.msk [vmem:[#allocation3 + $0xc0] sm:$0xff] %vm2439_vm15, %v2392_v18  ;;  %v1960_v56 = vpop.permute.xlu2 %1959 }
 0x2dc   : > { %1532 = vrot.lane.b32.xlu0 %v1464_v30, %s3277_s14  ;;  %2174 = vrot.lane.b32.xlu1 %v2106_v59, %s3280_s17  ;;  %v2128_v58 = vsel %vm765_vm4, %v4733_v46, %v2127_v41  ;;  %v1220_v41 = vld [vmem:[#allocation2 + $0x130] sm:$0x3] }
 0x2de   : > { %v1734_v6 = vpop.permute.xlu0 %1733 }
 0x2df   : > { %v2376_v27 = vpop.permute.xlu1 %2375 }
 0x2e0   : > { %2456 = vst.msk [vmem:[#allocation3 + $0x80] sm:$0xff] %vm2439_vm15, %v2376_v27 }
 0x2e1   : > { %2399 = vrot.lane.b32.xlu2 %v4738_v3, %s3281_s18 }
 0x2e2   : > { %v2496_v36 = vld [vmem:[#allocation3 + $0xc0] sm:$0xff] }
 0x2e3   : > { %3192 = vmatmul.msk.f32.vlgmr.msrb.gmra.mxu3 %vm2511_vm0, %v2496_v36  ;;  %v4743_v22 = vpop.permute.xlu2 %2393 }
 0x2e4   : > { %1548 = vrot.lane.b32.xlu0 %v1484_v53, %s3277_s14  ;;  %2190 = vrot.lane.b32.xlu1 %v4749_v15, %s3280_s17  ;;  %v1676_v53 = vsel %vm975_vm5, %v1674_v11, %v4696_v9 }
 0x2e6   : > { %v1750_v21 = vpop.permute.xlu0 %1749 }
 0x2e7   : > { %v1525_v13 = vpop.permute.xlu1 %1524  ;;  %v2488_v43 = vld [vmem:[#allocation3 + $0x80] sm:$0xff] }
 0x2e8   : > { %1604 = vst.msk [vmem:[#allocation3 + $0x88] sm:$0xff] %vm1586_vm10, %v1525_v13  ;;  %3184 = vmatmul.msk.f32.gmra.mxu1 %vm2511_vm0, %v2488_v43 }
 0x2e9   : > { %1813 = vst.msk [vmem:[#allocation3 + $0x88] sm:$0xff] %vm1795_vm11, %v1734_v6  ;;  %1741 = vrot.lane.b32.xlu2 %v1673_v35, %s3278_s15  ;;  %v1874_v6 = vld [vmem:[#allocation2 + $0x198] sm:$0xff] }
 0x2ea   : > { %2023 = vst.msk [vmem:[#allocation3 + $0x88] sm:$0xff] %vm2005_vm12, %v1944_v60  ;;  %v2338_v39 = vrot.slane %v1874_v6, 2  ;;  %v2129_v11 = vrot.slane %v1874_v6, 1 }
 0x2eb   : > { %v1736_v61 = vpop.permute.xlu2 %1735 }
 0x2ec   : > { %2176 = vrot.lane.b32.xlu0 %v2108_v12, %s3280_s17  ;;  %1323 = vrot.lane.b32.xlu1 %v4568_v37, %s3276_s13  ;;  %v2340_v17 = vsel %vm975_vm5, %v2338_v39, %v2339_v4  ;;  %v2131_v31 = vsel %vm765_vm4, %v2129_v11, %v2130_v33 }
 0x2ee   : > { %v2653_v51 = vpop.f32.mrf.mxu1  ;;  %v2378_v50 = vpop.permute.xlu0 %2377 }
 0x2ef   : > { %v2654_v16 = vadd.f32 %v4769_v49, %v2653_v51  ;;  %v1541_v63 = vpop.permute.xlu1 %1540 }
 0x2f0   : > { %1612 = vst.msk [vmem:[#allocation3 + $0xc8] sm:$0xff] %vm1586_vm10, %v1541_v63 }
 0x2f1   : > { %v2733_v37 = vmax.f32 %v2654_v16, 0.0  ;;  %1821 = vst.msk [vmem:[#allocation3 + $0xc8] sm:$0xff] %vm1795_vm11, %v1750_v21  ;;  %1757 = vrot.lane.b32.xlu2 %v1693_v20, %s3278_s15  ;;  %v2319_v16 = vrot.slane %v4821_v42, 2 }
 0x2f2   : > { %2031 = vst.msk [vmem:[#allocation3 + $0xc8] sm:$0xff] %vm2005_vm12, %v1960_v56  ;;  %v2337_v56 = vsel %vm975_vm5, %v4729_v44, %v2336_v48 }
 0x2f3   : > { %3209 = vmatmul.msk.f32.gmra.mxu2 %vm562_vm2, %v2733_v37  ;;  %v1752_v40 = vpop.permute.xlu2 %1751 }
 0x2f4   : > { %2192 = vrot.lane.b32.xlu0 %v2128_v58, %s3280_s17  ;;  %1951 = vrot.lane.b32.xlu1 %v4693_v45, %s3279_s16 }
 0x2f5   : > { %v2896_v55 = vpop.f32.mrf.mxu2 }
 0x2f6   : > { %v2897_v19 = vadd.f32 %v4479_v29, %v2896_v55  ;;  %v1527_v23 = vpop.permute.xlu0 %1526 }
 0x2f7   : > { %1605 = vst.msk [vmem:[#allocation3 + $0x90] sm:$0xff] %vm1586_vm10, %v1527_v23  ;;  %v2169_v25 = vpop.permute.xlu1 %2168 }
 0x2f8   : > { %v3012_v57 = vadd.f32 %v2980_v28, %v2897_v19  ;;  %1814 = vst.msk [vmem:[#allocation3 + $0x90] sm:$0xff] %vm1795_vm11, %v1736_v61  ;;  %v1232_v28 = vld [vmem:[#allocation2 + $0x190] sm:$0x3] }
 0x2f9   : > { %2248 = vst.msk [vmem:[#allocation3 + $0x88] sm:$0xff] %vm2230_vm13, %v2169_v25  ;;  %2385 = vrot.lane.b32.xlu2 %v2317_v32, %s3281_s18 }
 0x2fa   : > { %3044 = vst.msk [vmem:[%s4496_s20 + $0x30] sm:$0xff] %vm316_vm1, %v3012_v57 }
 0x2fb   : > { %2457 = vst.msk [vmem:[#allocation3 + $0x88] sm:$0xff] %vm2439_vm15, %v2378_v50  ;;  %v2380_v2 = vpop.permute.xlu2 %2379  ;;  %v2318_v50 = vrot.slane %v1862_v8, 2 }
 0x2fc   : > { %1325 = vrot.lane.b32.xlu0 %v4708_v7, %s3276_s13  ;;  %1967 = vrot.lane.b32.xlu1 %v4717_v54, %s3279_s16 }
 0x2fd   : > { %v2656_v14 = vpop.f32.mrf.mxu1  ;;  %v2320_v37 = vsel %vm975_vm5, %v2318_v50, %v2319_v16 }
 0x2fe   : > { %v2657_v62 = vadd.f32 %v4769_v49, %v2656_v14  ;;  %v1543_v60 = vpop.permute.xlu0 %1542 }
 0x2ff   : > { %v2185_v0 = vpop.permute.xlu1 %2184 }
 0x300   : > { %v2734_v18 = vmax.f32 %v2657_v62, 0.0  ;;  %2256 = vst.msk [vmem:[#allocation3 + $0xc8] sm:$0xff] %vm2230_vm13, %v2185_v0  ;;  %v1677_v62 = vrot.slane %v1220_v41, 2  ;;  %v1864_v0 = vld [vmem:[#allocation2 + $0x148] sm:$0x3] }
 0x301   : > { %2465 = vst.msk [vmem:[#allocation3 + $0xc8] sm:$0xff] %vm2439_vm15, %v4743_v22  ;;  %1534 = vrot.lane.b32.xlu2 %v1467_v10, %s3277_s14  ;;  %v2109_v22 = vrot.slane %v1862_v8, 1  ;;  %v2981_v10 = vld [vmem:[%s3341_s8 + $0x38] sm:$0xff]  ;;  %v2321_v39 = vrot.slane %v1864_v0, 2 }
 0x302   : > { %v2489_v7 = vld [vmem:[#allocation3 + $0x88] sm:$0xff]  ;;  %3210 = vmatmul.msk.f32.gmra.mxu2 %vm562_vm2, %v2734_v18  ;;  %v1678_v48 = vsel %vm975_vm5, %v4696_v9, %v1677_v62  ;;  %v2982_v62 = vld [vmem:[%s3341_s8 + $0x40] sm:$0xff] }
 0x303   : > { %3185 = vmatmul.msk.f32.gmra.mxu1 %vm2511_vm0, %v2489_v7  ;;  %v1529_v24 = vpop.permute.xlu2 %1528 }
 0x304   : > { %1606 = vst.msk [vmem:[#allocation3 + $0x98] sm:$0xff] %vm1586_vm10, %v1529_v24  ;;  %1953 = vrot.lane.b32.xlu0 %v1862_v8, %s3279_s16  ;;  %2401 = vrot.lane.b32.xlu1 %v2337_v56, %s3281_s18  ;;  %v2112_v8 = vrot.slane %v1864_v0, 1 }
 0x306   : > { %v2171_v26 = vpop.permute.xlu0 %2170 }
 0x307   : > { %v1318_v30 = vpop.permute.xlu1 %1317  ;;  %v2659_v59 = vpop.f32.mrf.mxu1 }
 0x308   : > { %1388 = vst.msk [vmem:[#allocation3 + $0xd0] sm:$0xff] %vm1361_vm9, %v1318_v30  ;;  %v2660_v34 = vadd.f32 %v4769_v49, %v2659_v59  ;;  %v2497_v38 = vld [vmem:[#allocation3 + $0xc8] sm:$0xff] }
 0x309   : > { %1613 = vst.msk [vmem:[#allocation3 + $0xd0] sm:$0xff] %vm1586_vm10, %v1543_v60  ;;  %3193 = vmatmul.msk.f32.gmra.mxu3 %vm2511_vm0, %v2497_v38  ;;  %1550 = vrot.lane.b32.xlu2 %v4749_v15, %s3277_s14  ;;  %v2110_v15 = vrot.slane %v4821_v42, 1 }
 0x30a   : > { %1822 = vst.msk [vmem:[#allocation3 + $0xd0] sm:$0xff] %vm1795_vm11, %v1752_v40  ;;  %v2735_v27 = vmax.f32 %v2660_v34, 0.0  ;;  %v1468_v40 = vrot.slane %v1220_v41, 1  ;;  %v1697_v34 = vrot.slane %v1232_v28, 2 }
 0x30b   : > { %v1545_v36 = vpop.permute.xlu2 %1544  ;;  %v2111_v43 = vsel %vm765_vm4, %v2109_v22, %v2110_v15  ;;  %v2113_v59 = vsel %vm765_vm4, %v2110_v15, %v2112_v8 }
 0x30c   : > { %3211 = vmatmul.msk.f32.gmra.mxu2 %vm562_vm2, %v2735_v27  ;;  %1969 = vrot.lane.b32.xlu0 %v1874_v6, %s3279_s16  ;;  %v1469_v55 = vsel %vm765_vm4, %v4711_v1, %v1468_v40 }
 0x30d   : > { %1743 = vrot.lane.b32.xlu1 %v1676_v53, %s3278_s15 }
 0x30e   : > { %v2187_v21 = vpop.permute.xlu0 %2186 }
 0x30f   : > { %v1946_v13 = vpop.permute.xlu1 %1945 }
 0x310   : > { %2024 = vst.msk [vmem:[#allocation3 + $0x90] sm:$0xff] %vm2005_vm12, %v1946_v13 }
 0x311   : > { %2249 = vst.msk [vmem:[#allocation3 + $0x90] sm:$0xff] %vm2230_vm13, %v2171_v26  ;;  %2178 = vrot.lane.b32.xlu2 %v2111_v43, %s3280_s17 }
 0x312   : > { %2458 = vst.msk [vmem:[#allocation3 + $0x90] sm:$0xff] %vm2439_vm15, %v2380_v2 }
 0x313   : > { %v2173_v35 = vpop.permute.xlu2 %2172 }
 0x314   : > { %2403 = vrot.lane.b32.xlu0 %v2340_v17, %s3281_s18 }
 0x315   : > { %1759 = vrot.lane.b32.xlu1 %v4738_v3, %s3278_s15 }
 0x316   : > { %v2662_v61 = vpop.f32.mrf.mxu1  ;;  %v1320_v12 = vpop.permute.xlu0 %1319 }
 0x317   : > { %v2663_v47 = vadd.f32 %v4769_v49, %v2662_v61  ;;  %1389 = vst.msk [vmem:[#allocation3 + $0xd8] sm:$0xff] %vm1361_vm9, %v1320_v12  ;;  %v1962_v51 = vpop.permute.xlu1 %1961 }
 0x318   : > { %1614 = vst.msk [vmem:[#allocation3 + $0xd8] sm:$0xff] %vm1586_vm10, %v1545_v36  ;;  %v1698_v36 = vsel %vm975_vm5, %v4729_v44, %v1697_v34  ;;  %v2322_v44 = vsel %vm975_vm5, %v2319_v16, %v2321_v39 }
 0x319   : > { %v2736_v63 = vmax.f32 %v2663_v47, 0.0  ;;  %2032 = vst.msk [vmem:[#allocation3 + $0xd0] sm:$0xff] %vm2005_vm12, %v1962_v51  ;;  %2194 = vrot.lane.b32.xlu2 %v2131_v31, %s3280_s17  ;;  %v2490_v3 = vld [vmem:[#allocation3 + $0x90] sm:$0xff] }
 0x31a   : > { %2257 = vst.msk [vmem:[#allocation3 + $0xd0] sm:$0xff] %vm2230_vm13, %v2187_v21  ;;  %3186 = vmatmul.msk.f32.gmra.mxu1 %vm2511_vm0, %v2490_v3 }
 0x31b   : > { %3212 = vmatmul.msk.f32.gmra.mxu2 %vm562_vm2, %v2736_v63  ;;  %v2189_v20 = vpop.permute.xlu2 %2188 }
 0x31c   : > { %1327 = vrot.lane.b32.xlu0 %v4717_v54, %s3276_s13  ;;  %v1488_v54 = vrot.slane %v1232_v28, 1 }
 0x31d   : > { %2387 = vrot.lane.b32.xlu1 %v2320_v37, %s3281_s18 }
 0x31e   : > { %v1948_v58 = vpop.permute.xlu0 %1947  ;;  %v1489_v14 = vsel %vm765_vm4, %v4733_v46, %v1488_v54 }
 0x31f   : > { %v2396_v5 = vpop.permute.xlu1 %2395 }
 0x320   : > { %2466 = vst.msk [vmem:[#allocation3 + $0xd0] sm:$0xff] %vm2439_vm15, %v2396_v5 }
 0x321   : > { %1536 = vrot.lane.b32.xlu2 %v1469_v55, %s3277_s14 }
 0x323   : > { %v1322_v19 = vpop.permute.xlu2 %1321 }
 0x324   : > { %1390 = vst.msk [vmem:[#allocation3 + $0xe0] sm:$0xff] %vm1361_vm9, %v1322_v19  ;;  %1955 = vrot.lane.b32.xlu0 %v4821_v42, %s3279_s16 }
 0x325   : > { %1311 = vrot.lane.b32.xlu1 %v4693_v45, %s3276_s13  ;;  %v2665_v23 = vpop.f32.mrf.mxu1  ;;  %v1876_v45 = vld [vmem:[#allocation2 + $0x1a8] sm:$0x3] }
 0x326   : > { %v2666_v25 = vadd.f32 %v4769_v49, %v2665_v23  ;;  %v1964_v57 = vpop.permute.xlu0 %1963  ;;  %v2341_v7 = vrot.slane %v1876_v45, 2  ;;  %v2132_v6 = vrot.slane %v1876_v45, 1 }
 0x327   : > { %v1738_v32 = vpop.permute.xlu1 %1737  ;;  %v2498_v1 = vld [vmem:[#allocation3 + $0xd0] sm:$0xff] }
 0x328   : > { %v2737_v2 = vmax.f32 %v2666_v25, 0.0  ;;  %1815 = vst.msk [vmem:[#allocation3 + $0x98] sm:$0xff] %vm1795_vm11, %v1738_v32  ;;  %3194 = vmatmul.msk.f32.gmra.mxu3 %vm2511_vm0, %v2498_v1  ;;  %v2133_v53 = vsel %vm765_vm4, %v2130_v33, %v2132_v6 }
 0x329   : > { %2025 = vst.msk [vmem:[#allocation3 + $0x98] sm:$0xff] %vm2005_vm12, %v1948_v58  ;;  %1552 = vrot.lane.b32.xlu2 %v1489_v14, %s3277_s14 }
 0x32a   : > { %2250 = vst.msk [vmem:[#allocation3 + $0x98] sm:$0xff] %vm2230_vm13, %v2173_v35  ;;  %3213 = vmatmul.msk.f32.gmra.mxu2 %vm562_vm2, %v2737_v2 }
 0x32b   : > { %v1950_v60 = vpop.permute.xlu2 %1949 }
 0x32c   : > { %v2899_v18 = vpop.f32.mrf.mxu2  ;;  %1971 = vrot.lane.b32.xlu0 %v4824_v52, %s3279_s16 }
 0x32d   : > { %1745 = vrot.lane.b32.xlu1 %v1678_v48, %s3278_s15  ;;  %v2900_v46 = vadd.f32 %v4479_v29, %v2899_v18  ;;  %v2342_v29 = vsel %vm975_vm5, %v2339_v4, %v2341_v7 }
 0x32e   : > { %v2398_v24 = vpop.permute.xlu0 %2397 }
 0x32f   : > { %v3013_v56 = vadd.f32 %v2981_v10, %v2900_v46  ;;  %v1754_v26 = vpop.permute.xlu1 %1753  ;;  %v2668_v30 = vpop.f32.mrf.mxu1 }
 0x330   : > { %1823 = vst.msk [vmem:[#allocation3 + $0xd8] sm:$0xff] %vm1795_vm11, %v1754_v26  ;;  %v2669_v9 = vadd.f32 %v4769_v49, %v2668_v30 }
 0x331   : > { %3045 = vst.msk [vmem:[%s4496_s20 + $0x38] sm:$0xff] %vm316_vm1, %v3013_v56  ;;  %2180 = vrot.lane.b32.xlu2 %v2113_v59, %s3280_s17  ;;  %v2983_v59 = vld [vmem:[%s3341_s8 + $0x48] sm:$0xff] }
 0x332   : > { %2033 = vst.msk [vmem:[#allocation3 + $0xd8] sm:$0xff] %vm2005_vm12, %v1964_v57  ;;  %v2738_v38 = vmax.f32 %v2669_v9, 0.0 }
 0x333   : > { %2258 = vst.msk [vmem:[#allocation3 + $0xd8] sm:$0xff] %vm2230_vm13, %v2189_v20  ;;  %v1966_v27 = vpop.permute.xlu2 %1965 }
 0x334   : > { %2467 = vst.msk [vmem:[#allocation3 + $0xd8] sm:$0xff] %vm2439_vm15, %v2398_v24  ;;  %3214 = vmatmul.msk.f32.gmra.mxu2 %vm562_vm2, %v2738_v38  ;;  %2405 = vrot.lane.b32.xlu0 %v2342_v29, %s3281_s18 }
 0x335   : > { %1761 = vrot.lane.b32.xlu1 %v1698_v36, %s3278_s15 }
 0x336   : > { %v1740_v22 = vpop.permute.xlu0 %1739 }
 0x337   : > { %v2382_v15 = vpop.permute.xlu1 %2381 }
 0x338   : > { %2459 = vst.msk [vmem:[#allocation3 + $0x98] sm:$0xff] %vm2439_vm15, %v2382_v15  ;;  %v2984_v15 = vld [vmem:[%s3341_s8 + $0x50] sm:$0xff] }
 0x339   : > { %2196 = vrot.lane.b32.xlu2 %v2133_v53, %s3280_s17 }
 0x33b   : > { %v2499_v4 = vld [vmem:[#allocation3 + $0xd8] sm:$0xff]  ;;  %v2400_v21 = vpop.permute.xlu2 %2399 }
 0x33c   : > { %3195 = vmatmul.msk.f32.gmra.mxu3 %vm2511_vm0, %v2499_v4 }
 0x33d   : > { %2389 = vrot.lane.b32.xlu1 %v2322_v44, %s3281_s18 }
 0x33e   : > { %v2671_v13 = vpop.f32.mrf.mxu1  ;;  %v1756_v52 = vpop.permute.xlu0 %1755 }
 0x33f   : > { %v2672_v43 = vadd.f32 %v4769_v49, %v2671_v13  ;;  %v1531_v17 = vpop.permute.xlu1 %1530  ;;  %v2491_v11 = vld [vmem:[#allocation3 + $0x98] sm:$0xff] }
 0x340   : > { %1607 = vst.msk [vmem:[#allocation3 + $0xa0] sm:$0xff] %vm1586_vm10, %v1531_v17  ;;  %3187 = vmatmul.msk.f32.gmra.mxu1 %vm2511_vm0, %v2491_v11 }
 0x341   : > { %v2739_v33 = vmax.f32 %v2672_v43, 0.0  ;;  %1816 = vst.msk [vmem:[#allocation3 + $0xa0] sm:$0xff] %vm1795_vm11, %v1740_v22 }
 0x342   : > { %2026 = vst.msk [vmem:[#allocation3 + $0xa0] sm:$0xff] %vm2005_vm12, %v1950_v60  ;;  %v4958_v60 = vld [vmem:[%s5123_s6] ss:$0 sm:$0xff] }
 0x343   : > { %3215 = vmatmul.msk.f32.gmra.mxu2 %vm562_vm2, %v2739_v33  ;;  %v1742_v42 = vpop.permute.xlu2 %1741 }
 0x346   : > { %v2384_v35 = vpop.permute.xlu0 %2383 }
 0x347   : > { %v1547_v61 = vpop.permute.xlu1 %1546 }
 0x348   : > { %1615 = vst.msk [vmem:[#allocation3 + $0xe0] sm:$0xff] %vm1586_vm10, %v1547_v61 }
 0x349   : > { %1824 = vst.msk [vmem:[#allocation3 + $0xe0] sm:$0xff] %vm1795_vm11, %v1756_v52 }
 0x34a   : > { %2034 = vst.msk [vmem:[#allocation3 + $0xe0] sm:$0xff] %vm2005_vm12, %v1966_v27 }
 0x34b   : > { %v1758_v12 = vpop.permute.xlu2 %1757 }
 0x34d   : > { %v2674_v31 = vpop.f32.mrf.mxu1 }
 0x34e   : > { %v2675_v47 = vadd.f32 %v4769_v49, %v2674_v31  ;;  %v1533_v51 = vpop.permute.xlu0 %1532 }
 0x34f   : > { %1608 = vst.msk [vmem:[#allocation3 + $0xa8] sm:$0xff] %vm1586_vm10, %v1533_v51  ;;  %v2175_v50 = vpop.permute.xlu1 %2174 }
 0x350   : > { %v2740_v16 = vmax.f32 %v2675_v47, 0.0  ;;  %1817 = vst.msk [vmem:[#allocation3 + $0xa8] sm:$0xff] %vm1795_vm11, %v1742_v42  ;;  %v2985_v42 = vld [vmem:[%s3341_s8 + $0x58] sm:$0xff] }
 0x351   : > { %2251 = vst.msk [vmem:[#allocation3 + $0xa0] sm:$0xff] %vm2230_vm13, %v2175_v50 }
 0x352   : > { %2460 = vst.msk [vmem:[#allocation3 + $0xa0] sm:$0xff] %vm2439_vm15, %v2384_v35  ;;  %3216 = vmatmul.msk.f32.gmra.mxu2 %vm562_vm2, %v2740_v16 }
 0x353   : > { %v2386_v63 = vpop.permute.xlu2 %2385 }
 0x356   : > { %v1549_v3 = vpop.permute.xlu0 %1548 }
 0x357   : > { %v2191_v41 = vpop.permute.xlu1 %2190 }
 0x358   : > { %2259 = vst.msk [vmem:[#allocation3 + $0xe0] sm:$0xff] %vm2230_vm13, %v2191_v41  ;;  %v2986_v41 = vld [vmem:[%s3341_s8 + $0x60] sm:$0xff] }
 0x359   : > { %2468 = vst.msk [vmem:[#allocation3 + $0xe0] sm:$0xff] %vm2439_vm15, %v2400_v21  ;;  %v2492_v20 = vld [vmem:[#allocation3 + $0xa0] sm:$0xff] }
 0x35a   : > { %3188 = vmatmul.msk.f32.gmra.mxu1 %vm2511_vm0, %v2492_v20 }
 0x35b   : > { %v1535_v37 = vpop.permute.xlu2 %1534 }
 0x35c   : > { %1609 = vst.msk [vmem:[#allocation3 + $0xb0] sm:$0xff] %vm1586_vm10, %v1535_v37 }
 0x35e   : > { %v2177_v40 = vpop.permute.xlu0 %2176 }
 0x35f   : > { %v1324_v58 = vpop.permute.xlu1 %1323 }
 0x360   : > { %1391 = vst.msk [vmem:[#allocation3 + $0xe8] sm:$0xff] %vm1361_vm9, %v1324_v58  ;;  %v2500_v5 = vld [vmem:[#allocation3 + $0xe0] sm:$0xff] }
 0x361   : > { %1616 = vst.msk [vmem:[#allocation3 + $0xe8] sm:$0xff] %vm1586_vm10, %v1549_v3  ;;  %3196 = vmatmul.msk.f32.gmra.mxu3 %vm2511_vm0, %v2500_v5 }
 0x362   : > { %1825 = vst.msk [vmem:[#allocation3 + $0xe8] sm:$0xff] %vm1795_vm11, %v1758_v12 }
 0x363   : > { %v1551_v28 = vpop.permute.xlu2 %1550 }
 0x365   : > { %v2677_v55 = vpop.f32.mrf.mxu1 }
 0x366   : > { %v2678_v19 = vadd.f32 %v4769_v49, %v2677_v55  ;;  %v2193_v54 = vpop.permute.xlu0 %2192 }
 0x367   : > { %v1952_v23 = vpop.permute.xlu1 %1951 }
 0x368   : > { %v2741_v25 = vmax.f32 %v2678_v19, 0.0  ;;  %2027 = vst.msk [vmem:[#allocation3 + $0xa8] sm:$0xff] %vm2005_vm12, %v1952_v23  ;;  %v2987_v19 = vld [vmem:[%s3341_s8 + $0x68] sm:$0xff] }
 0x369   : > { %2252 = vst.msk [vmem:[#allocation3 + $0xa8] sm:$0xff] %vm2230_vm13, %v2177_v40 }
 0x36a   : > { %2461 = vst.msk [vmem:[#allocation3 + $0xa8] sm:$0xff] %vm2439_vm15, %v2386_v63  ;;  %3217 = vmatmul.msk.f32.gmra.mxu2 %vm562_vm2, %v2741_v25  ;;  %v5000_v63 = vpop.f32.mrf.mxu3 }
 0x36b   : > { %v2179_v1 = vpop.permute.xlu2 %2178 }
 0x36e   : > { %v1326_v57 = vpop.permute.xlu0 %1325 }
 0x36f   : > { %1392 = vst.msk [vmem:[#allocation3 + $0xf0] sm:$0xff] %vm1361_vm9, %v1326_v57  ;;  %v1968_v32 = vpop.permute.xlu1 %1967 }
 0x370   : > { %1617 = vst.msk [vmem:[#allocation3 + $0xf0] sm:$0xff] %vm1586_vm10, %v1551_v28 }
 0x371   : > { %2035 = vst.msk [vmem:[#allocation3 + $0xe8] sm:$0xff] %vm2005_vm12, %v1968_v32  ;;  %v2493_v2 = vld [vmem:[#allocation3 + $0xa8] sm:$0xff] }
 0x372   : > { %2260 = vst.msk [vmem:[#allocation3 + $0xe8] sm:$0xff] %vm2230_vm13, %v2193_v54  ;;  %3189 = vmatmul.msk.f32.gmra.mxu1 %vm2511_vm0, %v2493_v2 }
 0x373   : > { %v2195_v10 = vpop.permute.xlu2 %2194 }
 0x376   : > { %v2902_v14 = vpop.f32.mrf.mxu2  ;;  %v1954_v45 = vpop.permute.xlu0 %1953 }
 0x377   : > { %v2903_v0 = vadd.f32 %v4958_v60, %v2902_v14  ;;  %v2402_v48 = vpop.permute.xlu1 %2401 }
 0x378   : > { %2469 = vst.msk [vmem:[#allocation3 + $0xe8] sm:$0xff] %vm2439_vm15, %v2402_v48 }
 0x379   : > { %v3014_v18 = vadd.f32 %v2982_v62, %v2903_v0 }
 0x37b   : > { %3046 = vst.msk [vmem:[%s4496_s20 + $0x40] sm:$0xff] %vm316_vm1, %v3014_v18  ;;  %v1537_v30 = vpop.permute.xlu2 %1536 }
 0x37e   : > { %v1970_v46 = vpop.permute.xlu0 %1969 }
 0x37f   : > { %v1744_v7 = vpop.permute.xlu1 %1743  ;;  %v2501_v24 = vld [vmem:[#allocation3 + $0xe8] sm:$0xff] }
 0x380   : > { %v2680_v8 = vpop.f32.mrf.mxu1  ;;  %1818 = vst.msk [vmem:[#allocation3 + $0xb0] sm:$0xff] %vm1795_vm11, %v1744_v7  ;;  %3197 = vmatmul.msk.f32.gmra.mxu3 %vm2511_vm0, %v2501_v24 }
 0x381   : > { %v2681_v56 = vadd.f32 %v4769_v49, %v2680_v8  ;;  %2028 = vst.msk [vmem:[#allocation3 + $0xb0] sm:$0xff] %vm2005_vm12, %v1954_v45 }
 0x382   : > { %2253 = vst.msk [vmem:[#allocation3 + $0xb0] sm:$0xff] %vm2230_vm13, %v2179_v1 }
 0x383   : > { %v2742_v26 = vmax.f32 %v2681_v56, 0.0  ;;  %v1553_v27 = vpop.permute.xlu2 %1552  ;;  %v2989_v56 = vld [vmem:[%s3341_s8 + $0x78] sm:$0xff] }
 0x385   : > { %3218 = vmatmul.msk.f32.gmra.mxu2 %vm562_vm2, %v2742_v26  ;;  %v2905_v9 = vpop.f32.mrf.mxu2 }
 0x386   : > { %v2906_v34 = vadd.f32 %v4958_v60, %v2905_v9  ;;  %v2404_v29 = vpop.permute.xlu0 %2403 }
 0x387   : > { %v1760_v38 = vpop.permute.xlu1 %1759 }
 0x388   : > { %v3015_v6 = vadd.f32 %v2983_v59, %v2906_v34  ;;  %1826 = vst.msk [vmem:[#allocation3 + $0xf0] sm:$0xff] %vm1795_vm11, %v1760_v38 }
 0x389   : > { %2036 = vst.msk [vmem:[#allocation3 + $0xf0] sm:$0xff] %vm2005_vm12, %v1970_v46 }
 0x38a   : > { %3047 = vst.msk [vmem:[%s4496_s20 + $0x48] sm:$0xff] %vm316_vm1, %v3015_v6 }
 0x38b   : > { %2261 = vst.msk [vmem:[#allocation3 + $0xf0] sm:$0xff] %vm2230_vm13, %v2195_v10  ;;  %v2181_v61 = vpop.permute.xlu2 %2180  ;;  %v2988_v10 = vld [vmem:[%s3341_s8 + $0x70] sm:$0xff] }
 0x38c   : > { %2470 = vst.msk [vmem:[#allocation3 + $0xf0] sm:$0xff] %vm2439_vm15, %v2404_v29  ;;  %v2704_v58 = vpop.f32.mrf.mxu3 }
 0x38d   : > { %v2705_v55 = vadd.f32 %v4769_v49, %v2704_v58 }
 0x38e   : > { %v1328_v36 = vpop.permute.xlu0 %1327 }
 0x38f   : > { %1393 = vst.msk [vmem:[#allocation3 + $0xf8] sm:$0xff] %vm1361_vm9, %v1328_v36  ;;  %v2388_v22 = vpop.permute.xlu1 %2387  ;;  %v2908_v53 = vpop.f32.mrf.mxu2  ;;  %v2750_v25 = vmax.f32 %v2705_v55, 0.0  ;;  %v2990_v36 = vld [vmem:[%s3341_s8 + $0x80] sm:$0xff] }
 0x390   : > { %1618 = vst.msk [vmem:[#allocation3 + $0xf8] sm:$0xff] %vm1586_vm10, %v1553_v27  ;;  %v2909_v39 = vadd.f32 %v4958_v60, %v2908_v53 }
 0x391   : > { %2462 = vst.msk [vmem:[#allocation3 + $0xb0] sm:$0xff] %vm2439_vm15, %v2388_v22 }
 0x392   : > { %v3016_v4 = vadd.f32 %v2984_v15, %v2909_v39 }
 0x393   : > { %v2502_v21 = vld [vmem:[#allocation3 + $0xf0] sm:$0xff]  ;;  %v2197_v50 = vpop.permute.xlu2 %2196 }
 0x394   : > { %3048 = vst.msk [vmem:[%s4496_s20 + $0x50] sm:$0xff] %vm316_vm1, %v3016_v4  ;;  %3198 = vmatmul.msk.f32.gmra.mxu3 %vm2511_vm0, %v2502_v21 }
 0x396   : > { %v1956_v44 = vpop.permute.xlu0 %1955 }
 0x397   : > { %v1312_v13 = vpop.permute.xlu1 %1311  ;;  %v2683_v52 = vpop.f32.mrf.mxu1 }
 0x398   : > { %1385 = vst.msk [vmem:[#allocation3 + $0xb8] sm:$0xff] %vm1361_vm9, %v1312_v13  ;;  %v2684_v43 = vadd.f32 %v4769_v49, %v2683_v52  ;;  %v2494_v17 = vld [vmem:[#allocation3 + $0xb0] sm:$0xff] }
 0x399   : > { %1610 = vst.msk [vmem:[#allocation3 + $0xb8] sm:$0xff] %vm1586_vm10, %v1537_v30  ;;  %3190 = vmatmul.msk.f32.gmra.mxu1 %vm2511_vm0, %v2494_v17 }
 0x39a   : > { %v2743_v11 = vmax.f32 %v2684_v43, 0.0  ;;  %v2991_v43 = vld [vmem:[%s3341_s8 + $0x88] sm:$0xff] }
 0x39c   : > { %3219 = vmatmul.msk.f32.gmra.mxu2 %vm562_vm2, %v2743_v11 }
 0x39e   : > { %v2911_v33 = vpop.f32.mrf.mxu2  ;;  %v1972_v35 = vpop.permute.xlu0 %1971 }
 0x39f   : > { %v2912_v12 = vadd.f32 %v4958_v60, %v2911_v33  ;;  %v1746_v31 = vpop.permute.xlu1 %1745 }
 0x3a0   : > { %1819 = vst.msk [vmem:[#allocation3 + $0xb8] sm:$0xff] %vm1795_vm11, %v1746_v31 }
 0x3a1   : > { %v3017_v47 = vadd.f32 %v2985_v42, %v2912_v12  ;;  %2029 = vst.msk [vmem:[#allocation3 + $0xb8] sm:$0xff] %vm2005_vm12, %v1956_v44 }
 0x3a2   : > { %2254 = vst.msk [vmem:[#allocation3 + $0xb8] sm:$0xff] %vm2230_vm13, %v2181_v61 }
 0x3a3   : > { %3049 = vst.msk [vmem:[%s4496_s20 + $0x58] sm:$0xff] %vm316_vm1, %v3017_v47 }
 0x3a6   : > { %v2406_v16 = vpop.permute.xlu0 %2405 }
 0x3a7   : > { %v1762_v51 = vpop.permute.xlu1 %1761 }
 0x3a8   : > { %1827 = vst.msk [vmem:[#allocation3 + $0xf8] sm:$0xff] %vm1795_vm11, %v1762_v51  ;;  %v2992_v51 = vld [vmem:[%s3341_s8 + $0x90] sm:$0xff] }
 0x3a9   : > { %2037 = vst.msk [vmem:[#allocation3 + $0xf8] sm:$0xff] %vm2005_vm12, %v1972_v35 }
 0x3aa   : > { %2262 = vst.msk [vmem:[#allocation3 + $0xf8] sm:$0xff] %vm2230_vm13, %v2197_v50 }
 0x3ab   : > { %2471 = vst.msk [vmem:[#allocation3 + $0xf8] sm:$0xff] %vm2439_vm15, %v2406_v16  ;;  %v2707_v57 = vpop.f32.mrf.mxu3 }
 0x3ac   : > { %v2708_v1 = vadd.f32 %v4769_v49, %v2707_v57  ;;  %v2993_v57 = vld [vmem:[%s3341_s8 + $0x98] sm:$0xff] }
 0x3ad   : > { %v2914_v3 = vpop.f32.mrf.mxu2 }
 0x3ae   : > { %v2915_v20 = vadd.f32 %v4958_v60, %v2914_v3  ;;  %v2751_v45 = vmax.f32 %v2708_v1, 0.0 }
 0x3af   : > { %v2390_v37 = vpop.permute.xlu1 %2389 }
 0x3b0   : > { %v3018_v40 = vadd.f32 %v2986_v41, %v2915_v20  ;;  %2463 = vst.msk [vmem:[#allocation3 + $0xb8] sm:$0xff] %vm2439_vm15, %v2390_v37 }
 0x3b2   : > { %3050 = vst.msk [vmem:[%s4496_s20 + $0x60] sm:$0xff] %vm316_vm1, %v3018_v40  ;;  %v2503_v5 = vld [vmem:[#allocation3 + $0xf8] sm:$0xff] }
 0x3b3   : > { %3199 = vmatmul.msk.f32.gmra.mxu3 %vm2511_vm0, %v2503_v5  ;;  %v2702_v5 = vadd.f32 %v4769_v49, %v5000_v63  ;;  %v3000_v63 = vld [vmem:[%s3341_s8 + $0xd0] sm:$0xff] }
 0x3b7   : > { %v2917_v28 = vpop.f32.mrf.mxu2  ;;  %v2495_v54 = vld [vmem:[#allocation3 + $0xb8] sm:$0xff] }
 0x3b8   : > { %v2918_v23 = vadd.f32 %v4958_v60, %v2917_v28  ;;  %3191 = vmatmul.msk.f32.gmra.mxu1 %vm2511_vm0, %v2495_v54  ;;  %v2999_v28 = vld [vmem:[%s3341_s8 + $0xc8] sm:$0xff]  ;;  %v2749_v54 = vmax.f32 %v2702_v5, 0.0 }
 0x3ba   : > { %v3019_v32 = vadd.f32 %v2987_v19, %v2918_v23 }
 0x3bb   : > { %3226 = vmatmul.msk.f32.vlgmr.msra.gmra.mxu3 %vm562_vm2, %v2750_v25 }
 0x3bc   : > { %3051 = vst.msk [vmem:[%s4496_s20 + $0x68] sm:$0xff] %vm316_vm1, %v3019_v32 }
 0x3bd   : > { %v2686_v2 = vpop.f32.mrf.mxu1 }
 0x3be   : > { %v2687_v14 = vadd.f32 %v4769_v49, %v2686_v2 }
 0x3bf   : > { %v2710_v0 = vpop.f32.mrf.mxu3 }
 0x3c0   : > { %v2744_v62 = vmax.f32 %v2687_v14, 0.0  ;;  %v2711_v48 = vadd.f32 %v4769_v49, %v2710_v0 }
 0x3c2   : > { %3220 = vmatmul.msk.f32.gmra.mxu2 %vm562_vm2, %v2744_v62  ;;  %v2752_v7 = vmax.f32 %v2711_v48, 0.0 }
 0x3c3   : > { %3227 = vmatmul.msk.f32.gmra.mxu3 %vm562_vm2, %v2751_v45  ;;  %v3001_v45 = vld [vmem:[%s3341_s8 + $0xd8] sm:$0xff] }
 0x3c6   : > { %v2920_v18 = vpop.f32.mrf.mxu2 }
 0x3c7   : > { %v2921_v46 = vadd.f32 %v4958_v60, %v2920_v18 }
 0x3c9   : > { %v3020_v24 = vadd.f32 %v2988_v10, %v2921_v46  ;;  %v2994_v10 = vld [vmem:[%s3341_s8 + $0xa0] sm:$0xff] }
 0x3cb   : > { %3052 = vst.msk [vmem:[%s4496_s20 + $0x70] sm:$0xff] %vm316_vm1, %v3020_v24  ;;  %3228 = vmatmul.msk.f32.gmra.mxu3 %vm562_vm2, %v2752_v7 }
 0x3d5   : > { %v2923_v8 = vpop.f32.mrf.mxu2 }
 0x3d6   : > { %v2924_v26 = vadd.f32 %v4958_v60, %v2923_v8  ;;  %v3002_v8 = vld [vmem:[%s3341_s8 + $0xe0] sm:$0xff] }
 0x3d7   : > { %v2689_v30 = vpop.f32.mrf.mxu1 }
 0x3d8   : > { %v3021_v9 = vadd.f32 %v2989_v56, %v2924_v26  ;;  %v2690_v59 = vadd.f32 %v4769_v49, %v2689_v30 }
 0x3da   : > { %3053 = vst.msk [vmem:[%s4496_s20 + $0x78] sm:$0xff] %vm316_vm1, %v3021_v9  ;;  %v2745_v34 = vmax.f32 %v2690_v59, 0.0  ;;  %v2995_v9 = vld [vmem:[%s3341_s8 + $0xa8] sm:$0xff] }
 0x3dc   : > { %3221 = vmatmul.msk.f32.gmra.mxu2 %vm562_vm2, %v2745_v34 }
 0x3e4   : > { %v2713_v29 = vpop.f32.mrf.mxu3 }
 0x3e5   : > { %v2714_v38 = vadd.f32 %v4769_v49, %v2713_v29 }
 0x3e7   : > { %v2753_v6 = vmax.f32 %v2714_v38, 0.0  ;;  %v3003_v38 = vld [vmem:[%s3341_s8 + $0xe8] sm:$0xff] }
 0x3e9   : > { %3229 = vmatmul.msk.f32.gmra.mxu3 %vm562_vm2, %v2753_v6 }
 0x3ed   : > { %v2926_v27 = vpop.f32.mrf.mxu2 }
 0x3ee   : > { %v2927_v22 = vadd.f32 %v4958_v60, %v2926_v27 }
 0x3ef   : > { %v2692_v53 = vpop.f32.mrf.mxu1 }
 0x3f0   : > { %v3022_v15 = vadd.f32 %v2990_v36, %v2927_v22  ;;  %v2693_v39 = vadd.f32 %v4769_v49, %v2692_v53  ;;  %v2996_v22 = vld [vmem:[%s3341_s8 + $0xb0] sm:$0xff] }
 0x3f2   : > { %3054 = vst.msk [vmem:[%s4496_s20 + $0x80] sm:$0xff] %vm316_vm1, %v3022_v15  ;;  %v2746_v4 = vmax.f32 %v2693_v39, 0.0  ;;  %v3004_v39 = vld [vmem:[%s3341_s8 + $0xf0] sm:$0xff] }
 0x3f4   : > { %3222 = vmatmul.msk.f32.gmra.mxu2 %vm562_vm2, %v2746_v4 }
 0x403   : > { %v2716_v21 = vpop.f32.mrf.mxu3 }
 0x404   : > { %v2717_v44 = vadd.f32 %v4769_v49, %v2716_v21 }
 0x406   : > { %v2754_v13 = vmax.f32 %v2717_v44, 0.0 }
 0x408   : > { %v2929_v52 = vpop.f32.mrf.mxu2  ;;  %3230 = vmatmul.msk.f32.gmra.mxu3 %vm562_vm2, %v2754_v13 }
 0x409   : > { %v2930_v17 = vadd.f32 %v4958_v60, %v2929_v52  ;;  %v2997_v52 = vld [vmem:[%s3341_s8 + $0xb8] sm:$0xff] }
 0x40b   : > { %v3023_v11 = vadd.f32 %v2991_v43, %v2930_v17 }
 0x40d   : > { %3055 = vst.msk [vmem:[%s4496_s20 + $0x88] sm:$0xff] %vm316_vm1, %v3023_v11  ;;  %v3005_v11 = vld [vmem:[%s3341_s8 + $0xf8] sm:$0xff] }
 0x416   : > { %v2695_v33 = vpop.f32.mrf.mxu1 }
 0x417   : > { %v2696_v42 = vadd.f32 %v4769_v49, %v2695_v33  ;;  %v2719_v35 = vpop.f32.mrf.mxu3 }
 0x418   : > { %v2720_v61 = vadd.f32 %v4769_v49, %v2719_v35 }
 0x419   : > { %v2747_v12 = vmax.f32 %v2696_v42, 0.0 }
 0x41a   : > { %v2755_v31 = vmax.f32 %v2720_v61, 0.0 }
 0x41b   : > { %3223 = vmatmul.msk.f32.gmra.mxu2 %vm562_vm2, %v2747_v12  ;;  %v2998_v12 = vld [vmem:[%s3341_s8 + $0xc0] sm:$0xff] }
 0x41c   : > { %3231 = vmatmul.msk.f32.gmra.mxu3 %vm562_vm2, %v2755_v31 }
 0x41f   : > { %v2932_v47 = vpop.f32.mrf.mxu2 }
 0x420   : > { %v2933_v50 = vadd.f32 %v4958_v60, %v2932_v47 }
 0x422   : > { %v3024_v16 = vadd.f32 %v2992_v51, %v2933_v50 }
 0x424   : > { %3056 = vst.msk [vmem:[%s4496_s20 + $0x90] sm:$0xff] %vm316_vm1, %v3024_v16 }
 0x435   : > { %v2698_v3 = vpop.f32.mrf.mxu1 }
 0x436   : > { %v2699_v41 = vadd.f32 %v4769_v49, %v2698_v3  ;;  %v2722_v20 = vpop.f32.mrf.mxu3 }
 0x437   : > { %v2723_v37 = vadd.f32 %v4769_v49, %v2722_v20 }
 0x438   : > { %v2748_v40 = vmax.f32 %v2699_v41, 0.0 }
 0x439   : > { %v2756_v58 = vmax.f32 %v2723_v37, 0.0 }
 0x43a   : > { %3224 = vmatmul.msk.f32.gmra.mxu2 %vm562_vm2, %v2748_v40 }
 0x43b   : > { %3232 = vmatmul.msk.f32.gmra.mxu3 %vm562_vm2, %v2756_v58 }
 0x43e   : > { %v2953_v55 = vpop.f32.mrf.mxu3 }
 0x43f   : > { %v2954_v19 = vadd.f32 %v4958_v60, %v2953_v55 }
 0x441   : > { %v3031_v23 = vadd.f32 %v2999_v28, %v2954_v19 }
 0x442   : > { %3225 = vmatmul.msk.f32.gmra.mxu2 %vm562_vm2, %v2749_v54 }
 0x443   : > { %3063 = vst.msk [vmem:[%s4496_s20 + $0xc8] sm:$0xff] %vm316_vm1, %v3031_v23 }
 0x445   : > { %v2935_v25 = vpop.f32.mrf.mxu2 }
 0x446   : > { %v2936_v32 = vadd.f32 %v4958_v60, %v2935_v25  ;;  %v2956_v49 = vpop.f32.mrf.mxu3 }
 0x447   : > { %v2957_v1 = vadd.f32 %v4958_v60, %v2956_v49 }
 0x448   : > { %v3025_v2 = vadd.f32 %v2993_v57, %v2936_v32 }
 0x449   : > { %v3032_v14 = vadd.f32 %v3000_v63, %v2957_v1 }
 0x44a   : > { %3057 = vst.msk [vmem:[%s4496_s20 + $0x98] sm:$0xff] %vm316_vm1, %v3025_v2 }
 0x44b   : > { %3064 = vst.msk [vmem:[%s4496_s20 + $0xd0] sm:$0xff] %vm316_vm1, %v3032_v14 }
 0x44e   : > { %v2959_v62 = vpop.f32.mrf.mxu3 }
 0x44f   : > { %v2960_v0 = vadd.f32 %v4958_v60, %v2959_v62 }
 0x451   : > { %v3033_v48 = vadd.f32 %v3001_v45, %v2960_v0 }
 0x453   : > { %3065 = vst.msk [vmem:[%s4496_s20 + $0xd8] sm:$0xff] %vm316_vm1, %v3033_v48 }
 0x45f   : > { %v2938_v18 = vpop.f32.mrf.mxu2 }
 0x460   : > { %v2939_v46 = vadd.f32 %v4958_v60, %v2938_v18 }
 0x462   : > { %v3026_v7 = vadd.f32 %v2994_v10, %v2939_v46 }
 0x464   : > { %3058 = vst.msk [vmem:[%s4496_s20 + $0xa0] sm:$0xff] %vm316_vm1, %v3026_v7 }
 0x46c   : > { %v2962_v24 = vpop.f32.mrf.mxu3 }
 0x46d   : > { %v2963_v56 = vadd.f32 %v4958_v60, %v2962_v24 }
 0x46f   : > { %v3034_v26 = vadd.f32 %v3002_v8, %v2963_v56 }
 0x471   : > { %3066 = vst.msk [vmem:[%s4496_s20 + $0xe0] sm:$0xff] %vm316_vm1, %v3034_v26 }
 0x477   : > { %v2941_v30 = vpop.f32.mrf.mxu2 }
 0x478   : > { %v2942_v59 = vadd.f32 %v4958_v60, %v2941_v30 }
 0x47a   : > { %v3027_v34 = vadd.f32 %v2995_v9, %v2942_v59 }
 0x47c   : > { %3059 = vst.msk [vmem:[%s4496_s20 + $0xa8] sm:$0xff] %vm316_vm1, %v3027_v34 }
 0x48b   : > { %v2965_v29 = vpop.f32.mrf.mxu3 }
 0x48c   : > { %v2966_v6 = vadd.f32 %v4958_v60, %v2965_v29 }
 0x48e   : > { %v3035_v27 = vadd.f32 %v3003_v38, %v2966_v6 }
 0x490   : > { %3067 = vst.msk [vmem:[%s4496_s20 + $0xe8] sm:$0xff] %vm316_vm1, %v3035_v27 }
 0x49e   : > { %v2944_v36 = vpop.f32.mrf.mxu2 }
 0x49f   : > { %v2945_v53 = vadd.f32 %v4958_v60, %v2944_v36  ;;  %v2968_v15 = vpop.f32.mrf.mxu3 }
 0x4a0   : > { %v2969_v4 = vadd.f32 %v4958_v60, %v2968_v15 }
 0x4a1   : > { %v3028_v21 = vadd.f32 %v2996_v22, %v2945_v53 }
 0x4a2   : > { %v3036_v44 = vadd.f32 %v3004_v39, %v2969_v4 }
 0x4a3   : > { %3060 = vst.msk [vmem:[%s4496_s20 + $0xb0] sm:$0xff] %vm316_vm1, %v3028_v21 }
 0x4a4   : > { %3068 = vst.msk [vmem:[%s4496_s20 + $0xf0] sm:$0xff] %vm316_vm1, %v3036_v44 }
 0x4bd   : > { %v2947_v13 = vpop.f32.mrf.mxu2 }
 0x4be   : > { %v2948_v43 = vadd.f32 %v4958_v60, %v2947_v13  ;;  %v2971_v17 = vpop.f32.mrf.mxu3 }
 0x4bf   : > { %v2972_v33 = vadd.f32 %v4958_v60, %v2971_v17 }
 0x4c0   : > { %v3029_v42 = vadd.f32 %v2997_v52, %v2948_v43 }
 0x4c1   : > { %v3037_v35 = vadd.f32 %v3005_v11, %v2972_v33 }
 0x4c2   : > { %3061 = vst.msk [vmem:[%s4496_s20 + $0xb8] sm:$0xff] %vm316_vm1, %v3029_v42 }
 0x4c3   : > { %3069 = vst.msk [vmem:[%s4496_s20 + $0xf8] sm:$0xff] %vm316_vm1, %v3037_v35 }
 0x4c5   : > { %v2950_v61 = vpop.f32.mrf.mxu2 }
 0x4c6   : > { %v2951_v31 = vadd.f32 %v4958_v60, %v2950_v61 }
 0x4c8   : > { %v3030_v47 = vadd.f32 %v2998_v12, %v2951_v31 }
 0x4ca   : > { %3062 = vst.msk [vmem:[%s4496_s20 + $0xc0] sm:$0xff] %vm316_vm1, %v3030_v47 }
 0x4cb PF: > { %s17_s24 = sadd.s32 1, %s3271_s24  }
 0x4cc   : > { %p14_p4 = scmp.ge.s32.totalorder %s17_s24, 4  }
 0x4ce   :  { %16 = sbr.rel (!%p14_p4) target bundleno = 1 (0x1), region = 81 }

</bundles_post_ra>
